<compile_context>
chip_gen: v5e
topology: v5e:2x2
jax: 0.10.0
libtpu: 0.0.40
codegen_flags: <defaults>
</compile_context>

<pallas_src>
import functools

import jax
import jax.numpy as jnp
from jax import lax
from jax.experimental import pallas as pl
from jax.experimental.pallas import tpu as pltpu


# ----------------------------------------------------------------------------
# Helpers
# ----------------------------------------------------------------------------

def _round_up(x, m):
    return ((x + m - 1) // m) * m


def _layernorm(x, g, b, eps=1e-5):
    mean = jnp.mean(x, axis=-1, keepdims=True)
    var = jnp.mean(jnp.square(x - mean), axis=-1, keepdims=True)
    return (x - mean) * lax.rsqrt(var + eps) * g + b


# ----------------------------------------------------------------------------
# Kernel 1: tiled matmul + bias (+ optional ReLU), bf16 operands / f32 acc.
# K and N use full-extent blocks (no zero padding); only M is rounded to 8.
# ----------------------------------------------------------------------------

def _mm_bias_kernel(a_ref, b_ref, bias_ref, o_ref, *, relu):
    y = jnp.dot(a_ref[...], b_ref[...],
                preferred_element_type=jnp.float32) + bias_ref[...]
    o_ref[...] = jnp.maximum(y, 0.0) if relu else y


def pallas_linear(x, w, b, *, relu=False):
    """y = x @ w + b (optionally ReLU). x:(M,K) w:(K,N) b:(N,) -> (M,N) f32."""
    M, K = x.shape
    K2, N = w.shape
    assert K == K2
    Mp = _round_up(M, 8)
    if Mp != M:
        x = jnp.zeros((Mp, K), x.dtype).at[:M].set(x)
    # keep >=2 row blocks when M allows it so both v7x TensorCores get work
    tm = 64 if (Mp % 64 == 0 and Mp > 64) else Mp

    xb = x.astype(jnp.bfloat16)
    wb = w.astype(jnp.bfloat16)
    bias = b.reshape(1, N).astype(jnp.float32)

    out = pl.pallas_call(
        functools.partial(_mm_bias_kernel, relu=relu),
        out_shape=jax.ShapeDtypeStruct((Mp, N), jnp.float32),
        grid_spec=pltpu.PrefetchScalarGridSpec(
            num_scalar_prefetch=0,
            grid=(Mp // tm,),
            in_specs=[
                pl.BlockSpec((tm, K), lambda i: (i, 0)),
                pl.BlockSpec((K, N), lambda i: (0, 0)),
                pl.BlockSpec((1, N), lambda i: (0, 0)),
            ],
            out_specs=pl.BlockSpec((tm, N), lambda i: (i, 0)),
        ),
        compiler_params=pltpu.CompilerParams(
            dimension_semantics=("parallel",)),
    )(xb, wb, bias)
    return out[:M] if Mp != M else out


# ----------------------------------------------------------------------------
# Kernel 2: fused conv-as-matmul + BatchNorm(train stats) + ReLU.
# Single block: BN stats need the full (N*L, C) slab anyway at these sizes.
# TODO(synk): for large N*L, switch to a two-pass row-tiled BN formulation.
# ----------------------------------------------------------------------------

def _conv_bn_relu_kernel(p_ref, w_ref, b_ref, g_ref, beta_ref, o_ref):
    y = jnp.dot(p_ref[...], w_ref[...],
                preferred_element_type=jnp.float32) + b_ref[...]
    mean = jnp.mean(y, axis=0, keepdims=True)             # stats over (N, L)
    var = jnp.mean(jnp.square(y - mean), axis=0, keepdims=True)
    yn = (y - mean) * lax.rsqrt(var + 1e-5) * g_ref[...] + beta_ref[...]
    o_ref[...] = jnp.maximum(yn, 0.0)


def pallas_conv_bn_relu(patches, w2d, b, gamma, beta):
    M, _ = patches.shape
    N = w2d.shape[1]
    return pl.pallas_call(
        _conv_bn_relu_kernel,
        out_shape=jax.ShapeDtypeStruct((M, N), jnp.float32),
    )(patches.astype(jnp.bfloat16), w2d.astype(jnp.bfloat16),
      b.reshape(1, N).astype(jnp.float32),
      gamma.reshape(1, N).astype(jnp.float32),
      beta.reshape(1, N).astype(jnp.float32))


# ----------------------------------------------------------------------------
# Kernel 3: fully fused TransformerEncoderLayer (post-LN, relu FFN).
# grid = (batch*lead,), weights resident in VMEM, heads packed lane-dense.
# ----------------------------------------------------------------------------

def _encoder_layer_kernel(x_ref, mb_ref, wqkv_ref, bqkv_ref, wo_ref, bo_ref,
                          g1_ref, bt1_ref, w1_ref, bb1_ref, w2_ref, bb2_ref,
                          g2_ref, bt2_ref, o_ref, *, num_heads):
    x = x_ref[0]                                           # (S, E) f32
    S, E = x.shape
    Dh = E // num_heads
    scale = 1.0 / float(Dh) ** 0.5

    # --- self-attention ---------------------------------------------------
    qkv = jnp.dot(x.astype(jnp.bfloat16), wqkv_ref[...],
                  preferred_element_type=jnp.float32) + bqkv_ref[...]  # (S,3E)

    def split_heads(base):                                 # -> (H, S, Dh)
        return jnp.stack(
            [qkv[:, base + h * Dh: base + (h + 1) * Dh]
             for h in range(num_heads)], axis=0)

    q = split_heads(0)
    k = split_heads(E)
    v = split_heads(2 * E)

    scores = lax.dot_general(
        q.astype(jnp.bfloat16), k.astype(jnp.bfloat16),
        (((2,), (2,)), ((0,), (0,))),
        preferred_element_type=jnp.float32) * scale        # (H, S, S)
    scores = scores + mb_ref[...]                          # key-padding bias
    m = jnp.max(scores, axis=-1, keepdims=True)
    p = jnp.exp(scores - m)
    p = p * pl.reciprocal(jnp.sum(p, axis=-1, keepdims=True), approx=True)
    ctx = lax.dot_general(
        p.astype(jnp.bfloat16), v.astype(jnp.bfloat16),
        (((2,), (1,)), ((0,), (0,))),
        preferred_element_type=jnp.float32)                # (H, S, Dh)
    attn = jnp.concatenate([ctx[h] for h in range(num_heads)], axis=-1)  # (S,E)

    attn = jnp.dot(attn.astype(jnp.bfloat16), wo_ref[...],
                   preferred_element_type=jnp.float32) + bo_ref[...]

    # TODO(synk): dropout treated as identity (eval semantics).
    h1 = _layernorm(x + attn, g1_ref[...], bt1_ref[...])

    # --- feed-forward -------------------------------------------------------
    f = jnp.dot(h1.astype(jnp.bfloat16), w1_ref[...],
                preferred_element_type=jnp.float32) + bb1_ref[...]
    f = jnp.maximum(f, 0.0)
    f = jnp.dot(f.astype(jnp.bfloat16), w2_ref[...],
                preferred_element_type=jnp.float32) + bb2_ref[...]

    o_ref[0] = _layernorm(h1 + f, g2_ref[...], bt2_ref[...])


def transformer_layer(x, p, mask_bias3, num_heads):
    BN, S, E = x.shape

    wqkv = p['in_proj_w'].T.astype(jnp.bfloat16)           # (E, 3E)
    bqkv = p['in_proj_b'].reshape(1, -1).astype(jnp.float32)
    wo = p['out_proj_w'].T.astype(jnp.bfloat16)            # (E, E)
    bo = p['out_proj_b'].reshape(1, -1).astype(jnp.float32)
    w1 = p['lin1_w'].T.astype(jnp.bfloat16)                # (E, H)
    b1 = p['lin1_b'].reshape(1, -1).astype(jnp.float32)
    w2 = p['lin2_w'].T.astype(jnp.bfloat16)                # (H, E)
    b2 = p['lin2_b'].reshape(1, -1).astype(jnp.float32)
    g1 = p['ln1_g'].reshape(1, -1).astype(jnp.float32)
    bt1 = p['ln1_b'].reshape(1, -1).astype(jnp.float32)
    g2 = p['ln2_g'].reshape(1, -1).astype(jnp.float32)
    bt2 = p['ln2_b'].reshape(1, -1).astype(jnp.float32)

    def wspec(arr):                                        # weight: resident
        nd = arr.ndim
        return pl.BlockSpec(arr.shape, lambda b, _nd=nd: (0,) * _nd)

    x_spec = pl.BlockSpec((1, S, E), lambda b: (b, 0, 0))
    m_spec = pl.BlockSpec((1, 1, S), lambda b: (b, 0, 0))

    return pl.pallas_call(
        functools.partial(_encoder_layer_kernel, num_heads=num_heads),
        out_shape=jax.ShapeDtypeStruct((BN, S, E), jnp.float32),
        grid_spec=pltpu.PrefetchScalarGridSpec(
            num_scalar_prefetch=0,
            grid=(BN,),
            in_specs=[x_spec, m_spec,
                      wspec(wqkv), wspec(bqkv), wspec(wo), wspec(bo),
                      wspec(g1), wspec(bt1), wspec(w1), wspec(b1),
                      wspec(w2), wspec(b2), wspec(g2), wspec(bt2)],
            out_specs=x_spec,
        ),
        compiler_params=pltpu.CompilerParams(
            dimension_semantics=("parallel",)),
    )(x.astype(jnp.float32), mask_bias3,
      wqkv, bqkv, wo, bo, g1, bt1, w1, b1, w2, b2, g2, bt2)


# ----------------------------------------------------------------------------
# Conv glue (im2col in bf16 -> fused Pallas kernels)
# ----------------------------------------------------------------------------

def _im2col(x_ncl, ksize, stride, padding):
    N, C, L = x_ncl.shape
    L_out = (L + 2 * padding - ksize) // stride + 1
    xp = jnp.pad(x_ncl.astype(jnp.bfloat16),
                 ((0, 0), (0, 0), (padding, padding)))
    idx = (jnp.arange(L_out) * stride)[:, None] + jnp.arange(ksize)[None, :]
    patches = xp[:, :, idx]                                # (N, C, L_out, k)
    patches = patches.transpose(0, 2, 1, 3).reshape(N * L_out, C * ksize)
    return patches, L_out


def conv1d_patches(x_ncl, W, stride, padding):
    """Build im2col patches + flat weight for a PyTorch Conv1d."""
    C_out, C_in, k = W.shape
    patches, L_out = _im2col(x_ncl, k, stride, padding)
    Wf = W.reshape(C_out, C_in * k).T                      # (C_in*k, C_out)
    return patches, Wf, L_out


def convT1d_patches(x_ncl, W, stride, padding):
    """PyTorch ConvTranspose1d as zero-insert upsample + flipped conv."""
    C_in, C_out, k = W.shape
    N, _, L = x_ncl.shape
    Lu = (L - 1) * stride + 1
    xu = jnp.zeros((N, C_in, Lu), jnp.float32).at[:, :, ::stride].set(x_ncl)
    Wc = jnp.flip(W, axis=-1).transpose(1, 0, 2)           # (C_out, C_in, k)
    return conv1d_patches(xu, Wc, stride=1, padding=k - 1 - padding)


def cnn_embedding(signal_ncl, p):
    N = signal_ncl.shape[0]

    def to_ncl(y_flat, L):
        return y_flat.reshape(N, L, -1).transpose(0, 2, 1)

    pt, Wf, L1 = conv1d_patches(signal_ncl, p['e1_w'], 2, 3)
    enc1 = to_ncl(pallas_conv_bn_relu(pt, Wf, p['e1_b'], p['e1_g'],
                                      p['e1_beta']), L1)

    pt, Wf, L2 = conv1d_patches(enc1, p['e2_w'], 2, 2)
    enc2 = to_ncl(pallas_conv_bn_relu(pt, Wf, p['e2_b'], p['e2_g'],
                                      p['e2_beta']), L2)

    pt, Wf, L3 = convT1d_patches(enc2, p['d1_w'], 2, 1)
    dec1 = to_ncl(pallas_conv_bn_relu(pt, Wf, p['d1_b'], p['d1_g'],
                                      p['d1_beta']), L3)

    pt, Wf, L4 = convT1d_patches(dec1 + enc1, p['d2_w'], 2, 1)
    dec2 = to_ncl(pallas_conv_bn_relu(pt, Wf, p['d2_b'], p['d2_g'],
                                      p['d2_beta']), L4)

    pt, Wf, L5 = conv1d_patches(dec2, p['f_w'], 1, 1)
    y = pallas_linear(pt, Wf, p['f_b'])                    # final_conv (no BN)
    return y.reshape(N, L5, -1)                            # (N, L, E) == permute(0,2,1)


# ----------------------------------------------------------------------------
# Full ECGBERT forward
# ----------------------------------------------------------------------------

def ecgbert_forward(params, masked_sentence_token, sentence_attention_mask,
                    signal, *, num_heads):
    batch, lead, S = masked_sentence_token.shape
    BN = batch * lead
    tok = masked_sentence_token.reshape(BN, S)
    msk = sentence_attention_mask.reshape(BN, S)
    sig = signal.reshape(BN, 1, S).astype(jnp.float32)

    token_embed = jnp.take(params['tok_emb'], tok, axis=0)
    pos_embed = jnp.take(params['pos_emb'], tok, axis=0)   # ref indexes by token ids
    signal_embed = cnn_embedding(sig, params['cnn'])       # (BN, S, E)

    x = token_embed + pos_embed + signal_embed
    mask_bias = jnp.where(msk.astype(bool),
                          jnp.float32(-1e30), jnp.float32(0.0))
    mask_bias = mask_bias.reshape(BN, 1, S)

    for lp in params['layers']:
        x = transformer_layer(x, lp, mask_bias, num_heads)

    E = x.shape[-1]
    logits = pallas_linear(x.reshape(BN * S, E),
                           params['fc_w'].T, params['fc_b'])
    return logits.reshape(BN, S, -1)                       # (B*lead, S, vocab)


# ----------------------------------------------------------------------------
# Deterministic parameter init (shapes from ECGBERT.__init__)
# ----------------------------------------------------------------------------

def init_params(key, vocab_size, embed_dim, max_seq_len, num_heads,
                num_layers, hidden_dim):
    keys = iter(jax.random.split(key, 64))
    def nrm(shape, scale=0.05):
        return (scale * jax.random.normal(next(keys), shape)).astype(jnp.float32)
    E = embed_dim
    ones = lambda n: jnp.ones((n,), jnp.float32)
    zeros = lambda n: jnp.zeros((n,), jnp.float32)

    params = {
        'tok_emb': nrm((vocab_size, E), 0.1),
        'pos_emb': nrm((max_seq_len, E), 0.1),
        'cnn': {
            'e1_w': nrm((E, 1, 7)),      'e1_b': nrm((E,)),
            'e1_g': ones(E),             'e1_beta': zeros(E),
            'e2_w': nrm((2 * E, E, 5)),  'e2_b': nrm((2 * E,)),
            'e2_g': ones(2 * E),         'e2_beta': zeros(2 * E),
            'd1_w': nrm((2 * E, E, 4)),  'd1_b': nrm((E,)),
            'd1_g': ones(E),             'd1_beta': zeros(E),
            'd2_w': nrm((E, E, 4)),      'd2_b': nrm((E,)),
            'd2_g': ones(E),             'd2_beta': zeros(E),
            'f_w': nrm((E, E, 3)),       'f_b': nrm((E,)),
        },
        'layers': [],
        'fc_w': nrm((vocab_size, E)),    'fc_b': nrm((vocab_size,)),
    }
    for _ in range(num_layers):
        params['layers'].append({
            'in_proj_w': nrm((3 * E, E)),      'in_proj_b': nrm((3 * E,)),
            'out_proj_w': nrm((E, E)),         'out_proj_b': nrm((E,)),
            'ln1_g': ones(E),                  'ln1_b': zeros(E),
            'lin1_w': nrm((hidden_dim, E)),    'lin1_b': nrm((hidden_dim,)),
            'lin2_w': nrm((E, hidden_dim)),    'lin2_b': nrm((E,)),
            'ln2_g': ones(E),                  'ln2_b': zeros(E),
        })
    return params


# ----------------------------------------------------------------------------

if __name__ == "__main__":
    VOCAB = 64
    EMBED = 32
    MAX_SEQ_LEN = 64      # >= VOCAB since the reference indexes pos-emb by token id
    NUM_HEADS = 4
    NUM_LAYERS = 2
    HIDDEN = 64

    BATCH, LEAD, SEQ = 2, 4, 16

    assert MAX_SEQ_LEN >= VOCAB, "reference indexes positional_embedding by token id"
    assert EMBED % NUM_HEADS == 0

    root = jax.random.PRNGKey(0)
    kp, kt, ks = jax.random.split(root, 3)

    params = init_params(kp, VOCAB, EMBED, MAX_SEQ_LEN, NUM_HEADS,
                         NUM_LAYERS, HIDDEN)

    masked_sentence_token = jax.random.randint(kt, (BATCH, LEAD, SEQ), 0, VOCAB,
                                               dtype=jnp.int32)
    sentence_attention_mask = jnp.zeros((BATCH, LEAD, SEQ), jnp.int32)
    sentence_attention_mask = sentence_attention_mask.at[:, :, SEQ - 4:].set(1)
    signal = jax.random.normal(ks, (BATCH, LEAD, SEQ), jnp.float32)

    fwd = jax.jit(functools.partial(ecgbert_forward, num_heads=NUM_HEADS))
    logits = fwd(params, masked_sentence_token, sentence_attention_mask, signal)
    jax.block_until_ready(logits)

    assert logits.shape == (BATCH * LEAD, SEQ, VOCAB)
    assert bool(jnp.all(jnp.isfinite(logits)))
    print("KERNEL_OK")
</pallas_src>

<mosaic_0001>
module attributes {stable_mosaic.version = 11 : i64} {
  func.func @_conv_bn_relu_kernel(%arg0: memref<64x7xbf16, #tpu.memory_space<vmem>>, %arg1: memref<7x32xbf16, #tpu.memory_space<vmem>>, %arg2: memref<1x32xf32, #tpu.memory_space<vmem>>, %arg3: memref<1x32xf32, #tpu.memory_space<vmem>>, %arg4: memref<1x32xf32, #tpu.memory_space<vmem>>, %arg5: memref<64x32xf32, #tpu.memory_space<vmem>>) attributes {dimension_semantics = [], scalar_prefetch = 0 : i64, scratch_operands = 0 : i64, tpu.core_type = #tpu.core_type<tc>} {
    %c0 = arith.constant 0 : index
    %c0_0 = arith.constant 0 : index
    %0 = vector.load %arg0[%c0, %c0_0] : memref<64x7xbf16, #tpu.memory_space<vmem>>, vector<64x7xbf16>
    %c0_1 = arith.constant 0 : index
    %c0_2 = arith.constant 0 : index
    %1 = vector.load %arg1[%c0_1, %c0_2] : memref<7x32xbf16, #tpu.memory_space<vmem>>, vector<7x32xbf16>
    %cst = arith.constant dense<0.000000e+00> : vector<64x32xf32>
    %2 = tpu.matmul %0, %1, %cst {dimension_numbers = #tpu.dot_dimension_numbers<[1], [0], [0], [1], [0, 0, 1, 1], [], []>} : vector<64x7xbf16>, vector<7x32xbf16>, vector<64x32xf32> -> vector<64x32xf32>
    %c0_3 = arith.constant 0 : index
    %c0_4 = arith.constant 0 : index
    %3 = vector.load %arg2[%c0_3, %c0_4] : memref<1x32xf32, #tpu.memory_space<vmem>>, vector<1x32xf32>
    %4 = vector.broadcast %3 : vector<1x32xf32> to vector<64x32xf32>
    %5 = arith.addf %2, %4 : vector<64x32xf32>
    %cst_5 = arith.constant dense<0.000000e+00> : vector<32xf32>
    %6 = vector.multi_reduction <add>, %5, %cst_5 [0] : vector<64x32xf32> to vector<32xf32>
    %7 = vector.shape_cast %6 : vector<32xf32> to vector<1x32xf32>
    %cst_6 = arith.constant 6.400000e+01 : f32
    %8 = vector.broadcast %cst_6 : f32 to vector<1x32xf32>
    %9 = arith.divf %7, %8 : vector<1x32xf32>
    %10 = vector.broadcast %9 : vector<1x32xf32> to vector<64x32xf32>
    %11 = arith.subf %5, %10 : vector<64x32xf32>
    %12 = arith.mulf %11, %11 : vector<64x32xf32>
    %cst_7 = arith.constant dense<0.000000e+00> : vector<32xf32>
    %13 = vector.multi_reduction <add>, %12, %cst_7 [0] : vector<64x32xf32> to vector<32xf32>
    %14 = vector.shape_cast %13 : vector<32xf32> to vector<1x32xf32>
    %cst_8 = arith.constant 6.400000e+01 : f32
    %15 = vector.broadcast %cst_8 : f32 to vector<1x32xf32>
    %16 = arith.divf %14, %15 : vector<1x32xf32>
    %17 = vector.broadcast %9 : vector<1x32xf32> to vector<64x32xf32>
    %18 = arith.subf %5, %17 : vector<64x32xf32>
    %cst_9 = arith.constant 9.99999974E-6 : f32
    %19 = vector.broadcast %cst_9 : f32 to vector<1x32xf32>
    %20 = arith.addf %16, %19 : vector<1x32xf32>
    %21 = math.rsqrt %20 : vector<1x32xf32>
    %22 = vector.broadcast %21 : vector<1x32xf32> to vector<64x32xf32>
    %23 = arith.mulf %18, %22 : vector<64x32xf32>
    %c0_10 = arith.constant 0 : index
    %c0_11 = arith.constant 0 : index
    %24 = vector.load %arg3[%c0_10, %c0_11] : memref<1x32xf32, #tpu.memory_space<vmem>>, vector<1x32xf32>
    %25 = vector.broadcast %24 : vector<1x32xf32> to vector<64x32xf32>
    %26 = arith.mulf %23, %25 : vector<64x32xf32>
    %c0_12 = arith.constant 0 : index
    %c0_13 = arith.constant 0 : index
    %27 = vector.load %arg4[%c0_12, %c0_13] : memref<1x32xf32, #tpu.memory_space<vmem>>, vector<1x32xf32>
    %28 = vector.broadcast %27 : vector<1x32xf32> to vector<64x32xf32>
    %29 = arith.addf %26, %28 : vector<64x32xf32>
    %cst_14 = arith.constant 0.000000e+00 : f32
    %30 = vector.broadcast %cst_14 : f32 to vector<64x32xf32>
    %31 = arith.maximumf %29, %30 : vector<64x32xf32>
    %c0_15 = arith.constant 0 : index
    %c0_16 = arith.constant 0 : index
    %32 = vector.load %arg5[%c0_15, %c0_16] : memref<64x32xf32, #tpu.memory_space<vmem>>, vector<64x32xf32>
    tpu.vector_store %arg5[%c0_15, %c0_16], %31 {strides = array<i32>} : memref<64x32xf32, #tpu.memory_space<vmem>>, vector<64x32xf32>,
    return
  }
}

module attributes {stable_mosaic.version = 11 : i64} {
  func.func @_conv_bn_relu_kernel(%arg0: memref<32x160xbf16, #tpu.memory_space<vmem>>, %arg1: memref<160x64xbf16, #tpu.memory_space<vmem>>, %arg2: memref<1x64xf32, #tpu.memory_space<vmem>>, %arg3: memref<1x64xf32, #tpu.memory_space<vmem>>, %arg4: memref<1x64xf32, #tpu.memory_space<vmem>>, %arg5: memref<32x64xf32, #tpu.memory_space<vmem>>) attributes {dimension_semantics = [], scalar_prefetch = 0 : i64, scratch_operands = 0 : i64, tpu.core_type = #tpu.core_type<tc>} {
    %c0 = arith.constant 0 : index
    %c0_0 = arith.constant 0 : index
    %0 = vector.load %arg0[%c0, %c0_0] : memref<32x160xbf16, #tpu.memory_space<vmem>>, vector<32x160xbf16>
    %c0_1 = arith.constant 0 : index
    %c0_2 = arith.constant 0 : index
    %1 = vector.load %arg1[%c0_1, %c0_2] : memref<160x64xbf16, #tpu.memory_space<vmem>>, vector<160x64xbf16>
    %cst = arith.constant dense<0.000000e+00> : vector<32x64xf32>
    %2 = tpu.matmul %0, %1, %cst {dimension_numbers = #tpu.dot_dimension_numbers<[1], [0], [0], [1], [0, 0, 1, 1], [], []>} : vector<32x160xbf16>, vector<160x64xbf16>, vector<32x64xf32> -> vector<32x64xf32>
    %c0_3 = arith.constant 0 : index
    %c0_4 = arith.constant 0 : index
    %3 = vector.load %arg2[%c0_3, %c0_4] : memref<1x64xf32, #tpu.memory_space<vmem>>, vector<1x64xf32>
    %4 = vector.broadcast %3 : vector<1x64xf32> to vector<32x64xf32>
    %5 = arith.addf %2, %4 : vector<32x64xf32>
    %cst_5 = arith.constant dense<0.000000e+00> : vector<64xf32>
    %6 = vector.multi_reduction <add>, %5, %cst_5 [0] : vector<32x64xf32> to vector<64xf32>
    %7 = vector.shape_cast %6 : vector<64xf32> to vector<1x64xf32>
    %cst_6 = arith.constant 3.200000e+01 : f32
    %8 = vector.broadcast %cst_6 : f32 to vector<1x64xf32>
    %9 = arith.divf %7, %8 : vector<1x64xf32>
    %10 = vector.broadcast %9 : vector<1x64xf32> to vector<32x64xf32>
    %11 = arith.subf %5, %10 : vector<32x64xf32>
    %12 = arith.mulf %11, %11 : vector<32x64xf32>
    %cst_7 = arith.constant dense<0.000000e+00> : vector<64xf32>
    %13 = vector.multi_reduction <add>, %12, %cst_7 [0] : vector<32x64xf32> to vector<64xf32>
    %14 = vector.shape_cast %13 : vector<64xf32> to vector<1x64xf32>
    %cst_8 = arith.constant 3.200000e+01 : f32
    %15 = vector.broadcast %cst_8 : f32 to vector<1x64xf32>
    %16 = arith.divf %14, %15 : vector<1x64xf32>
    %17 = vector.broadcast %9 : vector<1x64xf32> to vector<32x64xf32>
    %18 = arith.subf %5, %17 : vector<32x64xf32>
    %cst_9 = arith.constant 9.99999974E-6 : f32
    %19 = vector.broadcast %cst_9 : f32 to vector<1x64xf32>
    %20 = arith.addf %16, %19 : vector<1x64xf32>
    %21 = math.rsqrt %20 : vector<1x64xf32>
    %22 = vector.broadcast %21 : vector<1x64xf32> to vector<32x64xf32>
    %23 = arith.mulf %18, %22 : vector<32x64xf32>
    %c0_10 = arith.constant 0 : index
    %c0_11 = arith.constant 0 : index
    %24 = vector.load %arg3[%c0_10, %c0_11] : memref<1x64xf32, #tpu.memory_space<vmem>>, vector<1x64xf32>
    %25 = vector.broadcast %24 : vector<1x64xf32> to vector<32x64xf32>
    %26 = arith.mulf %23, %25 : vector<32x64xf32>
    %c0_12 = arith.constant 0 : index
    %c0_13 = arith.constant 0 : index
    %27 = vector.load %arg4[%c0_12, %c0_13] : memref<1x64xf32, #tpu.memory_space<vmem>>, vector<1x64xf32>
    %28 = vector.broadcast %27 : vector<1x64xf32> to vector<32x64xf32>
    %29 = arith.addf %26, %28 : vector<32x64xf32>
    %cst_14 = arith.constant 0.000000e+00 : f32
    %30 = vector.broadcast %cst_14 : f32 to vector<32x64xf32>
    %31 = arith.maximumf %29, %30 : vector<32x64xf32>
    %c0_15 = arith.constant 0 : index
    %c0_16 = arith.constant 0 : index
    %32 = vector.load %arg5[%c0_15, %c0_16] : memref<32x64xf32, #tpu.memory_space<vmem>>, vector<32x64xf32>
    tpu.vector_store %arg5[%c0_15, %c0_16], %31 {strides = array<i32>} : memref<32x64xf32, #tpu.memory_space<vmem>>, vector<32x64xf32>,
    return
  }
}

module attributes {stable_mosaic.version = 11 : i64} {
  func.func @_conv_bn_relu_kernel(%arg0: memref<64x256xbf16, #tpu.memory_space<vmem>>, %arg1: memref<256x32xbf16, #tpu.memory_space<vmem>>, %arg2: memref<1x32xf32, #tpu.memory_space<vmem>>, %arg3: memref<1x32xf32, #tpu.memory_space<vmem>>, %arg4: memref<1x32xf32, #tpu.memory_space<vmem>>, %arg5: memref<64x32xf32, #tpu.memory_space<vmem>>) attributes {dimension_semantics = [], scalar_prefetch = 0 : i64, scratch_operands = 0 : i64, tpu.core_type = #tpu.core_type<tc>} {
    %c0 = arith.constant 0 : index
    %c0_0 = arith.constant 0 : index
    %0 = vector.load %arg0[%c0, %c0_0] : memref<64x256xbf16, #tpu.memory_space<vmem>>, vector<64x256xbf16>
    %c0_1 = arith.constant 0 : index
    %c0_2 = arith.constant 0 : index
    %1 = vector.load %arg1[%c0_1, %c0_2] : memref<256x32xbf16, #tpu.memory_space<vmem>>, vector<256x32xbf16>
    %cst = arith.constant dense<0.000000e+00> : vector<64x32xf32>
    %2 = tpu.matmul %0, %1, %cst {dimension_numbers = #tpu.dot_dimension_numbers<[1], [0], [0], [1], [0, 0, 1, 1], [], []>} : vector<64x256xbf16>, vector<256x32xbf16>, vector<64x32xf32> -> vector<64x32xf32>
    %c0_3 = arith.constant 0 : index
    %c0_4 = arith.constant 0 : index
    %3 = vector.load %arg2[%c0_3, %c0_4] : memref<1x32xf32, #tpu.memory_space<vmem>>, vector<1x32xf32>
    %4 = vector.broadcast %3 : vector<1x32xf32> to vector<64x32xf32>
    %5 = arith.addf %2, %4 : vector<64x32xf32>
    %cst_5 = arith.constant dense<0.000000e+00> : vector<32xf32>
    %6 = vector.multi_reduction <add>, %5, %cst_5 [0] : vector<64x32xf32> to vector<32xf32>
    %7 = vector.shape_cast %6 : vector<32xf32> to vector<1x32xf32>
    %cst_6 = arith.constant 6.400000e+01 : f32
    %8 = vector.broadcast %cst_6 : f32 to vector<1x32xf32>
    %9 = arith.divf %7, %8 : vector<1x32xf32>
    %10 = vector.broadcast %9 : vector<1x32xf32> to vector<64x32xf32>
    %11 = arith.subf %5, %10 : vector<64x32xf32>
    %12 = arith.mulf %11, %11 : vector<64x32xf32>
    %cst_7 = arith.constant dense<0.000000e+00> : vector<32xf32>
    %13 = vector.multi_reduction <add>, %12, %cst_7 [0] : vector<64x32xf32> to vector<32xf32>
    %14 = vector.shape_cast %13 : vector<32xf32> to vector<1x32xf32>
    %cst_8 = arith.constant 6.400000e+01 : f32
    %15 = vector.broadcast %cst_8 : f32 to vector<1x32xf32>
    %16 = arith.divf %14, %15 : vector<1x32xf32>
    %17 = vector.broadcast %9 : vector<1x32xf32> to vector<64x32xf32>
    %18 = arith.subf %5, %17 : vector<64x32xf32>
    %cst_9 = arith.constant 9.99999974E-6 : f32
    %19 = vector.broadcast %cst_9 : f32 to vector<1x32xf32>
    %20 = arith.addf %16, %19 : vector<1x32xf32>
    %21 = math.rsqrt %20 : vector<1x32xf32>
    %22 = vector.broadcast %21 : vector<1x32xf32> to vector<64x32xf32>
    %23 = arith.mulf %18, %22 : vector<64x32xf32>
    %c0_10 = arith.constant 0 : index
    %c0_11 = arith.constant 0 : index
    %24 = vector.load %arg3[%c0_10, %c0_11] : memref<1x32xf32, #tpu.memory_space<vmem>>, vector<1x32xf32>
    %25 = vector.broadcast %24 : vector<1x32xf32> to vector<64x32xf32>
    %26 = arith.mulf %23, %25 : vector<64x32xf32>
    %c0_12 = arith.constant 0 : index
    %c0_13 = arith.constant 0 : index
    %27 = vector.load %arg4[%c0_12, %c0_13] : memref<1x32xf32, #tpu.memory_space<vmem>>, vector<1x32xf32>
    %28 = vector.broadcast %27 : vector<1x32xf32> to vector<64x32xf32>
    %29 = arith.addf %26, %28 : vector<64x32xf32>
    %cst_14 = arith.constant 0.000000e+00 : f32
    %30 = vector.broadcast %cst_14 : f32 to vector<64x32xf32>
    %31 = arith.maximumf %29, %30 : vector<64x32xf32>
    %c0_15 = arith.constant 0 : index
    %c0_16 = arith.constant 0 : index
    %32 = vector.load %arg5[%c0_15, %c0_16] : memref<64x32xf32, #tpu.memory_space<vmem>>, vector<64x32xf32>
    tpu.vector_store %arg5[%c0_15, %c0_16], %31 {strides = array<i32>} : memref<64x32xf32, #tpu.memory_space<vmem>>, vector<64x32xf32>,
    return
  }
}

module attributes {stable_mosaic.version = 11 : i64} {
  func.func @_conv_bn_relu_kernel(%arg0: memref<128x128xbf16, #tpu.memory_space<vmem>>, %arg1: memref<128x32xbf16, #tpu.memory_space<vmem>>, %arg2: memref<1x32xf32, #tpu.memory_space<vmem>>, %arg3: memref<1x32xf32, #tpu.memory_space<vmem>>, %arg4: memref<1x32xf32, #tpu.memory_space<vmem>>, %arg5: memref<128x32xf32, #tpu.memory_space<vmem>>) attributes {dimension_semantics = [], scalar_prefetch = 0 : i64, scratch_operands = 0 : i64, tpu.core_type = #tpu.core_type<tc>} {
    %c0 = arith.constant 0 : index
    %c0_0 = arith.constant 0 : index
    %0 = vector.load %arg0[%c0, %c0_0] : memref<128x128xbf16, #tpu.memory_space<vmem>>, vector<128x128xbf16>
    %c0_1 = arith.constant 0 : index
    %c0_2 = arith.constant 0 : index
    %1 = vector.load %arg1[%c0_1, %c0_2] : memref<128x32xbf16, #tpu.memory_space<vmem>>, vector<128x32xbf16>
    %cst = arith.constant dense<0.000000e+00> : vector<128x32xf32>
    %2 = tpu.matmul %0, %1, %cst {dimension_numbers = #tpu.dot_dimension_numbers<[1], [0], [0], [1], [0, 0, 1, 1], [], []>} : vector<128x128xbf16>, vector<128x32xbf16>, vector<128x32xf32> -> vector<128x32xf32>
    %c0_3 = arith.constant 0 : index
    %c0_4 = arith.constant 0 : index
    %3 = vector.load %arg2[%c0_3, %c0_4] : memref<1x32xf32, #tpu.memory_space<vmem>>, vector<1x32xf32>
    %4 = vector.broadcast %3 : vector<1x32xf32> to vector<128x32xf32>
    %5 = arith.addf %2, %4 : vector<128x32xf32>
    %cst_5 = arith.constant dense<0.000000e+00> : vector<32xf32>
    %6 = vector.multi_reduction <add>, %5, %cst_5 [0] : vector<128x32xf32> to vector<32xf32>
    %7 = vector.shape_cast %6 : vector<32xf32> to vector<1x32xf32>
    %cst_6 = arith.constant 1.280000e+02 : f32
    %8 = vector.broadcast %cst_6 : f32 to vector<1x32xf32>
    %9 = arith.divf %7, %8 : vector<1x32xf32>
    %10 = vector.broadcast %9 : vector<1x32xf32> to vector<128x32xf32>
    %11 = arith.subf %5, %10 : vector<128x32xf32>
    %12 = arith.mulf %11, %11 : vector<128x32xf32>
    %cst_7 = arith.constant dense<0.000000e+00> : vector<32xf32>
    %13 = vector.multi_reduction <add>, %12, %cst_7 [0] : vector<128x32xf32> to vector<32xf32>
    %14 = vector.shape_cast %13 : vector<32xf32> to vector<1x32xf32>
    %cst_8 = arith.constant 1.280000e+02 : f32
    %15 = vector.broadcast %cst_8 : f32 to vector<1x32xf32>
    %16 = arith.divf %14, %15 : vector<1x32xf32>
    %17 = vector.broadcast %9 : vector<1x32xf32> to vector<128x32xf32>
    %18 = arith.subf %5, %17 : vector<128x32xf32>
    %cst_9 = arith.constant 9.99999974E-6 : f32
    %19 = vector.broadcast %cst_9 : f32 to vector<1x32xf32>
    %20 = arith.addf %16, %19 : vector<1x32xf32>
    %21 = math.rsqrt %20 : vector<1x32xf32>
    %22 = vector.broadcast %21 : vector<1x32xf32> to vector<128x32xf32>
    %23 = arith.mulf %18, %22 : vector<128x32xf32>
    %c0_10 = arith.constant 0 : index
    %c0_11 = arith.constant 0 : index
    %24 = vector.load %arg3[%c0_10, %c0_11] : memref<1x32xf32, #tpu.memory_space<vmem>>, vector<1x32xf32>
    %25 = vector.broadcast %24 : vector<1x32xf32> to vector<128x32xf32>
    %26 = arith.mulf %23, %25 : vector<128x32xf32>
    %c0_12 = arith.constant 0 : index
    %c0_13 = arith.constant 0 : index
    %27 = vector.load %arg4[%c0_12, %c0_13] : memref<1x32xf32, #tpu.memory_space<vmem>>, vector<1x32xf32>
    %28 = vector.broadcast %27 : vector<1x32xf32> to vector<128x32xf32>
    %29 = arith.addf %26, %28 : vector<128x32xf32>
    %cst_14 = arith.constant 0.000000e+00 : f32
    %30 = vector.broadcast %cst_14 : f32 to vector<128x32xf32>
    %31 = arith.maximumf %29, %30 : vector<128x32xf32>
    %c0_15 = arith.constant 0 : index
    %c0_16 = arith.constant 0 : index
    %32 = vector.load %arg5[%c0_15, %c0_16] : memref<128x32xf32, #tpu.memory_space<vmem>>, vector<128x32xf32>
    tpu.vector_store %arg5[%c0_15, %c0_16], %31 {strides = array<i32>} : memref<128x32xf32, #tpu.memory_space<vmem>>, vector<128x32xf32>,
    return
  }
}

module attributes {stable_mosaic.version = 11 : i64} {
  func.func @_mm_bias_kernel(%arg0: i32, %arg1: memref<64x96xbf16, #tpu.memory_space<vmem>>, %arg2: memref<96x32xbf16, #tpu.memory_space<vmem>>, %arg3: memref<1x32xf32, #tpu.memory_space<vmem>>, %arg4: memref<64x32xf32, #tpu.memory_space<vmem>>) attributes {dimension_semantics = [#tpu.dimension_semantics<parallel>], iteration_bounds = array<i64: 2>, scalar_prefetch = 0 : i64, scratch_operands = 0 : i64, tpu.core_type = #tpu.core_type<tc>, window_params = [{transform_indices = @transform_0, window_bounds = array<i64: 64, 96>}, {pipeline_mode = #tpu.pipeline_mode<synchronous>, transform_indices = @transform_1, window_bounds = array<i64: 96, 32>}, {pipeline_mode = #tpu.pipeline_mode<synchronous>, transform_indices = @transform_2, window_bounds = array<i64: 1, 32>}, {transform_indices = @transform_3, window_bounds = array<i64: 64, 32>}]} {
    %c0 = arith.constant 0 : index
    %c0_0 = arith.constant 0 : index
    %0 = vector.load %arg1[%c0, %c0_0] : memref<64x96xbf16, #tpu.memory_space<vmem>>, vector<64x96xbf16>
    %c0_1 = arith.constant 0 : index
    %c0_2 = arith.constant 0 : index
    %1 = vector.load %arg2[%c0_1, %c0_2] : memref<96x32xbf16, #tpu.memory_space<vmem>>, vector<96x32xbf16>
    %cst = arith.constant dense<0.000000e+00> : vector<64x32xf32>
    %2 = tpu.matmul %0, %1, %cst {dimension_numbers = #tpu.dot_dimension_numbers<[1], [0], [0], [1], [0, 0, 1, 1], [], []>} : vector<64x96xbf16>, vector<96x32xbf16>, vector<64x32xf32> -> vector<64x32xf32>
    %c0_3 = arith.constant 0 : index
    %c0_4 = arith.constant 0 : index
    %3 = vector.load %arg3[%c0_3, %c0_4] : memref<1x32xf32, #tpu.memory_space<vmem>>, vector<1x32xf32>
    %4 = vector.broadcast %3 : vector<1x32xf32> to vector<64x32xf32>
    %5 = arith.addf %2, %4 : vector<64x32xf32>
    %c0_5 = arith.constant 0 : index
    %c0_6 = arith.constant 0 : index
    %6 = vector.load %arg4[%c0_5, %c0_6] : memref<64x32xf32, #tpu.memory_space<vmem>>, vector<64x32xf32>
    tpu.vector_store %arg4[%c0_5, %c0_6], %5 {strides = array<i32>} : memref<64x32xf32, #tpu.memory_space<vmem>>, vector<64x32xf32>,
    return
  }
  func.func @transform_0(%arg0: i32) -> (i32, i32) {
    %c0_i32 = arith.constant 0 : i32
    %c0_i32_0 = arith.constant 0 : i32
    return %arg0, %c0_i32 : i32, i32
  }
  func.func @transform_1(%arg0: i32) -> (i32, i32) {
    %c0_i32 = arith.constant 0 : i32
    %c0_i32_0 = arith.constant 0 : i32
    %c0_i32_1 = arith.constant 0 : i32
    return %c0_i32, %c0_i32_0 : i32, i32
  }
  func.func @transform_2(%arg0: i32) -> (i32, i32) {
    %c0_i32 = arith.constant 0 : i32
    %c0_i32_0 = arith.constant 0 : i32
    %c0_i32_1 = arith.constant 0 : i32
    return %c0_i32, %c0_i32_0 : i32, i32
  }
  func.func @transform_3(%arg0: i32) -> (i32, i32) {
    %c0_i32 = arith.constant 0 : i32
    %c0_i32_0 = arith.constant 0 : i32
    return %arg0, %c0_i32 : i32, i32
  }
}

module attributes {stable_mosaic.version = 11 : i64} {
  func.func @_mm_bias_kernel(%arg0: i32, %arg1: memref<64x32xbf16, #tpu.memory_space<vmem>>, %arg2: memref<32x64xbf16, #tpu.memory_space<vmem>>, %arg3: memref<1x64xf32, #tpu.memory_space<vmem>>, %arg4: memref<64x64xf32, #tpu.memory_space<vmem>>) attributes {dimension_semantics = [#tpu.dimension_semantics<parallel>], iteration_bounds = array<i64: 2>, scalar_prefetch = 0 : i64, scratch_operands = 0 : i64, tpu.core_type = #tpu.core_type<tc>, window_params = [{transform_indices = @transform_0, window_bounds = array<i64: 64, 32>}, {pipeline_mode = #tpu.pipeline_mode<synchronous>, transform_indices = @transform_1, window_bounds = array<i64: 32, 64>}, {pipeline_mode = #tpu.pipeline_mode<synchronous>, transform_indices = @transform_2, window_bounds = array<i64: 1, 64>}, {transform_indices = @transform_3, window_bounds = array<i64: 64, 64>}]} {
    %c0 = arith.constant 0 : index
    %c0_0 = arith.constant 0 : index
    %0 = vector.load %arg1[%c0, %c0_0] : memref<64x32xbf16, #tpu.memory_space<vmem>>, vector<64x32xbf16>
    %c0_1 = arith.constant 0 : index
    %c0_2 = arith.constant 0 : index
    %1 = vector.load %arg2[%c0_1, %c0_2] : memref<32x64xbf16, #tpu.memory_space<vmem>>, vector<32x64xbf16>
    %cst = arith.constant dense<0.000000e+00> : vector<64x64xf32>
    %2 = tpu.matmul %0, %1, %cst {dimension_numbers = #tpu.dot_dimension_numbers<[1], [0], [0], [1], [0, 0, 1, 1], [], []>} : vector<64x32xbf16>, vector<32x64xbf16>, vector<64x64xf32> -> vector<64x64xf32>
    %c0_3 = arith.constant 0 : index
    %c0_4 = arith.constant 0 : index
    %3 = vector.load %arg3[%c0_3, %c0_4] : memref<1x64xf32, #tpu.memory_space<vmem>>, vector<1x64xf32>
    %4 = vector.broadcast %3 : vector<1x64xf32> to vector<64x64xf32>
    %5 = arith.addf %2, %4 : vector<64x64xf32>
    %c0_5 = arith.constant 0 : index
    %c0_6 = arith.constant 0 : index
    %6 = vector.load %arg4[%c0_5, %c0_6] : memref<64x64xf32, #tpu.memory_space<vmem>>, vector<64x64xf32>
    tpu.vector_store %arg4[%c0_5, %c0_6], %5 {strides = array<i32>} : memref<64x64xf32, #tpu.memory_space<vmem>>, vector<64x64xf32>,
    return
  }
  func.func @transform_0(%arg0: i32) -> (i32, i32) {
    %c0_i32 = arith.constant 0 : i32
    %c0_i32_0 = arith.constant 0 : i32
    return %arg0, %c0_i32 : i32, i32
  }
  func.func @transform_1(%arg0: i32) -> (i32, i32) {
    %c0_i32 = arith.constant 0 : i32
    %c0_i32_0 = arith.constant 0 : i32
    %c0_i32_1 = arith.constant 0 : i32
    return %c0_i32, %c0_i32_0 : i32, i32
  }
  func.func @transform_2(%arg0: i32) -> (i32, i32) {
    %c0_i32 = arith.constant 0 : i32
    %c0_i32_0 = arith.constant 0 : i32
    %c0_i32_1 = arith.constant 0 : i32
    return %c0_i32, %c0_i32_0 : i32, i32
  }
  func.func @transform_3(%arg0: i32) -> (i32, i32) {
    %c0_i32 = arith.constant 0 : i32
    %c0_i32_0 = arith.constant 0 : i32
    return %arg0, %c0_i32 : i32, i32
  }
}

module attributes {stable_mosaic.version = 11 : i64} {
  func.func @_encoder_layer_kernel(%arg0: i32, %arg1: memref<1x16x32xf32, #tpu.memory_space<vmem>>, %arg2: memref<1x1x16xf32, #tpu.memory_space<vmem>>, %arg3: memref<32x96xbf16, #tpu.memory_space<vmem>>, %arg4: memref<1x96xf32, #tpu.memory_space<vmem>>, %arg5: memref<32x32xbf16, #tpu.memory_space<vmem>>, %arg6: memref<1x32xf32, #tpu.memory_space<vmem>>, %arg7: memref<1x32xf32, #tpu.memory_space<vmem>>, %arg8: memref<1x32xf32, #tpu.memory_space<vmem>>, %arg9: memref<32x64xbf16, #tpu.memory_space<vmem>>, %arg10: memref<1x64xf32, #tpu.memory_space<vmem>>, %arg11: memref<64x32xbf16, #tpu.memory_space<vmem>>, %arg12: memref<1x32xf32, #tpu.memory_space<vmem>>, %arg13: memref<1x32xf32, #tpu.memory_space<vmem>>, %arg14: memref<1x32xf32, #tpu.memory_space<vmem>>, %arg15: memref<1x16x32xf32, #tpu.memory_space<vmem>>) attributes {dimension_semantics = [#tpu.dimension_semantics<parallel>], iteration_bounds = array<i64: 8>, scalar_prefetch = 0 : i64, scratch_operands = 0 : i64, tpu.core_type = #tpu.core_type<tc>, window_params = [{transform_indices = @transform_0, window_bounds = array<i64: 1, 16, 32>}, {transform_indices = @transform_1, window_bounds = array<i64: 1, 1, 16>}, {pipeline_mode = #tpu.pipeline_mode<synchronous>, transform_indices = @transform_2, window_bounds = array<i64: 32, 96>}, {pipeline_mode = #tpu.pipeline_mode<synchronous>, transform_indices = @transform_3, window_bounds = array<i64: 1, 96>}, {pipeline_mode = #tpu.pipeline_mode<synchronous>, transform_indices = @transform_4, window_bounds = array<i64: 32, 32>}, {pipeline_mode = #tpu.pipeline_mode<synchronous>, transform_indices = @transform_5, window_bounds = array<i64: 1, 32>}, {pipeline_mode = #tpu.pipeline_mode<synchronous>, transform_indices = @transform_6, window_bounds = array<i64: 1, 32>}, {pipeline_mode = #tpu.pipeline_mode<synchronous>, transform_indices = @transform_7, window_bounds = array<i64: 1, 32>}, {pipeline_mode = #tpu.pipeline_mode<synchronous>, transform_indices = @transform_8, window_bounds = array<i64: 32, 64>}, {pipeline_mode = #tpu.pipeline_mode<synchronous>, transform_indices = @transform_9, window_bounds = array<i64: 1, 64>}, {pipeline_mode = #tpu.pipeline_mode<synchronous>, transform_indices = @transform_10, window_bounds = array<i64: 64, 32>}, {pipeline_mode = #tpu.pipeline_mode<synchronous>, transform_indices = @transform_11, window_bounds = array<i64: 1, 32>}, {pipeline_mode = #tpu.pipeline_mode<synchronous>, transform_indices = @transform_12, window_bounds = array<i64: 1, 32>}, {pipeline_mode = #tpu.pipeline_mode<synchronous>, transform_indices = @transform_13, window_bounds = array<i64: 1, 32>}, {transform_indices = @transform_14, window_bounds = array<i64: 1, 16, 32>}]} {
    %c0 = arith.constant 0 : index
    %c0_0 = arith.constant 0 : index
    %c0_1 = arith.constant 0 : index
    %0 = vector.load %arg1[%c0, %c0_0, %c0_1] : memref<1x16x32xf32, #tpu.memory_space<vmem>>, vector<1x16x32xf32>
    %1 = vector.shape_cast %0 : vector<1x16x32xf32> to vector<16x32xf32>
    %2 = arith.truncf %1 : vector<16x32xf32> to vector<16x32xbf16>
    %c0_2 = arith.constant 0 : index
    %c0_3 = arith.constant 0 : index
    %3 = vector.load %arg3[%c0_2, %c0_3] : memref<32x96xbf16, #tpu.memory_space<vmem>>, vector<32x96xbf16>
    %cst = arith.constant dense<0.000000e+00> : vector<16x96xf32>
    %4 = tpu.matmul %2, %3, %cst {dimension_numbers = #tpu.dot_dimension_numbers<[1], [0], [0], [1], [0, 0, 1, 1], [], []>} : vector<16x32xbf16>, vector<32x96xbf16>, vector<16x96xf32> -> vector<16x96xf32>
    %c0_4 = arith.constant 0 : index
    %c0_5 = arith.constant 0 : index
    %5 = vector.load %arg4[%c0_4, %c0_5] : memref<1x96xf32, #tpu.memory_space<vmem>>, vector<1x96xf32>
    %6 = vector.broadcast %5 : vector<1x96xf32> to vector<16x96xf32>
    %7 = arith.addf %4, %6 : vector<16x96xf32>
    %8 = vector.extract_strided_slice %7 {offsets = [0, 0], sizes = [16, 8], strides = [1, 1]} : vector<16x96xf32> to vector<16x8xf32>
    %9 = vector.extract_strided_slice %7 {offsets = [0, 8], sizes = [16, 8], strides = [1, 1]} : vector<16x96xf32> to vector<16x8xf32>
    %10 = vector.extract_strided_slice %7 {offsets = [0, 16], sizes = [16, 8], strides = [1, 1]} : vector<16x96xf32> to vector<16x8xf32>
    %11 = vector.extract_strided_slice %7 {offsets = [0, 24], sizes = [16, 8], strides = [1, 1]} : vector<16x96xf32> to vector<16x8xf32>
    %12 = vector.shape_cast %8 : vector<16x8xf32> to vector<1x16x8xf32>
    %13 = vector.shape_cast %9 : vector<16x8xf32> to vector<1x16x8xf32>
    %14 = vector.shape_cast %10 : vector<16x8xf32> to vector<1x16x8xf32>
    %15 = vector.shape_cast %11 : vector<16x8xf32> to vector<1x16x8xf32>
    %16 = tpu.concatenate %12, %13, %14, %15 in 0 : vector<1x16x8xf32>, vector<1x16x8xf32>, vector<1x16x8xf32>, vector<1x16x8xf32> -> vector<4x16x8xf32>
    %17 = vector.extract_strided_slice %7 {offsets = [0, 32], sizes = [16, 8], strides = [1, 1]} : vector<16x96xf32> to vector<16x8xf32>
    %18 = vector.extract_strided_slice %7 {offsets = [0, 40], sizes = [16, 8], strides = [1, 1]} : vector<16x96xf32> to vector<16x8xf32>
    %19 = vector.extract_strided_slice %7 {offsets = [0, 48], sizes = [16, 8], strides = [1, 1]} : vector<16x96xf32> to vector<16x8xf32>
    %20 = vector.extract_strided_slice %7 {offsets = [0, 56], sizes = [16, 8], strides = [1, 1]} : vector<16x96xf32> to vector<16x8xf32>
    %21 = vector.shape_cast %17 : vector<16x8xf32> to vector<1x16x8xf32>
    %22 = vector.shape_cast %18 : vector<16x8xf32> to vector<1x16x8xf32>
    %23 = vector.shape_cast %19 : vector<16x8xf32> to vector<1x16x8xf32>
    %24 = vector.shape_cast %20 : vector<16x8xf32> to vector<1x16x8xf32>
    %25 = tpu.concatenate %21, %22, %23, %24 in 0 : vector<1x16x8xf32>, vector<1x16x8xf32>, vector<1x16x8xf32>, vector<1x16x8xf32> -> vector<4x16x8xf32>
    %26 = vector.extract_strided_slice %7 {offsets = [0, 64], sizes = [16, 8], strides = [1, 1]} : vector<16x96xf32> to vector<16x8xf32>
    %27 = vector.extract_strided_slice %7 {offsets = [0, 72], sizes = [16, 8], strides = [1, 1]} : vector<16x96xf32> to vector<16x8xf32>
    %28 = vector.extract_strided_slice %7 {offsets = [0, 80], sizes = [16, 8], strides = [1, 1]} : vector<16x96xf32> to vector<16x8xf32>
    %29 = vector.extract_strided_slice %7 {offsets = [0, 88], sizes = [16, 8], strides = [1, 1]} : vector<16x96xf32> to vector<16x8xf32>
    %30 = vector.shape_cast %26 : vector<16x8xf32> to vector<1x16x8xf32>
    %31 = vector.shape_cast %27 : vector<16x8xf32> to vector<1x16x8xf32>
    %32 = vector.shape_cast %28 : vector<16x8xf32> to vector<1x16x8xf32>
    %33 = vector.shape_cast %29 : vector<16x8xf32> to vector<1x16x8xf32>
    %34 = tpu.concatenate %30, %31, %32, %33 in 0 : vector<1x16x8xf32>, vector<1x16x8xf32>, vector<1x16x8xf32>, vector<1x16x8xf32> -> vector<4x16x8xf32>
    %35 = arith.truncf %16 : vector<4x16x8xf32> to vector<4x16x8xbf16>
    %36 = arith.truncf %25 : vector<4x16x8xf32> to vector<4x16x8xbf16>
    %cst_6 = arith.constant dense<0.000000e+00> : vector<4x16x16xf32>
    %37 = tpu.matmul %35, %36, %cst_6 {dimension_numbers = #tpu.dot_dimension_numbers<[2], [2], [1], [1], [0, 0, 0, 1, 1, 1], [0], [0]>} : vector<4x16x8xbf16>, vector<4x16x8xbf16>, vector<4x16x16xf32> -> vector<4x16x16xf32>
    %cst_7 = arith.constant 0.353553385 : f32
    %38 = vector.broadcast %cst_7 : f32 to vector<4x16x16xf32>
    %39 = arith.mulf %37, %38 : vector<4x16x16xf32>
    %c0_8 = arith.constant 0 : index
    %c0_9 = arith.constant 0 : index
    %c0_10 = arith.constant 0 : index
    %40 = vector.load %arg2[%c0_8, %c0_9, %c0_10] : memref<1x1x16xf32, #tpu.memory_space<vmem>>, vector<1x1x16xf32>
    %41 = vector.broadcast %40 : vector<1x1x16xf32> to vector<4x16x16xf32>
    %42 = arith.addf %39, %41 : vector<4x16x16xf32>
    %cst_11 = arith.constant dense<0xFF800000> : vector<4x16xf32>
    %43 = vector.multi_reduction <maximumf>, %42, %cst_11 [2] : vector<4x16x16xf32> to vector<4x16xf32>
    %44 = vector.shape_cast %43 : vector<4x16xf32> to vector<4x16x1xf32>
    %45 = vector.broadcast %44 : vector<4x16x1xf32> to vector<4x16x16xf32>
    %46 = arith.subf %42, %45 : vector<4x16x16xf32>
    %47 = math.exp %46 : vector<4x16x16xf32>
    %cst_12 = arith.constant dense<0.000000e+00> : vector<4x16xf32>
    %48 = vector.multi_reduction <add>, %47, %cst_12 [2] : vector<4x16x16xf32> to vector<4x16xf32>
    %49 = vector.shape_cast %48 : vector<4x16xf32> to vector<4x16x1xf32>
    %50 = tpu.reciprocal %49 {approx = true} : vector<4x16x1xf32> -> vector<4x16x1xf32>
    %51 = vector.broadcast %50 : vector<4x16x1xf32> to vector<4x16x16xf32>
    %52 = arith.mulf %47, %51 : vector<4x16x16xf32>
    %53 = arith.truncf %52 : vector<4x16x16xf32> to vector<4x16x16xbf16>
    %54 = arith.truncf %34 : vector<4x16x8xf32> to vector<4x16x8xbf16>
    %cst_13 = arith.constant dense<0.000000e+00> : vector<4x16x8xf32>
    %55 = tpu.matmul %53, %54, %cst_13 {dimension_numbers = #tpu.dot_dimension_numbers<[2], [1], [1], [2], [0, 0, 0, 1, 1, 2], [0], [0]>} : vector<4x16x16xbf16>, vector<4x16x8xbf16>, vector<4x16x8xf32> -> vector<4x16x8xf32>
    %56 = vector.extract_strided_slice %55 {offsets = [0, 0, 0], sizes = [1, 16, 8], strides = [1, 1, 1]} : vector<4x16x8xf32> to vector<1x16x8xf32>
    %57 = vector.shape_cast %56 : vector<1x16x8xf32> to vector<16x8xf32>
    %58 = vector.extract_strided_slice %55 {offsets = [1, 0, 0], sizes = [1, 16, 8], strides = [1, 1, 1]} : vector<4x16x8xf32> to vector<1x16x8xf32>
    %59 = vector.shape_cast %58 : vector<1x16x8xf32> to vector<16x8xf32>
    %60 = vector.extract_strided_slice %55 {offsets = [2, 0, 0], sizes = [1, 16, 8], strides = [1, 1, 1]} : vector<4x16x8xf32> to vector<1x16x8xf32>
    %61 = vector.shape_cast %60 : vector<1x16x8xf32> to vector<16x8xf32>
    %62 = vector.extract_strided_slice %55 {offsets = [3, 0, 0], sizes = [1, 16, 8], strides = [1, 1, 1]} : vector<4x16x8xf32> to vector<1x16x8xf32>
    %63 = vector.shape_cast %62 : vector<1x16x8xf32> to vector<16x8xf32>
    %64 = tpu.concatenate %57, %59, %61, %63 in 1 : vector<16x8xf32>, vector<16x8xf32>, vector<16x8xf32>, vector<16x8xf32> -> vector<16x32xf32>
    %65 = arith.truncf %64 : vector<16x32xf32> to vector<16x32xbf16>
    %c0_14 = arith.constant 0 : index
    %c0_15 = arith.constant 0 : index
    %66 = vector.load %arg5[%c0_14, %c0_15] : memref<32x32xbf16, #tpu.memory_space<vmem>>, vector<32x32xbf16>
    %cst_16 = arith.constant dense<0.000000e+00> : vector<16x32xf32>
    %67 = tpu.matmul %65, %66, %cst_16 {dimension_numbers = #tpu.dot_dimension_numbers<[1], [0], [0], [1], [0, 0, 1, 1], [], []>} : vector<16x32xbf16>, vector<32x32xbf16>, vector<16x32xf32> -> vector<16x32xf32>
    %c0_17 = arith.constant 0 : index
    %c0_18 = arith.constant 0 : index
    %68 = vector.load %arg6[%c0_17, %c0_18] : memref<1x32xf32, #tpu.memory_space<vmem>>, vector<1x32xf32>
    %69 = vector.broadcast %68 : vector<1x32xf32> to vector<16x32xf32>
    %70 = arith.addf %67, %69 : vector<16x32xf32>
    %71 = arith.addf %1, %70 : vector<16x32xf32>
    %c0_19 = arith.constant 0 : index
    %c0_20 = arith.constant 0 : index
    %72 = vector.load %arg7[%c0_19, %c0_20] : memref<1x32xf32, #tpu.memory_space<vmem>>, vector<1x32xf32>
    %c0_21 = arith.constant 0 : index
    %c0_22 = arith.constant 0 : index
    %73 = vector.load %arg8[%c0_21, %c0_22] : memref<1x32xf32, #tpu.memory_space<vmem>>, vector<1x32xf32>
    %cst_23 = arith.constant dense<0.000000e+00> : vector<16xf32>
    %74 = vector.multi_reduction <add>, %71, %cst_23 [1] : vector<16x32xf32> to vector<16xf32>
    %75 = vector.shape_cast %74 : vector<16xf32> to vector<16x1xf32>
    %cst_24 = arith.constant 3.200000e+01 : f32
    %76 = vector.broadcast %cst_24 : f32 to vector<16x1xf32>
    %77 = arith.divf %75, %76 : vector<16x1xf32>
    %78 = vector.broadcast %77 : vector<16x1xf32> to vector<16x32xf32>
    %79 = arith.subf %71, %78 : vector<16x32xf32>
    %80 = arith.mulf %79, %79 : vector<16x32xf32>
    %cst_25 = arith.constant dense<0.000000e+00> : vector<16xf32>
    %81 = vector.multi_reduction <add>, %80, %cst_25 [1] : vector<16x32xf32> to vector<16xf32>
    %82 = vector.shape_cast %81 : vector<16xf32> to vector<16x1xf32>
    %cst_26 = arith.constant 3.200000e+01 : f32
    %83 = vector.broadcast %cst_26 : f32 to vector<16x1xf32>
    %84 = arith.divf %82, %83 : vector<16x1xf32>
    %85 = vector.broadcast %77 : vector<16x1xf32> to vector<16x32xf32>
    %86 = arith.subf %71, %85 : vector<16x32xf32>
    %cst_27 = arith.constant 9.99999974E-6 : f32
    %87 = vector.broadcast %cst_27 : f32 to vector<16x1xf32>
    %88 = arith.addf %84, %87 : vector<16x1xf32>
    %89 = math.rsqrt %88 : vector<16x1xf32>
    %90 = vector.broadcast %89 : vector<16x1xf32> to vector<16x32xf32>
    %91 = arith.mulf %86, %90 : vector<16x32xf32>
    %92 = vector.broadcast %72 : vector<1x32xf32> to vector<16x32xf32>
    %93 = arith.mulf %91, %92 : vector<16x32xf32>
    %94 = vector.broadcast %73 : vector<1x32xf32> to vector<16x32xf32>
    %95 = arith.addf %93, %94 : vector<16x32xf32>
    %96 = arith.truncf %95 : vector<16x32xf32> to vector<16x32xbf16>
    %c0_28 = arith.constant 0 : index
    %c0_29 = arith.constant 0 : index
    %97 = vector.load %arg9[%c0_28, %c0_29] : memref<32x64xbf16, #tpu.memory_space<vmem>>, vector<32x64xbf16>
    %cst_30 = arith.constant dense<0.000000e+00> : vector<16x64xf32>
    %98 = tpu.matmul %96, %97, %cst_30 {dimension_numbers = #tpu.dot_dimension_numbers<[1], [0], [0], [1], [0, 0, 1, 1], [], []>} : vector<16x32xbf16>, vector<32x64xbf16>, vector<16x64xf32> -> vector<16x64xf32>
    %c0_31 = arith.constant 0 : index
    %c0_32 = arith.constant 0 : index
    %99 = vector.load %arg10[%c0_31, %c0_32] : memref<1x64xf32, #tpu.memory_space<vmem>>, vector<1x64xf32>
    %100 = vector.broadcast %99 : vector<1x64xf32> to vector<16x64xf32>
    %101 = arith.addf %98, %100 : vector<16x64xf32>
    %cst_33 = arith.constant 0.000000e+00 : f32
    %102 = vector.broadcast %cst_33 : f32 to vector<16x64xf32>
    %103 = arith.maximumf %101, %102 : vector<16x64xf32>
    %104 = arith.truncf %103 : vector<16x64xf32> to vector<16x64xbf16>
    %c0_34 = arith.constant 0 : index
    %c0_35 = arith.constant 0 : index
    %105 = vector.load %arg11[%c0_34, %c0_35] : memref<64x32xbf16, #tpu.memory_space<vmem>>, vector<64x32xbf16>
    %cst_36 = arith.constant dense<0.000000e+00> : vector<16x32xf32>
    %106 = tpu.matmul %104, %105, %cst_36 {dimension_numbers = #tpu.dot_dimension_numbers<[1], [0], [0], [1], [0, 0, 1, 1], [], []>} : vector<16x64xbf16>, vector<64x32xbf16>, vector<16x32xf32> -> vector<16x32xf32>
    %c0_37 = arith.constant 0 : index
    %c0_38 = arith.constant 0 : index
    %107 = vector.load %arg12[%c0_37, %c0_38] : memref<1x32xf32, #tpu.memory_space<vmem>>, vector<1x32xf32>
    %108 = vector.broadcast %107 : vector<1x32xf32> to vector<16x32xf32>
    %109 = arith.addf %106, %108 : vector<16x32xf32>
    %110 = arith.addf %95, %109 : vector<16x32xf32>
    %c0_39 = arith.constant 0 : index
    %c0_40 = arith.constant 0 : index
    %111 = vector.load %arg13[%c0_39, %c0_40] : memref<1x32xf32, #tpu.memory_space<vmem>>, vector<1x32xf32>
    %c0_41 = arith.constant 0 : index
    %c0_42 = arith.constant 0 : index
    %112 = vector.load %arg14[%c0_41, %c0_42] : memref<1x32xf32, #tpu.memory_space<vmem>>, vector<1x32xf32>
    %cst_43 = arith.constant dense<0.000000e+00> : vector<16xf32>
    %113 = vector.multi_reduction <add>, %110, %cst_43 [1] : vector<16x32xf32> to vector<16xf32>
    %114 = vector.shape_cast %113 : vector<16xf32> to vector<16x1xf32>
    %cst_44 = arith.constant 3.200000e+01 : f32
    %115 = vector.broadcast %cst_44 : f32 to vector<16x1xf32>
    %116 = arith.divf %114, %115 : vector<16x1xf32>
    %117 = vector.broadcast %116 : vector<16x1xf32> to vector<16x32xf32>
    %118 = arith.subf %110, %117 : vector<16x32xf32>
    %119 = arith.mulf %118, %118 : vector<16x32xf32>
    %cst_45 = arith.constant dense<0.000000e+00> : vector<16xf32>
    %120 = vector.multi_reduction <add>, %119, %cst_45 [1] : vector<16x32xf32> to vector<16xf32>
    %121 = vector.shape_cast %120 : vector<16xf32> to vector<16x1xf32>
    %cst_46 = arith.constant 3.200000e+01 : f32
    %122 = vector.broadcast %cst_46 : f32 to vector<16x1xf32>
    %123 = arith.divf %121, %122 : vector<16x1xf32>
    %124 = vector.broadcast %116 : vector<16x1xf32> to vector<16x32xf32>
    %125 = arith.subf %110, %124 : vector<16x32xf32>
    %cst_47 = arith.constant 9.99999974E-6 : f32
    %126 = vector.broadcast %cst_47 : f32 to vector<16x1xf32>
    %127 = arith.addf %123, %126 : vector<16x1xf32>
    %128 = math.rsqrt %127 : vector<16x1xf32>
    %129 = vector.broadcast %128 : vector<16x1xf32> to vector<16x32xf32>
    %130 = arith.mulf %125, %129 : vector<16x32xf32>
    %131 = vector.broadcast %111 : vector<1x32xf32> to vector<16x32xf32>
    %132 = arith.mulf %130, %131 : vector<16x32xf32>
    %133 = vector.broadcast %112 : vector<1x32xf32> to vector<16x32xf32>
    %134 = arith.addf %132, %133 : vector<16x32xf32>
    %c0_48 = arith.constant 0 : index
    %c0_49 = arith.constant 0 : index
    %c0_50 = arith.constant 0 : index
    %135 = vector.load %arg15[%c0_48, %c0_49, %c0_50] : memref<1x16x32xf32, #tpu.memory_space<vmem>>, vector<1x16x32xf32>
    %136 = vector.shape_cast %135 : vector<1x16x32xf32> to vector<16x32xf32>
    %137 = vector.shape_cast %134 : vector<16x32xf32> to vector<1x16x32xf32>
    tpu.vector_store %arg15[%c0_48, %c0_49, %c0_50], %137 {strides = array<i32>} : memref<1x16x32xf32, #tpu.memory_space<vmem>>, vector<1x16x32xf32>,
    return
  }
  func.func @transform_0(%arg0: i32) -> (i32, i32, i32) {
    %c0_i32 = arith.constant 0 : i32
    %c0_i32_0 = arith.constant 0 : i32
    %c0_i32_1 = arith.constant 0 : i32
    return %arg0, %c0_i32, %c0_i32_0 : i32, i32, i32
  }
  func.func @transform_1(%arg0: i32) -> (i32, i32, i32) {
    %c0_i32 = arith.constant 0 : i32
    %c0_i32_0 = arith.constant 0 : i32
    %c0_i32_1 = arith.constant 0 : i32
    return %arg0, %c0_i32, %c0_i32_0 : i32, i32, i32
  }
  func.func @transform_2(%arg0: i32) -> (i32, i32) {
    %c0_i32 = arith.constant 0 : i32
    %c0_i32_0 = arith.constant 0 : i32
    %c0_i32_1 = arith.constant 0 : i32
    return %c0_i32, %c0_i32_0 : i32, i32
  }
  func.func @transform_3(%arg0: i32) -> (i32, i32) {
    %c0_i32 = arith.constant 0 : i32
    %c0_i32_0 = arith.constant 0 : i32
    %c0_i32_1 = arith.constant 0 : i32
    return %c0_i32, %c0_i32_0 : i32, i32
  }
  func.func @transform_4(%arg0: i32) -> (i32, i32) {
    %c0_i32 = arith.constant 0 : i32
    %c0_i32_0 = arith.constant 0 : i32
    %c0_i32_1 = arith.constant 0 : i32
    return %c0_i32, %c0_i32_0 : i32, i32
  }
  func.func @transform_5(%arg0: i32) -> (i32, i32) {
    %c0_i32 = arith.constant 0 : i32
    %c0_i32_0 = arith.constant 0 : i32
    %c0_i32_1 = arith.constant 0 : i32
    return %c0_i32, %c0_i32_0 : i32, i32
  }
  func.func @transform_6(%arg0: i32) -> (i32, i32) {
    %c0_i32 = arith.constant 0 : i32
    %c0_i32_0 = arith.constant 0 : i32
    %c0_i32_1 = arith.constant 0 : i32
    return %c0_i32, %c0_i32_0 : i32, i32
  }
  func.func @transform_7(%arg0: i32) -> (i32, i32) {
    %c0_i32 = arith.constant 0 : i32
    %c0_i32_0 = arith.constant 0 : i32
    %c0_i32_1 = arith.constant 0 : i32
    return %c0_i32, %c0_i32_0 : i32, i32
  }
  func.func @transform_8(%arg0: i32) -> (i32, i32) {
    %c0_i32 = arith.constant 0 : i32
    %c0_i32_0 = arith.constant 0 : i32
    %c0_i32_1 = arith.constant 0 : i32
    return %c0_i32, %c0_i32_0 : i32, i32
  }
  func.func @transform_9(%arg0: i32) -> (i32, i32) {
    %c0_i32 = arith.constant 0 : i32
    %c0_i32_0 = arith.constant 0 : i32
    %c0_i32_1 = arith.constant 0 : i32
    return %c0_i32, %c0_i32_0 : i32, i32
  }
  func.func @transform_10(%arg0: i32) -> (i32, i32) {
    %c0_i32 = arith.constant 0 : i32
    %c0_i32_0 = arith.constant 0 : i32
    %c0_i32_1 = arith.constant 0 : i32
    return %c0_i32, %c0_i32_0 : i32, i32
  }
  func.func @transform_11(%arg0: i32) -> (i32, i32) {
    %c0_i32 = arith.constant 0 : i32
    %c0_i32_0 = arith.constant 0 : i32
    %c0_i32_1 = arith.constant 0 : i32
    return %c0_i32, %c0_i32_0 : i32, i32
  }
  func.func @transform_12(%arg0: i32) -> (i32, i32) {
    %c0_i32 = arith.constant 0 : i32
    %c0_i32_0 = arith.constant 0 : i32
    %c0_i32_1 = arith.constant 0 : i32
    return %c0_i32, %c0_i32_0 : i32, i32
  }
  func.func @transform_13(%arg0: i32) -> (i32, i32) {
    %c0_i32 = arith.constant 0 : i32
    %c0_i32_0 = arith.constant 0 : i32
    %c0_i32_1 = arith.constant 0 : i32
    return %c0_i32, %c0_i32_0 : i32, i32
  }
  func.func @transform_14(%arg0: i32) -> (i32, i32, i32) {
    %c0_i32 = arith.constant 0 : i32
    %c0_i32_0 = arith.constant 0 : i32
    %c0_i32_1 = arith.constant 0 : i32
    return %arg0, %c0_i32, %c0_i32_0 : i32, i32, i32
  }
}

</mosaic_0001>

<bundles_post_ra>
// kernel: ecgbert_forward.8
= control target key start
LH: loop header
LB: loop body
LE: loop exit
PB: predicated region body
PF: predicated region fallthrough
CT: control target
= control target key end

     0   :  { %vm67_vm0 = vcmask 1042432   ;;  %vm68_vm1 = vcmask 1043456   ;;  %v270_v1 = vmov 65535   ;;  %vm54_vm2 = vcmask 56320   ;;  %s374_s1 = inlined_call_operand.vmem [shape: bf16[7,32], index: 1, kind: input, shape index: {}]   ;;  %s375_s0 = inlined_call_operand.vmem [shape: bf16[64,7], index: 0, kind: input, shape index: {}]   ;;  %s376_s2 = inlined_call_operand.vmem [shape: f32[1,32], index: 2, kind: input, shape index: {}]   ;;  %s377_s3 = inlined_call_operand.vmem [shape: f32[1,32], index: 3, kind: input, shape index: {}]   ;;  %s378_s4 = inlined_call_operand.vmem [shape: f32[1,32], index: 4, kind: input, shape index: {}]   ;;  %s379_s5 = inlined_call_operand.vmem [shape: f32[64,32], index: 5, kind: output, shape index: {}]  }
   0x1   :  { %v29_v0 = vld [vmem:[%s374_s1] sm:$0xf]  ;;  %v69_v2 = vsel %vm67_vm0, 4294967295, %v270_v1  ;;  %v255_v6 = vld [vmem:[%s375_s0 + $0x8] sm:$0xff]  ;;  %v256_v7 = vld [vmem:[%s375_s0 + $0x10] sm:$0xff]  ;;  %vm103_vm3 = vcmask 261120  }
   0x2   :  { %v70_v3 = vsel %vm68_vm1, %v69_v2, 0  ;;  %v254_v5 = vld [vmem:[%s375_s0] sm:$0xff]  ;;  %v257_v8 = vld [vmem:[%s375_s0 + $0x18] sm:$0xff]  ;;  %v271_v19 = vmov 64.0  }
   0x3   :  { %v72_v4 = vand.u32 %v70_v3, %v29_v0  ;;  %v263_v11 = vld [vmem:[%s376_s2] ss:$0 sm:$0xff]  ;;  %266 = vrcp.f32 %v271_v19 }
   0x5   :  { %81 = vmatpush.bf16.msra.mxu0 %v72_v4  ;;  %258 = vmatpush.bf16.msra.mxu1 %v72_v4 }
   0x6   :  { %259 = vmatpush.bf16.msra.mxu2 %v72_v4  ;;  %260 = vmatpush.bf16.msra.mxu3 %v72_v4 }
   0x8   :  { %250 = vmatmul.msk.bf16.vlgmr.msra.gmra.mxu0 %vm54_vm2, %v254_v5  ;;  %251 = vmatmul.msk.bf16.vlgmr.msra.gmra.mxu1 %vm54_vm2, %v255_v6 }
   0x9   :  { %252 = vmatmul.msk.bf16.vlgmr.msra.gmra.mxu2 %vm54_vm2, %v256_v7  ;;  %253 = vmatmul.msk.bf16.vlgmr.msra.gmra.mxu3 %vm54_vm2, %v257_v8  ;;  %v267_v29 = vpop.eup %266 }
   0xa   :  { %v126_v38 = vmul.f32 64.0, %v267_v29  ;;  %vm130_vm4 = vweird.f32 %v267_v29 }
   0xc   :  { %v127_v43 = vsub.f32 1.0, %v126_v38 }
   0xe   :  { %v128_v46 = vmul.f32 %v267_v29, %v127_v43 }
  0x10   :  { %v129_v49 = vadd.f32 %v267_v29, %v128_v46 }
  0x12   :  { %v131_v52 = vsel %vm130_vm4, %v267_v29, %v129_v49 }
  0x85   :  { %v83_v9 = vpop.f32.mrf.mxu0  ;;  %v88_v10 = vpop.f32.mrf.mxu1 }
  0x86   :  { %v84_v12 = vadd.f32 %v263_v11, %v83_v9  ;;  %v89_v17 = vadd.f32 %v263_v11, %v88_v10 }
  0x88   :  { %v104_v20 = vsel %vm103_vm3, %v84_v12, 0.0  ;;  %v107_v24 = vsel %vm103_vm3, %v89_v17, 0.0 }
  0x8c   :  { %v93_v13 = vpop.f32.mrf.mxu2  ;;  %v98_v14 = vpop.f32.mrf.mxu3 }
  0x8d   :  { %v85_v15 = vpop.f32.mrf.mxu0  ;;  %v90_v16 = vpop.f32.mrf.mxu1  ;;  %v94_v25 = vadd.f32 %v263_v11, %v93_v13  ;;  %v99_v34 = vadd.f32 %v263_v11, %v98_v14 }
  0x8e   :  { %v86_v18 = vadd.f32 %v263_v11, %v85_v15  ;;  %v91_v22 = vadd.f32 %v263_v11, %v90_v16 }
  0x8f   :  { %v111_v33 = vsel %vm103_vm3, %v94_v25, 0.0  ;;  %v115_v40 = vsel %vm103_vm3, %v99_v34, 0.0 }
  0x90   :  { %v105_v21 = vsel %vm103_vm3, %v86_v18, 0.0  ;;  %v109_v27 = vsel %vm103_vm3, %v91_v22, 0.0 }
  0x91   :  { %v106_v23 = vadd.f32 %v105_v21, %v104_v20 }
  0x93   :  { %v108_v26 = vadd.f32 %v107_v24, %v106_v23 }
  0x94   :  { %v95_v28 = vpop.f32.mrf.mxu2  ;;  %v100_v32 = vpop.f32.mrf.mxu3 }
  0x95   :  { %v110_v30 = vadd.f32 %v109_v27, %v108_v26  ;;  %v96_v31 = vadd.f32 %v263_v11, %v95_v28  ;;  %v101_v37 = vadd.f32 %v263_v11, %v100_v32 }
  0x97   :  { %v112_v35 = vadd.f32 %v111_v33, %v110_v30  ;;  %v113_v36 = vsel %vm103_vm3, %v96_v31, 0.0  ;;  %v117_v42 = vsel %vm103_vm3, %v101_v37, 0.0 }
  0x99   :  { %v114_v39 = vadd.f32 %v113_v36, %v112_v35  ;;  %v264_v36 = vld [vmem:[%s377_s3] ss:$0 sm:$0xff] }
  0x9b   :  { %v116_v41 = vadd.f32 %v115_v40, %v114_v39 }
  0x9d   :  { %v118_v44 = vadd.f32 %v117_v42, %v116_v41  ;;  %v265_v42 = vld [vmem:[%s378_s4] ss:$0 sm:$0xff] }
  0x9f   :  { %v119_v45 = vrot.slane %v118_v44, 4 }
  0xa1   :  { %v120_v47 = vadd.f32 %v119_v45, %v118_v44 }
  0xa3   :  { %v121_v48 = vrot.slane %v120_v47, 2 }
  0xa5   :  { %v122_v50 = vadd.f32 %v121_v48, %v120_v47 }
  0xa7   :  { %v123_v51 = vrot.slane %v122_v50, 1 }
  0xa9   :  { %v124_v53 = vadd.f32 %v123_v51, %v122_v50 }
  0xab   :  { %v132_v54 = vmul.f32 %v131_v52, %v124_v53 }
  0xad   :  { %v133_v55 = vsub.f32 %v84_v12, %v132_v54  ;;  %v134_v56 = vsub.f32 %v86_v18, %v132_v54  ;;  %v135_v57 = vsub.f32 %v89_v17, %v132_v54  ;;  %v136_v58 = vsub.f32 %v91_v22, %v132_v54 }
  0xae   :  { %v137_v59 = vsub.f32 %v94_v25, %v132_v54  ;;  %v138_v63 = vsub.f32 %v96_v31, %v132_v54  ;;  %v139_v4 = vsub.f32 %v99_v34, %v132_v54  ;;  %v140_v8 = vsub.f32 %v101_v37, %v132_v54 }
  0xaf   :  { %v141_v60 = vmul.f32 %v133_v55, %v133_v55  ;;  %v142_v61 = vmul.f32 %v134_v56, %v134_v56  ;;  %v143_v62 = vmul.f32 %v135_v57, %v135_v57  ;;  %v144_v0 = vmul.f32 %v136_v58, %v136_v58 }
  0xb0   :  { %v145_v5 = vmul.f32 %v137_v59, %v137_v59  ;;  %v146_v9 = vmul.f32 %v138_v63, %v138_v63  ;;  %v147_v12 = vmul.f32 %v139_v4, %v139_v4  ;;  %v148_v15 = vmul.f32 %v140_v8, %v140_v8 }
  0xb1   :  { %v149_v1 = vsel %vm103_vm3, %v141_v60, 0.0  ;;  %v150_v2 = vsel %vm103_vm3, %v142_v61, 0.0  ;;  %v152_v6 = vsel %vm103_vm3, %v143_v62, 0.0  ;;  %v154_v10 = vsel %vm103_vm3, %v144_v0, 0.0 }
  0xb2   :  { %v151_v3 = vadd.f32 %v150_v2, %v149_v1  ;;  %v156_v13 = vsel %vm103_vm3, %v145_v5, 0.0  ;;  %v158_v16 = vsel %vm103_vm3, %v146_v9, 0.0  ;;  %v160_v18 = vsel %vm103_vm3, %v147_v12, 0.0 }
  0xb3   :  { %v162_v20 = vsel %vm103_vm3, %v148_v15, 0.0 }
  0xb4   :  { %v153_v7 = vadd.f32 %v152_v6, %v151_v3 }
  0xb6   :  { %v155_v11 = vadd.f32 %v154_v10, %v153_v7 }
  0xb8   :  { %v157_v14 = vadd.f32 %v156_v13, %v155_v11 }
  0xba   :  { %v159_v17 = vadd.f32 %v158_v16, %v157_v14 }
  0xbc   :  { %v161_v19 = vadd.f32 %v160_v18, %v159_v17 }
  0xbe   :  { %v163_v21 = vadd.f32 %v162_v20, %v161_v19 }
  0xc0   :  { %v164_v22 = vrot.slane %v163_v21, 4 }
  0xc2   :  { %v165_v23 = vadd.f32 %v164_v22, %v163_v21 }
  0xc4   :  { %v166_v24 = vrot.slane %v165_v23, 2 }
  0xc6   :  { %v167_v25 = vadd.f32 %v166_v24, %v165_v23 }
  0xc8   :  { %v168_v26 = vrot.slane %v167_v25, 1 }
  0xca   :  { %v169_v27 = vadd.f32 %v168_v26, %v167_v25 }
  0xcc   :  { %v170_v28 = vmul.f32 %v169_v27, %v131_v52 }
  0xce   :  { %v171_v29 = vadd.f32 1e-05, %v170_v28 }
  0xd0   :  { %268 = vrsqrt.f32 %v171_v29  ;;  %vm178_vm6 = vweird.f32 %v171_v29 }
  0xd6   :  { %v269_v30 = vpop.eup %268 }
  0xd7   :  { %v173_v31 = vmul.f32 %v269_v30, %v171_v29  ;;  %vm179_vm5 = vweird.f32 %v269_v30 }
  0xd8   :  { %vm180_vm7 = vmor %vm178_vm6, %vm179_vm5 }
  0xd9   :  { %v174_v32 = vmul.f32 %v269_v30, %v173_v31 }
  0xdb   :  { %v175_v33 = vmul.f32 0.5, %v174_v32 }
  0xdd   :  { %v176_v34 = vsub.f32 1.5, %v175_v33 }
  0xdf   :  { %v177_v35 = vmul.f32 %v269_v30, %v176_v34 }
  0xe1   :  { %v181_v37 = vsel %vm180_vm7, %v269_v30, %v177_v35 }
  0xe2   :  { %v182_v38 = vmul.f32 %v181_v37, %v133_v55  ;;  %v183_v39 = vmul.f32 %v181_v37, %v134_v56  ;;  %v184_v40 = vmul.f32 %v181_v37, %v135_v57  ;;  %v185_v41 = vmul.f32 %v181_v37, %v136_v58 }
  0xe3   :  { %v186_v43 = vmul.f32 %v181_v37, %v137_v59  ;;  %v187_v44 = vmul.f32 %v181_v37, %v138_v63  ;;  %v188_v45 = vmul.f32 %v181_v37, %v139_v4  ;;  %v189_v46 = vmul.f32 %v181_v37, %v140_v8 }
  0xe4   :  { %v194_v47 = vmul.f32 %v264_v36, %v182_v38  ;;  %v195_v48 = vmul.f32 %v264_v36, %v183_v39  ;;  %v196_v49 = vmul.f32 %v264_v36, %v184_v40  ;;  %v197_v50 = vmul.f32 %v264_v36, %v185_v41 }
  0xe5   :  { %v198_v51 = vmul.f32 %v264_v36, %v186_v43  ;;  %v199_v52 = vmul.f32 %v264_v36, %v187_v44  ;;  %v200_v53 = vmul.f32 %v264_v36, %v188_v45  ;;  %v201_v54 = vmul.f32 %v264_v36, %v189_v46 }
  0xe6   :  { %v206_v55 = vadd.f32 %v265_v42, %v194_v47  ;;  %v207_v56 = vadd.f32 %v265_v42, %v195_v48  ;;  %v208_v57 = vadd.f32 %v265_v42, %v196_v49  ;;  %v209_v58 = vadd.f32 %v265_v42, %v197_v50 }
  0xe7   :  { %v210_v60 = vadd.f32 %v265_v42, %v198_v51  ;;  %v211_v61 = vadd.f32 %v265_v42, %v199_v52  ;;  %v212_v62 = vadd.f32 %v265_v42, %v200_v53  ;;  %v213_v1 = vadd.f32 %v265_v42, %v201_v54 }
  0xe8   :  { %v214_v0 = vmax.f32 %v206_v55, 0.0  ;;  %v215_v59 = vmax.f32 %v207_v56, 0.0  ;;  %v216_v63 = vmax.f32 %v208_v57, 0.0  ;;  %v217_v2 = vmax.f32 %v209_v58, 0.0 }
  0xe9   :  { %v218_v3 = vmax.f32 %v210_v60, 0.0  ;;  %v219_v4 = vmax.f32 %v211_v61, 0.0  ;;  %v220_v5 = vmax.f32 %v212_v62, 0.0  ;;  %v221_v6 = vmax.f32 %v213_v1, 0.0 }
  0xea   :  { %222 = vst.msk [vmem:[%s379_s5] sm:$0xff] %vm103_vm3, %v214_v0 }
  0xeb   :  { %223 = vst.msk [vmem:[%s379_s5 + $0x8] sm:$0xff] %vm103_vm3, %v215_v59 }
  0xec   :  { %224 = vst.msk [vmem:[%s379_s5 + $0x10] sm:$0xff] %vm103_vm3, %v216_v63 }
  0xed   :  { %225 = vst.msk [vmem:[%s379_s5 + $0x18] sm:$0xff] %vm103_vm3, %v217_v2 }
  0xee   :  { %226 = vst.msk [vmem:[%s379_s5 + $0x20] sm:$0xff] %vm103_vm3, %v218_v3 }
  0xef   :  { %227 = vst.msk [vmem:[%s379_s5 + $0x28] sm:$0xff] %vm103_vm3, %v219_v4 }
  0xf0   :  { %228 = vst.msk [vmem:[%s379_s5 + $0x30] sm:$0xff] %vm103_vm3, %v220_v5 }
  0xf1   :  { %229 = vst.msk [vmem:[%s379_s5 + $0x38] sm:$0xff] %vm103_vm3, %v221_v6 }

// kernel: ecgbert_forward.9
= control target key start
LH: loop header
LB: loop body
LE: loop exit
PB: predicated region body
PF: predicated region fallthrough
CT: control target
= control target key end

     0   :  { %vm127_vm0 = vcmask 261120   ;;  %v347_v29 = vmov 32.0   ;;  %vm172_vm1 = vcmask 523264   ;;  %s467_s1 = inlined_call_operand.vmem [shape: bf16[160,64], index: 1, kind: input, shape index: {}]   ;;  %s468_s0 = inlined_call_operand.vmem [shape: bf16[32,160], index: 0, kind: input, shape index: {}]   ;;  %s469_s2 = inlined_call_operand.vmem [shape: f32[1,64], index: 2, kind: input, shape index: {}]   ;;  %s470_s3 = inlined_call_operand.vmem [shape: f32[1,64], index: 3, kind: input, shape index: {}]   ;;  %s471_s4 = inlined_call_operand.vmem [shape: f32[1,64], index: 4, kind: input, shape index: {}]   ;;  %s472_s5 = inlined_call_operand.vmem [shape: f32[32,64], index: 5, kind: output, shape index: {}]  }
   0x1   :  { %v328_v0 = vld [vmem:[%s467_s1 + $0x38] sm:$0xff]  ;;  %v330_v1 = vld [vmem:[%s467_s1 + $0x48] sm:$0xff]  ;;  %v327_v2 = vld [vmem:[%s467_s1 + $0x30] sm:$0xff]  ;;  %343 = vrcp.f32 %v347_v29 }
   0x2   :  { %134 = vmatpush.bf16.msra.mxu0 %v328_v0  ;;  %331 = vmatpush.bf16.msra.mxu2 %v328_v0  ;;  %v329_v3 = vld [vmem:[%s467_s1 + $0x40] sm:$0xff]  ;;  %v263_v5 = vld [vmem:[%s468_s0 + $0x8] sm:$0xf0]  ;;  %v324_v9 = vld [vmem:[%s467_s1 + $0x18] sm:$0xff] }
   0x3   :  { %159 = vmatpush.bf16.msra.mxu1 %v330_v1  ;;  %v317_v4 = vld [vmem:[%s468_s0 + $0x4] sm:$0xf]  ;;  %v326_v6 = vld [vmem:[%s467_s1 + $0x28] sm:$0xff]  ;;  %v323_v10 = vld [vmem:[%s467_s1 + $0x10] sm:$0xff] }
   0x4   :  { %v266_v7 = vor.u32 %v317_v4, %v263_v5  ;;  %v325_v8 = vld [vmem:[%s467_s1 + $0x20] sm:$0xff]  ;;  %v319_v11 = vld [vmem:[%s468_s0 + $0x14] sm:$0xf]  ;;  %v271_v12 = vld [vmem:[%s468_s0 + $0x18] sm:$0xf0] }
   0x5   :  { %v322_v13 = vld [vmem:[%s467_s1 + $0x8] sm:$0xff]  ;;  %v274_v14 = vor.u32 %v319_v11, %v271_v12  ;;  %v321_v15 = vld [vmem:[%s467_s1] sm:$0xff]  ;;  %v269_v18 = vld [vmem:[%s468_s0 + $0x10] sm:$0xf] }
   0x6   :  { %135 = vmatpush.bf16.msra.mxu0 %v327_v2  ;;  %332 = vmatpush.bf16.msra.mxu2 %v327_v2  ;;  %v261_v16 = vld [vmem:[%s468_s0] sm:$0xf]  ;;  %v318_v17 = vld [vmem:[%s468_s0 + $0x4] sm:$0xf0]  ;;  %v320_v19 = vld [vmem:[%s468_s0 + $0x14] sm:$0xf0] }
   0x7   :  { %160 = vmatpush.bf16.msra.mxu1 %v329_v3  ;;  %v262_v20 = vor.u32 %v318_v17, %v261_v16  ;;  %v270_v21 = vor.u32 %v320_v19, %v269_v18  ;;  %v340_v25 = vld [vmem:[%s469_s2] ss:$0 sm:$0xff]  ;;  %v344_v35 = vpop.eup %343 }
   0x8   :  { %v187_v42 = vmul.f32 32.0, %v344_v35  ;;  %vm191_vm2 = vweird.f32 %v344_v35 }
   0xa   :  { %136 = vmatpush.bf16.msra.mxu0 %v326_v6  ;;  %333 = vmatpush.bf16.msra.mxu2 %v326_v6  ;;  %v188_v48 = vsub.f32 1.0, %v187_v42 }
   0xb   :  { %315 = vmatmul.msk.bf16.vlgmr.msra.gmra.mxu1 %vm127_vm0, %v266_v7 }
   0xc   :  { %v189_v51 = vmul.f32 %v344_v35, %v188_v48 }
   0xe   :  { %137 = vmatpush.bf16.msra.mxu0 %v325_v8  ;;  %334 = vmatpush.bf16.msra.mxu2 %v325_v8  ;;  %v190_v54 = vadd.f32 %v344_v35, %v189_v51 }
  0x10   :  { %v192_v57 = vsel %vm191_vm2, %v344_v35, %v190_v54 }
  0x12   :  { %138 = vmatpush.bf16.msra.mxu0 %v324_v9  ;;  %335 = vmatpush.bf16.msra.mxu2 %v324_v9 }
  0x16   :  { %139 = vmatpush.bf16.msra.mxu0 %v323_v10  ;;  %336 = vmatpush.bf16.msra.mxu2 %v323_v10 }
  0x1a   :  { %140 = vmatpush.bf16.msra.mxu0 %v322_v13  ;;  %337 = vmatpush.bf16.msra.mxu2 %v322_v13 }
  0x1b   :  { %316 = vmatmul.msk.bf16.gmra.mxu1 %vm127_vm0, %v274_v14 }
  0x1e   :  { %141 = vmatpush.bf16.msra.mxu0 %v321_v15  ;;  %338 = vmatpush.bf16.msra.mxu2 %v321_v15 }
  0x21   :  { %142 = vmatmul.bf16.vlgmr.msra.gmra.mxu0 %v262_v20  ;;  %147 = vmatmul.bf16.vlgmr.msra.gmra.mxu2 %v270_v21 }
  0x88   :  { %v162_v22 = vpop.f32.mrf.mxu1 }
  0x90   :  { %v164_v23 = vpop.f32.mrf.mxu1 }
  0x98   :  { %v167_v27 = vpop.f32.mrf.mxu1 }
  0x9e   :  { %v143_v24 = vpop.f32.mrf.mxu0 }
  0x9f   :  { %v144_v26 = vadd.f32 %v340_v25, %v143_v24 }
  0xa0   :  { %v169_v43 = vpop.f32.mrf.mxu1 }
  0xa1   :  { %v163_v31 = vadd.f32 %v162_v22, %v144_v26 }
  0xa3   :  { %v173_v36 = vsel %vm172_vm1, %v163_v31, 0.0 }
  0xa4   :  { %v148_v28 = vpop.f32.mrf.mxu2 }
  0xa5   :  { %v149_v32 = vadd.f32 %v340_v25, %v148_v28 }
  0xa6   :  { %v145_v30 = vpop.f32.mrf.mxu0 }
  0xa7   :  { %v146_v33 = vadd.f32 %v340_v25, %v145_v30  ;;  %v168_v37 = vadd.f32 %v167_v27, %v149_v32 }
  0xa9   :  { %v165_v34 = vadd.f32 %v164_v23, %v146_v33  ;;  %v176_v44 = vsel %vm172_vm1, %v168_v37, 0.0 }
  0xab   :  { %v174_v38 = vsel %vm172_vm1, %v165_v34, 0.0 }
  0xac   :  { %v175_v39 = vadd.f32 %v174_v38, %v173_v36  ;;  %v150_v40 = vpop.f32.mrf.mxu2 }
  0xad   :  { %v151_v41 = vadd.f32 %v340_v25, %v150_v40  ;;  %v341_v25 = vld [vmem:[%s470_s3] ss:$0 sm:$0xff] }
  0xae   :  { %v177_v46 = vadd.f32 %v176_v44, %v175_v39 }
  0xaf   :  { %v170_v45 = vadd.f32 %v169_v43, %v151_v41 }
  0xb1   :  { %v178_v47 = vsel %vm172_vm1, %v170_v45, 0.0 }
  0xb2   :  { %v179_v49 = vadd.f32 %v178_v47, %v177_v46 }
  0xb4   :  { %v180_v50 = vrot.slane %v179_v49, 4 }
  0xb6   :  { %v181_v52 = vadd.f32 %v180_v50, %v179_v49 }
  0xb8   :  { %v182_v53 = vrot.slane %v181_v52, 2 }
  0xba   :  { %v183_v55 = vadd.f32 %v182_v53, %v181_v52 }
  0xbc   :  { %v184_v56 = vrot.slane %v183_v55, 1 }
  0xbe   :  { %v185_v58 = vadd.f32 %v184_v56, %v183_v55 }
  0xc0   :  { %v193_v59 = vmul.f32 %v192_v57, %v185_v58 }
  0xc2   :  { %v194_v60 = vsub.f32 %v163_v31, %v193_v59  ;;  %v195_v61 = vsub.f32 %v165_v34, %v193_v59  ;;  %v196_v62 = vsub.f32 %v168_v37, %v193_v59  ;;  %v197_v63 = vsub.f32 %v170_v45, %v193_v59  ;;  %v342_v31 = vld [vmem:[%s471_s4] ss:$0 sm:$0xff] }
  0xc4   :  { %v198_v0 = vmul.f32 %v194_v60, %v194_v60  ;;  %v199_v1 = vmul.f32 %v195_v61, %v195_v61  ;;  %v200_v2 = vmul.f32 %v196_v62, %v196_v62  ;;  %v201_v3 = vmul.f32 %v197_v63, %v197_v63 }
  0xc6   :  { %v202_v4 = vsel %vm172_vm1, %v198_v0, 0.0  ;;  %v203_v5 = vsel %vm172_vm1, %v199_v1, 0.0  ;;  %v205_v7 = vsel %vm172_vm1, %v200_v2, 0.0  ;;  %v207_v9 = vsel %vm172_vm1, %v201_v3, 0.0 }
  0xc7   :  { %v204_v6 = vadd.f32 %v203_v5, %v202_v4 }
  0xc9   :  { %v206_v8 = vadd.f32 %v205_v7, %v204_v6 }
  0xcb   :  { %v208_v10 = vadd.f32 %v207_v9, %v206_v8 }
  0xcd   :  { %v209_v11 = vrot.slane %v208_v10, 4 }
  0xcf   :  { %v210_v12 = vadd.f32 %v209_v11, %v208_v10 }
  0xd1   :  { %v211_v13 = vrot.slane %v210_v12, 2 }
  0xd3   :  { %v212_v14 = vadd.f32 %v211_v13, %v210_v12 }
  0xd5   :  { %v213_v15 = vrot.slane %v212_v14, 1 }
  0xd7   :  { %v214_v16 = vadd.f32 %v213_v15, %v212_v14 }
  0xd9   :  { %v215_v17 = vmul.f32 %v214_v16, %v192_v57 }
  0xdb   :  { %v216_v18 = vadd.f32 1e-05, %v215_v17 }
  0xdd   :  { %345 = vrsqrt.f32 %v216_v18  ;;  %vm223_vm4 = vweird.f32 %v216_v18 }
  0xe3   :  { %v346_v19 = vpop.eup %345 }
  0xe4   :  { %v218_v20 = vmul.f32 %v346_v19, %v216_v18  ;;  %vm224_vm3 = vweird.f32 %v346_v19 }
  0xe5   :  { %vm225_vm5 = vmor %vm223_vm4, %vm224_vm3 }
  0xe6   :  { %v219_v21 = vmul.f32 %v346_v19, %v218_v20 }
  0xe8   :  { %v220_v22 = vmul.f32 0.5, %v219_v21 }
  0xea   :  { %v221_v23 = vsub.f32 1.5, %v220_v22 }
  0xec   :  { %v222_v24 = vmul.f32 %v346_v19, %v221_v23 }
  0xee   :  { %v226_v26 = vsel %vm225_vm5, %v346_v19, %v222_v24 }
  0xef   :  { %v227_v27 = vmul.f32 %v226_v26, %v194_v60  ;;  %v228_v28 = vmul.f32 %v226_v26, %v195_v61  ;;  %v229_v29 = vmul.f32 %v226_v26, %v196_v62  ;;  %v230_v30 = vmul.f32 %v226_v26, %v197_v63 }
  0xf1   :  { %v235_v32 = vmul.f32 %v341_v25, %v227_v27  ;;  %v236_v33 = vmul.f32 %v341_v25, %v228_v28  ;;  %v237_v34 = vmul.f32 %v341_v25, %v229_v29  ;;  %v238_v35 = vmul.f32 %v341_v25, %v230_v30 }
  0xf3   :  { %v243_v36 = vadd.f32 %v342_v31, %v235_v32  ;;  %v244_v37 = vadd.f32 %v342_v31, %v236_v33  ;;  %v245_v38 = vadd.f32 %v342_v31, %v237_v34  ;;  %v246_v39 = vadd.f32 %v342_v31, %v238_v35 }
  0xf5   :  { %v247_v40 = vmax.f32 %v243_v36, 0.0  ;;  %v248_v41 = vmax.f32 %v244_v37, 0.0  ;;  %v249_v42 = vmax.f32 %v245_v38, 0.0  ;;  %v250_v43 = vmax.f32 %v246_v39, 0.0 }
  0xf7   :  { %251 = vst.msk [vmem:[%s472_s5] sm:$0xff] %vm172_vm1, %v247_v40 }
  0xf8   :  { %252 = vst.msk [vmem:[%s472_s5 + $0x8] sm:$0xff] %vm172_vm1, %v248_v41 }
  0xf9   :  { %253 = vst.msk [vmem:[%s472_s5 + $0x10] sm:$0xff] %vm172_vm1, %v249_v42 }
  0xfa   :  { %254 = vst.msk [vmem:[%s472_s5 + $0x18] sm:$0xff] %vm172_vm1, %v250_v43 }

// kernel: ecgbert_forward.10
= control target key start
LH: loop header
LB: loop body
LE: loop exit
PB: predicated region body
PF: predicated region fallthrough
CT: control target
= control target key end

     0   :  { %vm258_vm0 = vcmask 261120   ;;  %v533_v62 = vmov 64.0   ;;  %s717_s1 = inlined_call_operand.vmem [shape: bf16[256,32], index: 1, kind: input, shape index: {}]   ;;  %s718_s2 = inlined_call_operand.vmem [shape: f32[1,32], index: 2, kind: input, shape index: {}]   ;;  %s719_s0 = inlined_call_operand.vmem [shape: bf16[64,256], index: 0, kind: input, shape index: {}]   ;;  %s720_s3 = inlined_call_operand.vmem [shape: f32[1,32], index: 3, kind: input, shape index: {}]   ;;  %s721_s4 = inlined_call_operand.vmem [shape: f32[1,32], index: 4, kind: input, shape index: {}]   ;;  %s722_s5 = inlined_call_operand.vmem [shape: f32[64,32], index: 5, kind: output, shape index: {}]  }
   0x1   :  { %v500_v0 = vld [vmem:[%s717_s1 + $0x38] sm:$0xff]  ;;  %v499_v2 = vld [vmem:[%s717_s1 + $0x30] sm:$0xff]  ;;  %v498_v4 = vld [vmem:[%s717_s1 + $0x28] sm:$0xff]  ;;  %529 = vrcp.f32 %v533_v62 }
   0x2   :  { %v508_v1 = vld [vmem:[%s717_s1 + $0x78] sm:$0xff]  ;;  %200 = vmatpush.bf16.msra.mxu0 %v500_v0  ;;  %509 = vmatpush.bf16.msra.mxu2 %v500_v0  ;;  %v507_v3 = vld [vmem:[%s717_s1 + $0x70] sm:$0xff]  ;;  %v506_v5 = vld [vmem:[%s717_s1 + $0x68] sm:$0xff] }
   0x3   :  { %229 = vmatpush.bf16.msra.mxu1 %v508_v1  ;;  %517 = vmatpush.bf16.msra.mxu3 %v508_v1  ;;  %v497_v6 = vld [vmem:[%s717_s1 + $0x20] sm:$0xff]  ;;  %v496_v8 = vld [vmem:[%s717_s1 + $0x18] sm:$0xff]  ;;  %v495_v10 = vld [vmem:[%s717_s1 + $0x10] sm:$0xff] }
   0x4   :  { %v505_v7 = vld [vmem:[%s717_s1 + $0x60] sm:$0xff]  ;;  %v504_v9 = vld [vmem:[%s717_s1 + $0x58] sm:$0xff]  ;;  %v503_v11 = vld [vmem:[%s717_s1 + $0x50] sm:$0xff] }
   0x5   :  { %v494_v12 = vld [vmem:[%s717_s1 + $0x8] sm:$0xff]  ;;  %v493_v14 = vld [vmem:[%s717_s1] sm:$0xff]  ;;  %v399_v28 = vld [vmem:[%s719_s0 + $0x10] sm:$0xf] }
   0x6   :  { %201 = vmatpush.bf16.msra.mxu0 %v499_v2  ;;  %510 = vmatpush.bf16.msra.mxu2 %v499_v2  ;;  %v502_v13 = vld [vmem:[%s717_s1 + $0x48] sm:$0xff]  ;;  %v501_v15 = vld [vmem:[%s717_s1 + $0x40] sm:$0xff]  ;;  %v488_v29 = vld [vmem:[%s719_s0 + $0x14] sm:$0xf0] }
   0x7   :  { %230 = vmatpush.bf16.msra.mxu1 %v507_v3  ;;  %518 = vmatpush.bf16.msra.mxu3 %v507_v3  ;;  %v391_v16 = vld [vmem:[%s719_s0] sm:$0xf]  ;;  %v486_v17 = vld [vmem:[%s719_s0 + $0x4] sm:$0xf0]  ;;  %v485_v20 = vld [vmem:[%s719_s0 + $0x4] sm:$0xf]  ;;  %v400_v36 = vor.u32 %v488_v29, %v399_v28 }
   0x8   :  { %v407_v18 = vld [vmem:[%s719_s0 + $0x20] sm:$0xf]  ;;  %v490_v19 = vld [vmem:[%s719_s0 + $0x24] sm:$0xf0]  ;;  %v393_v21 = vld [vmem:[%s719_s0 + $0x8] sm:$0xf0]  ;;  %v392_v24 = vor.u32 %v486_v17, %v391_v16 }
   0x9   :  { %v489_v22 = vld [vmem:[%s719_s0 + $0x24] sm:$0xf]  ;;  %v409_v23 = vld [vmem:[%s719_s0 + $0x28] sm:$0xf0]  ;;  %v408_v25 = vor.u32 %v490_v19, %v407_v18  ;;  %v396_v26 = vor.u32 %v485_v20, %v393_v21  ;;  %v415_v30 = vld [vmem:[%s719_s0 + $0x30] sm:$0xf] }
   0xa   :  { %202 = vmatpush.bf16.msra.mxu0 %v498_v4  ;;  %511 = vmatpush.bf16.msra.mxu2 %v498_v4  ;;  %v412_v27 = vor.u32 %v489_v22, %v409_v23  ;;  %v492_v31 = vld [vmem:[%s719_s0 + $0x34] sm:$0xf0]  ;;  %v487_v32 = vld [vmem:[%s719_s0 + $0x14] sm:$0xf]  ;;  %v401_v33 = vld [vmem:[%s719_s0 + $0x18] sm:$0xf0] }
   0xb   :  { %231 = vmatpush.bf16.msra.mxu1 %v506_v5  ;;  %519 = vmatpush.bf16.msra.mxu3 %v506_v5  ;;  %v491_v34 = vld [vmem:[%s719_s0 + $0x34] sm:$0xf]  ;;  %v417_v35 = vld [vmem:[%s719_s0 + $0x38] sm:$0xf0]  ;;  %v416_v37 = vor.u32 %v492_v31, %v415_v30  ;;  %v404_v38 = vor.u32 %v487_v32, %v401_v33  ;;  %v526_v46 = vld [vmem:[%s718_s2] ss:$0 sm:$0xff] }
   0xc   :  { %v420_v39 = vor.u32 %v491_v34, %v417_v35 }
   0xe   :  { %203 = vmatpush.bf16.msra.mxu0 %v497_v6  ;;  %512 = vmatpush.bf16.msra.mxu2 %v497_v6 }
   0xf   :  { %232 = vmatpush.bf16.msra.mxu1 %v505_v7  ;;  %520 = vmatpush.bf16.msra.mxu3 %v505_v7 }
  0x12   :  { %204 = vmatpush.bf16.msra.mxu0 %v496_v8  ;;  %513 = vmatpush.bf16.msra.mxu2 %v496_v8 }
  0x13   :  { %233 = vmatpush.bf16.msra.mxu1 %v504_v9  ;;  %521 = vmatpush.bf16.msra.mxu3 %v504_v9 }
  0x16   :  { %205 = vmatpush.bf16.msra.mxu0 %v495_v10  ;;  %514 = vmatpush.bf16.msra.mxu2 %v495_v10 }
  0x17   :  { %234 = vmatpush.bf16.msra.mxu1 %v503_v11  ;;  %522 = vmatpush.bf16.msra.mxu3 %v503_v11  ;;  %v530_v11 = vpop.eup %529 }
  0x18   :  { %v281_v21 = vmul.f32 64.0, %v530_v11  ;;  %vm285_vm1 = vweird.f32 %v530_v11 }
  0x1a   :  { %206 = vmatpush.bf16.msra.mxu0 %v494_v12  ;;  %515 = vmatpush.bf16.msra.mxu2 %v494_v12 }
  0x1b   :  { %235 = vmatpush.bf16.msra.mxu1 %v502_v13  ;;  %523 = vmatpush.bf16.msra.mxu3 %v502_v13 }
  0x1e   :  { %207 = vmatpush.bf16.msra.mxu0 %v493_v14  ;;  %516 = vmatpush.bf16.msra.mxu2 %v493_v14 }
  0x1f   :  { %236 = vmatpush.bf16.msra.mxu1 %v501_v15  ;;  %524 = vmatpush.bf16.msra.mxu3 %v501_v15 }
  0x21   :  { %208 = vmatmul.bf16.vlgmr.msra.gmra.mxu0 %v392_v24  ;;  %218 = vmatmul.bf16.vlgmr.msra.gmra.mxu2 %v408_v25 }
  0x22   :  { %237 = vmatmul.bf16.vlgmr.msra.gmra.mxu1 %v396_v26  ;;  %247 = vmatmul.bf16.vlgmr.msra.gmra.mxu3 %v412_v27  ;;  %v282_v26 = vsub.f32 1.0, %v281_v21 }
  0x24   :  { %v283_v29 = vmul.f32 %v530_v11, %v282_v26 }
  0x26   :  { %v284_v32 = vadd.f32 %v530_v11, %v283_v29 }
  0x28   :  { %v286_v35 = vsel %vm285_vm1, %v530_v11, %v284_v32 }
  0x31   :  { %213 = vmatmul.bf16.gmra.mxu0 %v400_v36  ;;  %223 = vmatmul.bf16.gmra.mxu2 %v416_v37 }
  0x32   :  { %242 = vmatmul.bf16.gmra.mxu1 %v404_v38  ;;  %252 = vmatmul.bf16.gmra.mxu3 %v420_v39 }
  0x9e   :  { %v209_v40 = vpop.f32.mrf.mxu0 }
  0x9f   :  { %v238_v41 = vpop.f32.mrf.mxu1  ;;  %v210_v51 = vadd.f32 %v526_v46, %v209_v40 }
  0xa1   :  { %v239_v55 = vadd.f32 %v238_v41, %v210_v51 }
  0xa3   :  { %v259_v63 = vsel %vm258_vm0, %v239_v55, 0.0 }
  0xa4   :  { %v219_v42 = vpop.f32.mrf.mxu2 }
  0xa5   :  { %v248_v43 = vpop.f32.mrf.mxu3  ;;  %v220_v58 = vadd.f32 %v526_v46, %v219_v42 }
  0xa6   :  { %v211_v44 = vpop.f32.mrf.mxu0 }
  0xa7   :  { %v240_v45 = vpop.f32.mrf.mxu1  ;;  %v212_v48 = vadd.f32 %v526_v46, %v211_v44  ;;  %v249_v5 = vadd.f32 %v248_v43, %v220_v58 }
  0xa9   :  { %v241_v54 = vadd.f32 %v240_v45, %v212_v48  ;;  %v266_v14 = vsel %vm258_vm0, %v249_v5, 0.0 }
  0xab   :  { %v260_v59 = vsel %vm258_vm0, %v241_v54, 0.0 }
  0xac   :  { %v221_v47 = vpop.f32.mrf.mxu2  ;;  %v261_v3 = vadd.f32 %v260_v59, %v259_v63 }
  0xad   :  { %v250_v49 = vpop.f32.mrf.mxu3  ;;  %v222_v0 = vadd.f32 %v526_v46, %v221_v47 }
  0xae   :  { %v214_v50 = vpop.f32.mrf.mxu0 }
  0xaf   :  { %v215_v52 = vadd.f32 %v526_v46, %v214_v50  ;;  %v243_v53 = vpop.f32.mrf.mxu1  ;;  %v251_v9 = vadd.f32 %v250_v49, %v222_v0 }
  0xb1   :  { %v244_v56 = vadd.f32 %v243_v53, %v215_v52  ;;  %v268_v19 = vsel %vm258_vm0, %v251_v9, 0.0 }
  0xb3   :  { %v262_v1 = vsel %vm258_vm0, %v244_v56, 0.0 }
  0xb4   :  { %v224_v57 = vpop.f32.mrf.mxu2  ;;  %v263_v8 = vadd.f32 %v262_v1, %v261_v3 }
  0xb5   :  { %v253_v60 = vpop.f32.mrf.mxu3  ;;  %v225_v6 = vadd.f32 %v526_v46, %v224_v57 }
  0xb6   :  { %v216_v61 = vpop.f32.mrf.mxu0 }
  0xb7   :  { %v217_v2 = vadd.f32 %v526_v46, %v216_v61  ;;  %v245_v4 = vpop.f32.mrf.mxu1  ;;  %v254_v15 = vadd.f32 %v253_v60, %v225_v6 }
  0xb9   :  { %v246_v7 = vadd.f32 %v245_v4, %v217_v2  ;;  %v270_v23 = vsel %vm258_vm0, %v254_v15, 0.0 }
  0xbb   :  { %v264_v10 = vsel %vm258_vm0, %v246_v7, 0.0 }
  0xbc   :  { %v265_v12 = vadd.f32 %v264_v10, %v263_v8  ;;  %v226_v13 = vpop.f32.mrf.mxu2 }
  0xbd   :  { %v227_v16 = vadd.f32 %v526_v46, %v226_v13  ;;  %v255_v18 = vpop.f32.mrf.mxu3 }
  0xbe   :  { %v267_v17 = vadd.f32 %v266_v14, %v265_v12 }
  0xbf   :  { %v256_v20 = vadd.f32 %v255_v18, %v227_v16 }
  0xc0   :  { %v269_v22 = vadd.f32 %v268_v19, %v267_v17  ;;  %v527_v19 = vld [vmem:[%s720_s3] ss:$0 sm:$0xff] }
  0xc1   :  { %v272_v25 = vsel %vm258_vm0, %v256_v20, 0.0 }
  0xc2   :  { %v271_v24 = vadd.f32 %v270_v23, %v269_v22 }
  0xc4   :  { %v273_v27 = vadd.f32 %v272_v25, %v271_v24  ;;  %v528_v25 = vld [vmem:[%s721_s4] ss:$0 sm:$0xff] }
  0xc6   :  { %v274_v28 = vrot.slane %v273_v27, 4 }
  0xc8   :  { %v275_v30 = vadd.f32 %v274_v28, %v273_v27 }
  0xca   :  { %v276_v31 = vrot.slane %v275_v30, 2 }
  0xcc   :  { %v277_v33 = vadd.f32 %v276_v31, %v275_v30 }
  0xce   :  { %v278_v34 = vrot.slane %v277_v33, 1 }
  0xd0   :  { %v279_v36 = vadd.f32 %v278_v34, %v277_v33 }
  0xd2   :  { %v287_v37 = vmul.f32 %v286_v35, %v279_v36 }
  0xd4   :  { %v288_v38 = vsub.f32 %v239_v55, %v287_v37  ;;  %v289_v39 = vsub.f32 %v241_v54, %v287_v37  ;;  %v290_v40 = vsub.f32 %v244_v56, %v287_v37  ;;  %v291_v41 = vsub.f32 %v246_v7, %v287_v37 }
  0xd5   :  { %v292_v42 = vsub.f32 %v249_v5, %v287_v37  ;;  %v293_v46 = vsub.f32 %v251_v9, %v287_v37  ;;  %v294_v51 = vsub.f32 %v254_v15, %v287_v37  ;;  %v295_v55 = vsub.f32 %v256_v20, %v287_v37 }
  0xd6   :  { %v296_v43 = vmul.f32 %v288_v38, %v288_v38  ;;  %v297_v44 = vmul.f32 %v289_v39, %v289_v39  ;;  %v298_v45 = vmul.f32 %v290_v40, %v290_v40  ;;  %v299_v47 = vmul.f32 %v291_v41, %v291_v41 }
  0xd7   :  { %v300_v52 = vmul.f32 %v292_v42, %v292_v42  ;;  %v301_v54 = vmul.f32 %v293_v46, %v293_v46  ;;  %v302_v59 = vmul.f32 %v294_v51, %v294_v51  ;;  %v303_v62 = vmul.f32 %v295_v55, %v295_v55 }
  0xd8   :  { %v304_v48 = vsel %vm258_vm0, %v296_v43, 0.0  ;;  %v305_v49 = vsel %vm258_vm0, %v297_v44, 0.0  ;;  %v307_v53 = vsel %vm258_vm0, %v298_v45, 0.0  ;;  %v309_v56 = vsel %vm258_vm0, %v299_v47, 0.0 }
  0xd9   :  { %v306_v50 = vadd.f32 %v305_v49, %v304_v48  ;;  %v311_v60 = vsel %vm258_vm0, %v300_v52, 0.0  ;;  %v313_v63 = vsel %vm258_vm0, %v301_v54, 0.0  ;;  %v315_v1 = vsel %vm258_vm0, %v302_v59, 0.0 }
  0xda   :  { %v317_v3 = vsel %vm258_vm0, %v303_v62, 0.0 }
  0xdb   :  { %v308_v57 = vadd.f32 %v307_v53, %v306_v50 }
  0xdd   :  { %v310_v58 = vadd.f32 %v309_v56, %v308_v57 }
  0xdf   :  { %v312_v61 = vadd.f32 %v311_v60, %v310_v58 }
  0xe1   :  { %v314_v0 = vadd.f32 %v313_v63, %v312_v61 }
  0xe3   :  { %v316_v2 = vadd.f32 %v315_v1, %v314_v0 }
  0xe5   :  { %v318_v4 = vadd.f32 %v317_v3, %v316_v2 }
  0xe7   :  { %v319_v5 = vrot.slane %v318_v4, 4 }
  0xe9   :  { %v320_v6 = vadd.f32 %v319_v5, %v318_v4 }
  0xeb   :  { %v321_v7 = vrot.slane %v320_v6, 2 }
  0xed   :  { %v322_v8 = vadd.f32 %v321_v7, %v320_v6 }
  0xef   :  { %v323_v9 = vrot.slane %v322_v8, 1 }
  0xf1   :  { %v324_v10 = vadd.f32 %v323_v9, %v322_v8 }
  0xf3   :  { %v325_v11 = vmul.f32 %v324_v10, %v286_v35 }
  0xf5   :  { %v326_v12 = vadd.f32 1e-05, %v325_v11 }
  0xf7   :  { %531 = vrsqrt.f32 %v326_v12  ;;  %vm333_vm3 = vweird.f32 %v326_v12 }
  0xfd   :  { %v532_v13 = vpop.eup %531 }
  0xfe   :  { %v328_v14 = vmul.f32 %v532_v13, %v326_v12  ;;  %vm334_vm2 = vweird.f32 %v532_v13 }
  0xff   :  { %vm335_vm4 = vmor %vm333_vm3, %vm334_vm2 }
 0x100   :  { %v329_v15 = vmul.f32 %v532_v13, %v328_v14 }
 0x102   :  { %v330_v16 = vmul.f32 0.5, %v329_v15 }
 0x104   :  { %v331_v17 = vsub.f32 1.5, %v330_v16 }
 0x106   :  { %v332_v18 = vmul.f32 %v532_v13, %v331_v17 }
 0x108   :  { %v336_v20 = vsel %vm335_vm4, %v532_v13, %v332_v18 }
 0x109   :  { %v337_v21 = vmul.f32 %v336_v20, %v288_v38  ;;  %v338_v22 = vmul.f32 %v336_v20, %v289_v39  ;;  %v339_v23 = vmul.f32 %v336_v20, %v290_v40  ;;  %v340_v24 = vmul.f32 %v336_v20, %v291_v41 }
 0x10a   :  { %v341_v26 = vmul.f32 %v336_v20, %v292_v42  ;;  %v342_v27 = vmul.f32 %v336_v20, %v293_v46  ;;  %v343_v28 = vmul.f32 %v336_v20, %v294_v51  ;;  %v344_v29 = vmul.f32 %v336_v20, %v295_v55 }
 0x10b   :  { %v349_v30 = vmul.f32 %v527_v19, %v337_v21  ;;  %v350_v31 = vmul.f32 %v527_v19, %v338_v22  ;;  %v351_v32 = vmul.f32 %v527_v19, %v339_v23  ;;  %v352_v33 = vmul.f32 %v527_v19, %v340_v24 }
 0x10c   :  { %v353_v34 = vmul.f32 %v527_v19, %v341_v26  ;;  %v354_v35 = vmul.f32 %v527_v19, %v342_v27  ;;  %v355_v36 = vmul.f32 %v527_v19, %v343_v28  ;;  %v356_v37 = vmul.f32 %v527_v19, %v344_v29 }
 0x10d   :  { %v361_v38 = vadd.f32 %v528_v25, %v349_v30  ;;  %v362_v39 = vadd.f32 %v528_v25, %v350_v31  ;;  %v363_v40 = vadd.f32 %v528_v25, %v351_v32  ;;  %v364_v41 = vadd.f32 %v528_v25, %v352_v33 }
 0x10e   :  { %v365_v43 = vadd.f32 %v528_v25, %v353_v34  ;;  %v366_v44 = vadd.f32 %v528_v25, %v354_v35  ;;  %v367_v45 = vadd.f32 %v528_v25, %v355_v36  ;;  %v368_v48 = vadd.f32 %v528_v25, %v356_v37 }
 0x10f   :  { %v369_v47 = vmax.f32 %v361_v38, 0.0  ;;  %v370_v42 = vmax.f32 %v362_v39, 0.0  ;;  %v371_v46 = vmax.f32 %v363_v40, 0.0  ;;  %v372_v49 = vmax.f32 %v364_v41, 0.0 }
 0x110   :  { %v373_v50 = vmax.f32 %v365_v43, 0.0  ;;  %v374_v51 = vmax.f32 %v366_v44, 0.0  ;;  %v375_v52 = vmax.f32 %v367_v45, 0.0  ;;  %v376_v53 = vmax.f32 %v368_v48, 0.0 }
 0x111   :  { %377 = vst.msk [vmem:[%s722_s5] sm:$0xff] %vm258_vm0, %v369_v47 }
 0x112   :  { %378 = vst.msk [vmem:[%s722_s5 + $0x8] sm:$0xff] %vm258_vm0, %v370_v42 }
 0x113   :  { %379 = vst.msk [vmem:[%s722_s5 + $0x10] sm:$0xff] %vm258_vm0, %v371_v46 }
 0x114   :  { %380 = vst.msk [vmem:[%s722_s5 + $0x18] sm:$0xff] %vm258_vm0, %v372_v49 }
 0x115   :  { %381 = vst.msk [vmem:[%s722_s5 + $0x20] sm:$0xff] %vm258_vm0, %v373_v50 }
 0x116   :  { %382 = vst.msk [vmem:[%s722_s5 + $0x28] sm:$0xff] %vm258_vm0, %v374_v51 }
 0x117   :  { %383 = vst.msk [vmem:[%s722_s5 + $0x30] sm:$0xff] %vm258_vm0, %v375_v52 }
 0x118   :  { %384 = vst.msk [vmem:[%s722_s5 + $0x38] sm:$0xff] %vm258_vm0, %v376_v53 }

// kernel: ecgbert_forward.11
= control target key start
LH: loop header
LB: loop body
LE: loop exit
PB: predicated region body
PF: predicated region fallthrough
CT: control target
= control target key end

     0   :  { %vm201_vm0 = vcmask 261120   ;;  %v532_v60 = vmov 128.0   ;;  %s864_s1 = inlined_call_operand.vmem [shape: bf16[128,32], index: 1, kind: input, shape index: {}]   ;;  %s865_s2 = inlined_call_operand.vmem [shape: f32[1,32], index: 2, kind: input, shape index: {}]   ;;  %s866_s0 = inlined_call_operand.vmem [shape: bf16[128,128], index: 0, kind: input, shape index: {}]   ;;  %s867_s3 = inlined_call_operand.vmem [shape: f32[1,32], index: 3, kind: input, shape index: {}]   ;;  %s868_s4 = inlined_call_operand.vmem [shape: f32[1,32], index: 4, kind: input, shape index: {}]   ;;  %s869_s5 = inlined_call_operand.vmem [shape: f32[128,32], index: 5, kind: output, shape index: {}]  }
   0x1   :  { %v499_v0 = vld [vmem:[%s864_s1 + $0x38] sm:$0xff]  ;;  %v498_v1 = vld [vmem:[%s864_s1 + $0x30] sm:$0xff]  ;;  %v497_v2 = vld [vmem:[%s864_s1 + $0x28] sm:$0xff]  ;;  %528 = vrcp.f32 %v532_v60 }
   0x2   :  { %152 = vmatpush.bf16.msra.mxu0 %v499_v0  ;;  %500 = vmatpush.bf16.msra.mxu1 %v499_v0  ;;  %v496_v3 = vld [vmem:[%s864_s1 + $0x20] sm:$0xff]  ;;  %v495_v4 = vld [vmem:[%s864_s1 + $0x18] sm:$0xff]  ;;  %v494_v5 = vld [vmem:[%s864_s1 + $0x10] sm:$0xff] }
   0x3   :  { %501 = vmatpush.bf16.msra.mxu2 %v499_v0  ;;  %502 = vmatpush.bf16.msra.mxu3 %v499_v0  ;;  %v493_v6 = vld [vmem:[%s864_s1 + $0x8] sm:$0xff]  ;;  %v492_v7 = vld [vmem:[%s864_s1] sm:$0xff]  ;;  %v486_v9 = vld [vmem:[%s866_s0 + $0x10] sm:$0xff] }
   0x4   :  { %v484_v8 = vld [vmem:[%s866_s0] sm:$0xff]  ;;  %v490_v11 = vld [vmem:[%s866_s0 + $0x30] sm:$0xff]  ;;  %v485_v12 = vld [vmem:[%s866_s0 + $0x8] sm:$0xff] }
   0x5   :  { %v488_v10 = vld [vmem:[%s866_s0 + $0x20] sm:$0xff]  ;;  %v487_v13 = vld [vmem:[%s866_s0 + $0x18] sm:$0xff]  ;;  %v489_v14 = vld [vmem:[%s866_s0 + $0x28] sm:$0xff] }
   0x6   :  { %153 = vmatpush.bf16.msra.mxu0 %v498_v1  ;;  %503 = vmatpush.bf16.msra.mxu1 %v498_v1  ;;  %v491_v15 = vld [vmem:[%s866_s0 + $0x38] sm:$0xff]  ;;  %v525_v22 = vld [vmem:[%s865_s2] ss:$0 sm:$0xff] }
   0x7   :  { %504 = vmatpush.bf16.msra.mxu2 %v498_v1  ;;  %505 = vmatpush.bf16.msra.mxu3 %v498_v1 }
   0xa   :  { %154 = vmatpush.bf16.msra.mxu0 %v497_v2  ;;  %506 = vmatpush.bf16.msra.mxu1 %v497_v2 }
   0xb   :  { %507 = vmatpush.bf16.msra.mxu2 %v497_v2  ;;  %508 = vmatpush.bf16.msra.mxu3 %v497_v2 }
   0xe   :  { %155 = vmatpush.bf16.msra.mxu0 %v496_v3  ;;  %509 = vmatpush.bf16.msra.mxu1 %v496_v3 }
   0xf   :  { %510 = vmatpush.bf16.msra.mxu2 %v496_v3  ;;  %511 = vmatpush.bf16.msra.mxu3 %v496_v3 }
  0x12   :  { %156 = vmatpush.bf16.msra.mxu0 %v495_v4  ;;  %512 = vmatpush.bf16.msra.mxu1 %v495_v4 }
  0x13   :  { %513 = vmatpush.bf16.msra.mxu2 %v495_v4  ;;  %514 = vmatpush.bf16.msra.mxu3 %v495_v4 }
  0x16   :  { %157 = vmatpush.bf16.msra.mxu0 %v494_v5  ;;  %515 = vmatpush.bf16.msra.mxu1 %v494_v5 }
  0x17   :  { %516 = vmatpush.bf16.msra.mxu2 %v494_v5  ;;  %517 = vmatpush.bf16.msra.mxu3 %v494_v5  ;;  %v529_v5 = vpop.eup %528 }
  0x18   :  { %vm244_vm1 = vweird.f32 %v529_v5 }
  0x1a   :  { %158 = vmatpush.bf16.msra.mxu0 %v493_v6  ;;  %518 = vmatpush.bf16.msra.mxu1 %v493_v6 }
  0x1b   :  { %519 = vmatpush.bf16.msra.mxu2 %v493_v6  ;;  %520 = vmatpush.bf16.msra.mxu3 %v493_v6 }
  0x1e   :  { %159 = vmatpush.bf16.msra.mxu0 %v492_v7  ;;  %521 = vmatpush.bf16.msra.mxu1 %v492_v7 }
  0x1f   :  { %522 = vmatpush.bf16.msra.mxu2 %v492_v7  ;;  %523 = vmatpush.bf16.msra.mxu3 %v492_v7 }
  0x21   :  { %160 = vmatmul.bf16.vlgmr.msra.gmra.mxu0 %v484_v8  ;;  %170 = vmatmul.bf16.vlgmr.msra.gmra.mxu1 %v486_v9 }
  0x22   :  { %180 = vmatmul.bf16.vlgmr.msra.gmra.mxu2 %v488_v10  ;;  %190 = vmatmul.bf16.vlgmr.msra.gmra.mxu3 %v490_v11 }
  0x31   :  { %165 = vmatmul.bf16.gmra.mxu0 %v485_v12  ;;  %175 = vmatmul.bf16.gmra.mxu1 %v487_v13  ;;  %v240_v13 = vmul.f32 128.0, %v529_v5 }
  0x32   :  { %185 = vmatmul.bf16.gmra.mxu2 %v489_v14  ;;  %195 = vmatmul.bf16.gmra.mxu3 %v491_v15 }
  0x9e   :  { %v161_v16 = vpop.f32.mrf.mxu0  ;;  %v171_v17 = vpop.f32.mrf.mxu1 }
  0x9f   :  { %v616_v27 = vadd.f32 %v525_v22, %v161_v16  ;;  %v626_v35 = vadd.f32 %v525_v22, %v171_v17 }
  0xa1   :  { %v202_v30 = vsel %vm201_vm0, %v616_v27, 0.0  ;;  %v209_v43 = vsel %vm201_vm0, %v626_v35, 0.0 }
  0xa5   :  { %v181_v18 = vpop.f32.mrf.mxu2  ;;  %v191_v21 = vpop.f32.mrf.mxu3 }
  0xa6   :  { %v163_v19 = vpop.f32.mrf.mxu0  ;;  %v173_v20 = vpop.f32.mrf.mxu1  ;;  %v642_v49 = vadd.f32 %v525_v22, %v181_v18  ;;  %v658_v0 = vadd.f32 %v525_v22, %v191_v21  ;;  %v241_v18 = vsub.f32 1.0, %v240_v13 }
  0xa7   :  { %v614_v25 = vadd.f32 %v525_v22, %v163_v19  ;;  %v630_v39 = vadd.f32 %v525_v22, %v173_v20 }
  0xa8   :  { %v217_v57 = vsel %vm201_vm0, %v642_v49, 0.0  ;;  %v225_v8 = vsel %vm201_vm0, %v658_v0, 0.0  ;;  %v242_v21 = vmul.f32 %v529_v5, %v241_v18 }
  0xa9   :  { %v203_v29 = vsel %vm201_vm0, %v614_v25, 0.0  ;;  %v211_v46 = vsel %vm201_vm0, %v630_v39, 0.0 }
  0xaa   :  { %v204_v32 = vadd.f32 %v203_v29, %v202_v30 }
  0xad   :  { %v183_v24 = vpop.f32.mrf.mxu2  ;;  %v193_v34 = vpop.f32.mrf.mxu3 }
  0xae   :  { %v166_v23 = vpop.f32.mrf.mxu0  ;;  %v176_v26 = vpop.f32.mrf.mxu1  ;;  %v646_v53 = vadd.f32 %v525_v22, %v183_v24  ;;  %v662_v3 = vadd.f32 %v525_v22, %v193_v34 }
  0xaf   :  { %v618_v28 = vadd.f32 %v525_v22, %v166_v23  ;;  %v636_v44 = vadd.f32 %v525_v22, %v176_v26  ;;  %v243_v26 = vadd.f32 %v529_v5, %v242_v21 }
  0xb0   :  { %v219_v61 = vsel %vm201_vm0, %v646_v53, 0.0  ;;  %v227_v11 = vsel %vm201_vm0, %v662_v3, 0.0 }
  0xb1   :  { %v205_v31 = vsel %vm201_vm0, %v618_v28, 0.0  ;;  %v213_v50 = vsel %vm201_vm0, %v636_v44, 0.0  ;;  %v678_v30 = vsel %vm244_vm1, %v529_v5, %v243_v26 }
  0xb2   :  { %v206_v37 = vadd.f32 %v205_v31, %v204_v32 }
  0xb5   :  { %v186_v38 = vpop.f32.mrf.mxu2  ;;  %v196_v52 = vpop.f32.mrf.mxu3 }
  0xb6   :  { %v168_v33 = vpop.f32.mrf.mxu0  ;;  %v178_v42 = vpop.f32.mrf.mxu1  ;;  %v652_v58 = vadd.f32 %v525_v22, %v186_v38  ;;  %v668_v9 = vadd.f32 %v525_v22, %v196_v52 }
  0xb7   :  { %v628_v36 = vadd.f32 %v525_v22, %v168_v33  ;;  %v640_v47 = vadd.f32 %v525_v22, %v178_v42 }
  0xb8   :  { %v221_v1 = vsel %vm201_vm0, %v652_v58, 0.0  ;;  %v229_v15 = vsel %vm201_vm0, %v668_v9, 0.0 }
  0xb9   :  { %v207_v40 = vsel %vm201_vm0, %v628_v36, 0.0  ;;  %v215_v54 = vsel %vm201_vm0, %v640_v47, 0.0 }
  0xba   :  { %v208_v41 = vadd.f32 %v207_v40, %v206_v37 }
  0xbc   :  { %v210_v45 = vadd.f32 %v209_v43, %v208_v41 }
  0xbd   :  { %v188_v56 = vpop.f32.mrf.mxu2  ;;  %v198_v7 = vpop.f32.mrf.mxu3 }
  0xbe   :  { %v212_v48 = vadd.f32 %v211_v46, %v210_v45  ;;  %v656_v62 = vadd.f32 %v525_v22, %v188_v56  ;;  %v672_v12 = vadd.f32 %v525_v22, %v198_v7 }
  0xc0   :  { %v214_v51 = vadd.f32 %v213_v50, %v212_v48  ;;  %v223_v4 = vsel %vm201_vm0, %v656_v62, 0.0  ;;  %v231_v17 = vsel %vm201_vm0, %v672_v12, 0.0 }
  0xc2   :  { %v216_v55 = vadd.f32 %v215_v54, %v214_v51 }
  0xc4   :  { %v218_v59 = vadd.f32 %v217_v57, %v216_v55 }
  0xc6   :  { %v220_v63 = vadd.f32 %v219_v61, %v218_v59 }
  0xc8   :  { %v222_v2 = vadd.f32 %v221_v1, %v220_v63 }
  0xca   :  { %v224_v6 = vadd.f32 %v223_v4, %v222_v2 }
  0xcc   :  { %v226_v10 = vadd.f32 %v225_v8, %v224_v6 }
  0xce   :  { %v228_v14 = vadd.f32 %v227_v11, %v226_v10 }
  0xd0   :  { %v230_v16 = vadd.f32 %v229_v15, %v228_v14 }
  0xd2   :  { %v232_v19 = vadd.f32 %v231_v17, %v230_v16 }
  0xd4   :  { %v233_v20 = vrot.slane %v232_v19, 4 }
  0xd6   :  { %v234_v23 = vadd.f32 %v233_v20, %v232_v19 }
  0xd8   :  { %v235_v24 = vrot.slane %v234_v23, 2 }
  0xda   :  { %v236_v29 = vadd.f32 %v235_v24, %v234_v23 }
  0xdc   :  { %v237_v22 = vrot.slane %v236_v29, 1 }
  0xde   :  { %v238_v31 = vadd.f32 %v237_v22, %v236_v29 }
  0xe0   :  { %v246_v32 = vmul.f32 %v678_v30, %v238_v31 }
  0xe2   :  { %v682_v33 = vsub.f32 %v616_v27, %v246_v32  ;;  %v685_v34 = vsub.f32 %v614_v25, %v246_v32  ;;  %v688_v37 = vsub.f32 %v618_v28, %v246_v32  ;;  %v691_v38 = vsub.f32 %v628_v36, %v246_v32 }
  0xe3   :  { %v698_v42 = vsub.f32 %v626_v35, %v246_v32  ;;  %v703_v25 = vsub.f32 %v630_v39, %v246_v32  ;;  %v710_v46 = vsub.f32 %v636_v44, %v246_v32  ;;  %v716_v39 = vsub.f32 %v640_v47, %v246_v32 }
  0xe4   :  { %v263_v40 = vmul.f32 %v682_v33, %v682_v33  ;;  %v264_v41 = vmul.f32 %v685_v34, %v685_v34  ;;  %v265_v27 = vmul.f32 %v688_v37, %v688_v37  ;;  %v266_v28 = vmul.f32 %v691_v38, %v691_v38 }
  0xe5   :  { %v267_v35 = vmul.f32 %v698_v42, %v698_v42  ;;  %v268_v51 = vmul.f32 %v703_v25, %v703_v25  ;;  %v722_v55 = vsub.f32 %v642_v49, %v246_v32  ;;  %v269_v44 = vmul.f32 %v710_v46, %v710_v46 }
  0xe6   :  { %v279_v36 = vsel %vm201_vm0, %v263_v40, 0.0  ;;  %v280_v43 = vsel %vm201_vm0, %v264_v41, 0.0  ;;  %v282_v48 = vsel %vm201_vm0, %v265_v27, 0.0  ;;  %v284_v52 = vsel %vm201_vm0, %v266_v28, 0.0 }
  0xe7   :  { %v281_v45 = vadd.f32 %v280_v43, %v279_v36  ;;  %v286_v56 = vsel %vm201_vm0, %v267_v35, 0.0  ;;  %v728_v59 = vsub.f32 %v646_v53, %v246_v32  ;;  %v270_v47 = vmul.f32 %v716_v39, %v716_v39 }
  0xe8   :  { %v288_v60 = vsel %vm201_vm0, %v268_v51, 0.0  ;;  %v734_v63 = vsub.f32 %v652_v58, %v246_v32  ;;  %v271_v49 = vmul.f32 %v722_v55, %v722_v55  ;;  %v290_v1 = vsel %vm201_vm0, %v269_v44, 0.0 }
  0xe9   :  { %v283_v50 = vadd.f32 %v282_v48, %v281_v45  ;;  %v740_v4 = vsub.f32 %v656_v62, %v246_v32  ;;  %v272_v53 = vmul.f32 %v728_v59, %v728_v59  ;;  %v292_v5 = vsel %vm201_vm0, %v270_v47, 0.0 }
  0xea   :  { %v746_v7 = vsub.f32 %v658_v0, %v246_v32  ;;  %v273_v58 = vmul.f32 %v734_v63, %v734_v63  ;;  %v294_v8 = vsel %vm201_vm0, %v271_v49, 0.0  ;;  %v752_v11 = vsub.f32 %v662_v3, %v246_v32 }
  0xeb   :  { %v285_v54 = vadd.f32 %v284_v52, %v283_v50  ;;  %v274_v62 = vmul.f32 %v740_v4, %v740_v4  ;;  %v296_v13 = vsel %vm201_vm0, %v272_v53, 0.0  ;;  %v758_v15 = vsub.f32 %v668_v9, %v246_v32 }
  0xec   :  { %v275_v0 = vmul.f32 %v746_v7, %v746_v7  ;;  %v298_v16 = vsel %vm201_vm0, %v273_v58, 0.0  ;;  %v764_v18 = vsub.f32 %v672_v12, %v246_v32  ;;  %v276_v3 = vmul.f32 %v752_v11, %v752_v11 }
  0xed   :  { %v287_v57 = vadd.f32 %v286_v56, %v285_v54  ;;  %v300_v19 = vsel %vm201_vm0, %v274_v62, 0.0  ;;  %v277_v21 = vmul.f32 %v758_v15, %v758_v15 }
  0xee   :  { %v302_v9 = vsel %vm201_vm0, %v275_v0, 0.0  ;;  %v278_v24 = vmul.f32 %v764_v18, %v764_v18  ;;  %v304_v26 = vsel %vm201_vm0, %v276_v3, 0.0 }
  0xef   :  { %v289_v61 = vadd.f32 %v288_v60, %v287_v57  ;;  %v306_v12 = vsel %vm201_vm0, %v277_v21, 0.0 }
  0xf0   :  { %v308_v31 = vsel %vm201_vm0, %v278_v24, 0.0 }
  0xf1   :  { %v291_v2 = vadd.f32 %v290_v1, %v289_v61 }
  0xf3   :  { %v293_v6 = vadd.f32 %v292_v5, %v291_v2 }
  0xf5   :  { %v295_v10 = vadd.f32 %v294_v8, %v293_v6 }
  0xf7   :  { %v297_v14 = vadd.f32 %v296_v13, %v295_v10 }
  0xf9   :  { %v299_v17 = vadd.f32 %v298_v16, %v297_v14 }
  0xfb   :  { %v301_v20 = vadd.f32 %v300_v19, %v299_v17 }
  0xfd   :  { %v303_v23 = vadd.f32 %v302_v9, %v301_v20 }
  0xff   :  { %v305_v29 = vadd.f32 %v304_v26, %v303_v23 }
 0x101   :  { %v307_v22 = vadd.f32 %v306_v12, %v305_v29 }
 0x103   :  { %v309_v32 = vadd.f32 %v308_v31, %v307_v22 }
 0x105   :  { %v310_v40 = vrot.slane %v309_v32, 4 }
 0x107   :  { %v311_v41 = vadd.f32 %v310_v40, %v309_v32 }
 0x109   :  { %v312_v27 = vrot.slane %v311_v41, 2 }
 0x10b   :  { %v313_v28 = vadd.f32 %v312_v27, %v311_v41 }
 0x10d   :  { %v314_v36 = vrot.slane %v313_v28, 1 }
 0x10f   :  { %v315_v43 = vadd.f32 %v314_v36, %v313_v28 }
 0x111   :  { %v316_v45 = vmul.f32 %v315_v43, %v678_v30  ;;  %v526_v30 = vld [vmem:[%s867_s3] ss:$0 sm:$0xff] }
 0x113   :  { %v317_v35 = vadd.f32 1e-05, %v316_v45 }
 0x115   :  { %530 = vrsqrt.f32 %v317_v35  ;;  %vm324_vm3 = vweird.f32 %v317_v35 }
 0x11b   :  { %v531_v48 = vpop.eup %530 }
 0x11c   :  { %v319_v50 = vmul.f32 %v531_v48, %v317_v35  ;;  %vm325_vm2 = vweird.f32 %v531_v48 }
 0x11d   :  { %vm326_vm4 = vmor %vm324_vm3, %vm325_vm2 }
 0x11e   :  { %v320_v51 = vmul.f32 %v531_v48, %v319_v50 }
 0x120   :  { %v321_v52 = vmul.f32 0.5, %v320_v51 }
 0x122   :  { %v322_v54 = vsub.f32 1.5, %v321_v52 }
 0x124   :  { %v323_v44 = vmul.f32 %v531_v48, %v322_v54 }
 0x126   :  { %v327_v56 = vsel %vm326_vm4, %v531_v48, %v323_v44 }
 0x127   :  { %v328_v57 = vmul.f32 %v327_v56, %v682_v33  ;;  %v329_v47 = vmul.f32 %v327_v56, %v685_v34  ;;  %v330_v60 = vmul.f32 %v327_v56, %v688_v37  ;;  %v331_v61 = vmul.f32 %v327_v56, %v691_v38  ;;  %v527_v33 = vld [vmem:[%s868_s4] ss:$0 sm:$0xff] }
 0x128   :  { %v333_v49 = vmul.f32 %v327_v56, %v703_v25  ;;  %v334_v1 = vmul.f32 %v327_v56, %v710_v46  ;;  %v332_v2 = vmul.f32 %v327_v56, %v698_v42  ;;  %v335_v34 = vmul.f32 %v327_v56, %v716_v39 }
 0x129   :  { %v348_v53 = vmul.f32 %v526_v30, %v328_v57  ;;  %v349_v5 = vmul.f32 %v526_v30, %v329_v47  ;;  %v350_v6 = vmul.f32 %v526_v30, %v330_v60  ;;  %v351_v37 = vmul.f32 %v526_v30, %v331_v61 }
 0x12a   :  { %v336_v58 = vmul.f32 %v327_v56, %v722_v55  ;;  %v352_v8 = vmul.f32 %v526_v30, %v332_v2  ;;  %v337_v38 = vmul.f32 %v327_v56, %v728_v59  ;;  %v338_v25 = vmul.f32 %v327_v56, %v734_v63 }
 0x12b   :  { %v353_v46 = vmul.f32 %v526_v30, %v333_v49  ;;  %v354_v10 = vmul.f32 %v526_v30, %v334_v1  ;;  %v368_v42 = vadd.f32 %v527_v33, %v348_v53  ;;  %v369_v62 = vadd.f32 %v527_v33, %v349_v5 }
 0x12c   :  { %v370_v13 = vadd.f32 %v527_v33, %v350_v6  ;;  %v339_v14 = vmul.f32 %v327_v56, %v740_v4  ;;  %v355_v0 = vmul.f32 %v526_v30, %v335_v34  ;;  %v371_v16 = vadd.f32 %v527_v33, %v351_v37 }
 0x12d   :  { %v340_v17 = vmul.f32 %v327_v56, %v746_v7  ;;  %v341_v39 = vmul.f32 %v327_v56, %v752_v11  ;;  %v356_v3 = vmul.f32 %v526_v30, %v336_v58  ;;  %v372_v55 = vadd.f32 %v527_v33, %v352_v8 }
 0x12e   :  { %v342_v19 = vmul.f32 %v327_v56, %v758_v15  ;;  %v357_v59 = vmul.f32 %v526_v30, %v337_v38  ;;  %v358_v20 = vmul.f32 %v526_v30, %v338_v25  ;;  %v373_v63 = vadd.f32 %v527_v33, %v353_v46 }
 0x12f   :  { %v374_v21 = vadd.f32 %v527_v33, %v354_v10  ;;  %v384_v9 = vmax.f32 %v368_v42, 0.0  ;;  %v385_v23 = vmax.f32 %v369_v62, 0.0  ;;  %v386_v24 = vmax.f32 %v370_v13, 0.0 }
 0x130   :  { %v343_v26 = vmul.f32 %v327_v56, %v764_v18  ;;  %v359_v4 = vmul.f32 %v526_v30, %v339_v14  ;;  %v375_v29 = vadd.f32 %v527_v33, %v355_v0  ;;  %v387_v12 = vmax.f32 %v371_v16, 0.0 }
 0x131   :  { %v360_v22 = vmul.f32 %v526_v30, %v340_v17  ;;  %v376_v7 = vadd.f32 %v527_v33, %v356_v3  ;;  %v388_v31 = vmax.f32 %v372_v55, 0.0  ;;  %400 = vst.msk [vmem:[%s869_s5] sm:$0xff] %vm201_vm0, %v384_v9  ;;  %v361_v11 = vmul.f32 %v526_v30, %v341_v39 }
 0x132   :  { %v377_v15 = vadd.f32 %v527_v33, %v357_v59  ;;  %v389_v32 = vmax.f32 %v373_v63, 0.0  ;;  %401 = vst.msk [vmem:[%s869_s5 + $0x8] sm:$0xff] %vm201_vm0, %v385_v23  ;;  %v362_v18 = vmul.f32 %v526_v30, %v342_v19  ;;  %v378_v40 = vadd.f32 %v527_v33, %v358_v20 }
 0x133   :  { %v390_v41 = vmax.f32 %v374_v21, 0.0  ;;  %402 = vst.msk [vmem:[%s869_s5 + $0x10] sm:$0xff] %vm201_vm0, %v386_v24  ;;  %v363_v27 = vmul.f32 %v526_v30, %v343_v26  ;;  %v379_v28 = vadd.f32 %v527_v33, %v359_v4  ;;  %v391_v36 = vmax.f32 %v375_v29, 0.0 }
 0x134   :  { %403 = vst.msk [vmem:[%s869_s5 + $0x18] sm:$0xff] %vm201_vm0, %v387_v12  ;;  %v380_v43 = vadd.f32 %v527_v33, %v360_v22  ;;  %v392_v45 = vmax.f32 %v376_v7, 0.0  ;;  %v381_v35 = vadd.f32 %v527_v33, %v361_v11  ;;  %v393_v48 = vmax.f32 %v377_v15, 0.0 }
 0x135   :  { %404 = vst.msk [vmem:[%s869_s5 + $0x20] sm:$0xff] %vm201_vm0, %v388_v31  ;;  %v382_v50 = vadd.f32 %v527_v33, %v362_v18  ;;  %v394_v51 = vmax.f32 %v378_v40, 0.0  ;;  %v383_v52 = vadd.f32 %v527_v33, %v363_v27  ;;  %v395_v54 = vmax.f32 %v379_v28, 0.0 }
 0x136   :  { %405 = vst.msk [vmem:[%s869_s5 + $0x28] sm:$0xff] %vm201_vm0, %v389_v32  ;;  %v396_v44 = vmax.f32 %v380_v43, 0.0  ;;  %v397_v56 = vmax.f32 %v381_v35, 0.0 }
 0x137   :  { %406 = vst.msk [vmem:[%s869_s5 + $0x30] sm:$0xff] %vm201_vm0, %v390_v41  ;;  %v398_v57 = vmax.f32 %v382_v50, 0.0  ;;  %v399_v47 = vmax.f32 %v383_v52, 0.0 }
 0x138   :  { %407 = vst.msk [vmem:[%s869_s5 + $0x38] sm:$0xff] %vm201_vm0, %v391_v36 }
 0x139   :  { %408 = vst.msk [vmem:[%s869_s5 + $0x40] sm:$0xff] %vm201_vm0, %v392_v45 }
 0x13a   :  { %409 = vst.msk [vmem:[%s869_s5 + $0x48] sm:$0xff] %vm201_vm0, %v393_v48 }
 0x13b   :  { %410 = vst.msk [vmem:[%s869_s5 + $0x50] sm:$0xff] %vm201_vm0, %v394_v51 }
 0x13c   :  { %411 = vst.msk [vmem:[%s869_s5 + $0x58] sm:$0xff] %vm201_vm0, %v395_v54 }
 0x13d   :  { %412 = vst.msk [vmem:[%s869_s5 + $0x60] sm:$0xff] %vm201_vm0, %v396_v44 }
 0x13e   :  { %413 = vst.msk [vmem:[%s869_s5 + $0x68] sm:$0xff] %vm201_vm0, %v397_v56 }
 0x13f   :  { %414 = vst.msk [vmem:[%s869_s5 + $0x70] sm:$0xff] %vm201_vm0, %v398_v57 }
 0x140   :  { %415 = vst.msk [vmem:[%s869_s5 + $0x78] sm:$0xff] %vm201_vm0, %v399_v47 }

// kernel: ecgbert_forward.12
= control target key start
LH: loop header
LB: loop body
LE: loop exit
PB: predicated region body
PF: predicated region fallthrough
CT: control target
= control target key end

     0   :  { %s482_s12 = smov 0   ;;  %s532_s0 = inlined_call_operand.vmem [shape: bf16[128,96], index: 0, kind: input, shape index: {}]   ;;  %s533_s1 = inlined_call_operand.vmem [shape: bf16[96,32], index: 1, kind: input, shape index: {}]   ;;  %s534_s2 = inlined_call_operand.vmem [shape: f32[1,32], index: 2, kind: input, shape index: {}]   ;;  %s535_s3 = inlined_call_operand.vmem [shape: f32[128,32], index: 3, kind: output, shape index: {}]  }
   0x1 LB: > { %s362_s13 = sadd.s32 4294967295, %s460_s12   ;;  %p366_p0 = scmp.ge.s32.totalorder %s460_s12, 1  ;;  %s460_s12 = sphi %s482_s12, %s13_s12  }
   0x2   : > { %p138_p1 = scmp.lt.s32.totalorder %s460_s12, 3 }
   0x4   : > { %p139_p2 = pnand %p366_p0, %p138_p1 }
   0x5   : > { %s367_s18 = sshll.u32 (!%p139_p2), %s362_s13, 3 }
   0x6   : > { %142 = sbr.rel (%p139_p2) target bundleno = 180 (0xb4), region = 32  ;;  %p163_p3 = scmp.lt.s32.totalorder (!%p139_p2), %s367_s18, 15 }
   0xb   : > { %v426_v0 = vld [vmem:[%s533_s1 + $0x28] sm:$0xff]  ;;  %v425_v1 = vld [vmem:[%s533_s1 + $0x20] sm:$0xff]  ;;  %v424_v2 = vld [vmem:[%s533_s1 + $0x18] sm:$0xff]  ;;  %s537_s18 = smov (!%p163_p3, %s367_s18), 15  ;;  %vm255_vm0 = vcmask 785408   ;;  %vm297_vm1 = vcmask 261120  }
   0xc   : > { %270 = vmatpush.bf16.msra.mxu0 %v426_v0  ;;  %427 = vmatpush.bf16.msra.mxu1 %v426_v0  ;;  %v423_v3 = vld [vmem:[%s533_s1 + $0x10] sm:$0xff]  ;;  %v422_v4 = vld [vmem:[%s533_s1 + $0x8] sm:$0xff]  ;;  %s368_s25 = sshll.u32 %s537_s18, 2  ;;  %v421_v5 = vld [vmem:[%s533_s1] sm:$0xff]  ;;  %s370_s4 = sshll.u32 %s537_s18, 3 }
   0xd   : > { %428 = vmatpush.bf16.msra.mxu2 %v426_v0  ;;  %429 = vmatpush.bf16.msra.mxu3 %v426_v0  ;;  %s166_s30 = scalar_lea.vmem %s532_s0, %s368_s25  ;;  %v453_v10 = vld [vmem:[%s534_s2] ss:$0 sm:$0xff]  ;;  %s172_s9 = scalar_lea.vmem %s535_s3, %s370_s4 }
   0xe   : > { %v417_v6 = vld [vmem:[%s166_s30] sm:$0xff]  ;;  %v418_v7 = vld [vmem:[%s166_s30 + $0x8] sm:$0xff]  ;;  %v419_v8 = vld [vmem:[%s166_s30 + $0x10] sm:$0xff] }
   0xf   : > { %v420_v9 = vld [vmem:[%s166_s30 + $0x18] sm:$0xff] }
  0x10   : > { %271 = vmatpush.bf16.msra.mxu0 %v425_v1  ;;  %430 = vmatpush.bf16.msra.mxu1 %v425_v1 }
  0x11   : > { %431 = vmatpush.bf16.msra.mxu2 %v425_v1  ;;  %432 = vmatpush.bf16.msra.mxu3 %v425_v1 }
  0x14   : > { %272 = vmatpush.bf16.msra.mxu0 %v424_v2  ;;  %433 = vmatpush.bf16.msra.mxu1 %v424_v2 }
  0x15   : > { %434 = vmatpush.bf16.msra.mxu2 %v424_v2  ;;  %435 = vmatpush.bf16.msra.mxu3 %v424_v2 }
  0x18   : > { %273 = vmatpush.bf16.msra.mxu0 %v423_v3  ;;  %436 = vmatpush.bf16.msra.mxu1 %v423_v3 }
  0x19   : > { %437 = vmatpush.bf16.msra.mxu2 %v423_v3  ;;  %438 = vmatpush.bf16.msra.mxu3 %v423_v3 }
  0x1c   : > { %274 = vmatpush.bf16.msra.mxu0 %v422_v4  ;;  %439 = vmatpush.bf16.msra.mxu1 %v422_v4 }
  0x1d   : > { %440 = vmatpush.bf16.msra.mxu2 %v422_v4  ;;  %441 = vmatpush.bf16.msra.mxu3 %v422_v4 }
  0x20   : > { %275 = vmatpush.bf16.msra.mxu0 %v421_v5  ;;  %442 = vmatpush.bf16.msra.mxu1 %v421_v5 }
  0x21   : > { %443 = vmatpush.bf16.msra.mxu2 %v421_v5  ;;  %444 = vmatpush.bf16.msra.mxu3 %v421_v5 }
  0x23   : > { %411 = vmatmul.msk.bf16.vlgmr.msra.gmra.mxu0 %vm255_vm0, %v417_v6  ;;  %412 = vmatmul.msk.bf16.vlgmr.msra.gmra.mxu1 %vm255_vm0, %v418_v7 }
  0x24   : > { %413 = vmatmul.msk.bf16.vlgmr.msra.gmra.mxu2 %vm255_vm0, %v419_v8  ;;  %414 = vmatmul.msk.bf16.vlgmr.msra.gmra.mxu3 %vm255_vm0, %v420_v9 }
  0xa0   : > { %v277_v11 = vpop.f32.mrf.mxu0  ;;  %v282_v12 = vpop.f32.mrf.mxu1 }
  0xa1   : > { %v278_v13 = vadd.f32 %v453_v10, %v277_v11  ;;  %v283_v14 = vadd.f32 %v453_v10, %v282_v12 }
  0xa3   : > { %298 = vst.msk [vmem:[%s172_s9] sm:$0xff] %vm297_vm1, %v278_v13 }
  0xa4   : > { %300 = vst.msk [vmem:[%s172_s9 + $0x10] sm:$0xff] %vm297_vm1, %v283_v14 }
  0xa7   : > { %v287_v15 = vpop.f32.mrf.mxu2  ;;  %v292_v16 = vpop.f32.mrf.mxu3 }
  0xa8   : > { %v288_v17 = vadd.f32 %v453_v10, %v287_v15  ;;  %v293_v18 = vadd.f32 %v453_v10, %v292_v16  ;;  %v279_v19 = vpop.f32.mrf.mxu0  ;;  %v284_v20 = vpop.f32.mrf.mxu1 }
  0xa9   : > { %v280_v21 = vadd.f32 %v453_v10, %v279_v19  ;;  %v285_v22 = vadd.f32 %v453_v10, %v284_v20 }
  0xaa   : > { %302 = vst.msk [vmem:[%s172_s9 + $0x20] sm:$0xff] %vm297_vm1, %v288_v17 }
  0xab   : > { %304 = vst.msk [vmem:[%s172_s9 + $0x30] sm:$0xff] %vm297_vm1, %v293_v18 }
  0xac   : > { %299 = vst.msk [vmem:[%s172_s9 + $0x8] sm:$0xff] %vm297_vm1, %v280_v21 }
  0xad   : > { %301 = vst.msk [vmem:[%s172_s9 + $0x18] sm:$0xff] %vm297_vm1, %v285_v22 }
  0xaf   : > { %v289_v23 = vpop.f32.mrf.mxu2  ;;  %v294_v24 = vpop.f32.mrf.mxu3 }
  0xb0   : > { %v290_v25 = vadd.f32 %v453_v10, %v289_v23  ;;  %v295_v26 = vadd.f32 %v453_v10, %v294_v24 }
  0xb2   : > { %303 = vst.msk [vmem:[%s172_s9 + $0x28] sm:$0xff] %vm297_vm1, %v290_v25 }
  0xb3   : > { %305 = vst.msk [vmem:[%s172_s9 + $0x38] sm:$0xff] %vm297_vm1, %v295_v26 }
  0xb4 PF: > { %s13_s12 = sadd.s32 1, %s460_s12  }
  0xb5   : > { %p10_p4 = scmp.ge.s32.totalorder %s13_s12, 4  }
  0xb7   :  { %12 = sbr.rel (!%p10_p4) target bundleno = 1 (0x1), region = 62 }

// kernel: ecgbert_forward.15
= control target key start
LH: loop header
LB: loop body
LE: loop exit
PB: predicated region body
PF: predicated region fallthrough
CT: control target
= control target key end

     0   :  { %8 = vsyncpa [#allocation3], 0  ;;  %s636_s0 = inlined_call_operand.vmem [shape: bf16[128,32], index: 0, kind: input, shape index: {}]   ;;  %s637_s1 = inlined_call_operand.vmem [shape: bf16[32,64], index: 1, kind: input, shape index: {}]   ;;  %s638_s2 = inlined_call_operand.vmem [shape: f32[1,64], index: 2, kind: input, shape index: {}]   ;;  %s639_s3 = inlined_call_operand.hbm [shape: f32[128,64], index: 3, kind: output, shape index: {}]  }
   0x1   :  { %10 = vsyncpa [#allocation3 + $0x1], 0  ;;  %s531_s12 = smov 0   ;;  %s533_s13 = smov 0  }
   0x2   :  { %s535_s14 = smov 0   ;;  %s537_s15 = smov 0  }
   0x3 LB: > { %s552_s16 = sadd.s32 4294967295, %s507_s15   ;;  %s350_s17 = sadd.s32 4294967294, %s507_s15   ;;  %s507_s15 = sphi %s537_s15, %s645_s15   ;;  %s503_s14 = sphi %s535_s14, %s644_s14   ;;  %s499_s13 = sphi %s533_s13, %s643_s13   ;;  %s495_s12 = sphi %s531_s12, %s642_s12  }
   0x4   : > { %s556_s18 = sadd.s32 1, %s507_s15   ;;  %s91_s19 = sadd.s32 1, %s503_s14 }
   0x5   : > { %s88_s20 = ssub.s32 %s507_s15, %s556_s18  ;;  %p101_p0 = scmp.ne.s32.totalorder %s503_s14, %s499_s13 }
   0x6   : > { %p89_p1 = scmp.eq.s32.totalorder %s88_s20, 0  ;;  %p102_p2 = scmp.eq.s32.totalorder %s552_s16, 1 }
   0x7   : > { %p107_p3 = scmp.ne.s32.totalorder %s499_s13, %s495_s12  ;;  %p108_p4 = scmp.eq.s32.totalorder %s350_s17, 1 }
   0x8   : > { %s567_s21 = scalar_select %p89_p1, %s503_s14, %s91_s19  }
   0x9   : > { %p569_p5 = por %p102_p2, %p101_p0  ;;  %p573_p6 = por %p108_p4, %p107_p3 }
   0xa   : > { %p353_p7 = scmp.ge.s32.totalorder %s507_s15, 1  ;;  %p141_p8 = scmp.lt.s32.totalorder %s507_s15, 3 }
   0xc   : > { %p142_p9 = pnand %p353_p7, %p141_p8 }
   0xd   : > { %s355_s26 = sshll.u32 (!%p142_p9), %s552_s16, 3  ;;  %s162_s6 = sand.u32 (!%p142_p9), 1, %s499_s13  }
   0xe   : > { %145 = sbr.rel (%p142_p9) target bundleno = 175 (0xaf), region = 32  ;;  %p166_p10 = scmp.lt.s32.totalorder (!%p142_p9), %s355_s26, 15 }
   0xf   : > { %s354_s7 = sshll.u32 (!%p142_p9), %s162_s6, 6  ;;  %s396_s11 = sshll.u32 (!%p142_p9), %s552_s16, 6 }
  0x10   : > { %s164_s10 = scalar_lea.vmem (!%p142_p9), [#allocation2], %s354_s7  ;;  %s284_s20 = scalar_lea.hbm (!%p142_p9), %s639_s3, %s396_s11 }
  0x11   : > { %s285_s16 = sshll.u32 (!%p142_p9), %s164_s10, 4  ;;  %s287_s24 = sshll.u32 (!%p142_p9), %s284_s20, 4  ;;  %s286_s16 = int_to_ptr.vmem [resolvable:$true] %s285_s16  ;;  %s288_s24 = int_to_ptr.hbm [resolvable:$true] %s287_s24 }
  0x12   : > { %s273_s25 = scalar_lea.sflag (!%p142_p9), [#allocation3], %s162_s6  ;;  %s465_s30 = scalar_lea.hbm (!%p142_p9), %s639_s3, 128 }
  0x13   : > { %v395_v0 = vld [vmem:[%s637_s1 + $0x8] sm:$0xff]  ;;  %v394_v1 = vld [vmem:[%s637_s1] sm:$0xff]  ;;  %s647_s26 = smov (!%p166_p10, %s355_s26), 15  ;;  %vm221_vm0 = vcmask 261120   ;;  %vm263_vm1 = vcmask 523264  }
  0x14   : > { %240 = vmatpush.bf16.msra.mxu0 %v395_v0  ;;  %397 = vmatpush.bf16.msra.mxu1 %v395_v0  ;;  %s356_s29 = sshll.u32 %s647_s26, 2  ;;  %v444_v6 = vld [vmem:[%s638_s2] ss:$0 sm:$0xff]  ;;  %s459_s26 = sshra.s32 %s288_s24, 4  ;;  %s460_s26 = int_to_ptr.hbm [resolvable:$true] %s459_s26 }
  0x15   : > { %398 = vmatpush.bf16.msra.mxu2 %v395_v0  ;;  %399 = vmatpush.bf16.msra.mxu3 %v395_v0  ;;  %s169_s5 = scalar_lea.vmem %s636_s0, %s356_s29  ;;  %s461_s27 = scalar_lea.hbm %s460_s26, 64 }
  0x16   : > { %v390_v2 = vld [vmem:[%s169_s5] sm:$0xff]  ;;  %v391_v3 = vld [vmem:[%s169_s5 + $0x8] sm:$0xff]  ;;  %v392_v4 = vld [vmem:[%s169_s5 + $0x10] sm:$0xff]  ;;  %p462_p11 = scmp.ne.s32.totalorder %s460_s26, %s461_s27  ;;  %p466_p0 = scmp.lt.s32.totalorder %s460_s26, %s639_s3 }
  0x17   : > { %v393_v5 = vld [vmem:[%s169_s5 + $0x18] sm:$0xff]  ;;  %p467_p1 = scmp.lt.s32.totalorder %s465_s30, %s461_s27 }
  0x18   : > { %241 = vmatpush.bf16.msra.mxu0 %v394_v1  ;;  %400 = vmatpush.bf16.msra.mxu1 %v394_v1  ;;  %p463_p12 = pnand %p462_p11, %p569_p5 }
  0x19   : > { %401 = vmatpush.bf16.msra.mxu2 %v394_v1  ;;  %402 = vmatpush.bf16.msra.mxu3 %v394_v1  ;;  %p468_p2 = por %p467_p1, %p466_p0 }
  0x1a   : > { %p464_p13 = pneg %p463_p12 }
  0x1b   : > { %381 = vmatmul.msk.bf16.vlgmr.msra.gmra.mxu0 %vm221_vm0, %v390_v2  ;;  %382 = vmatmul.msk.bf16.vlgmr.msra.gmra.mxu1 %vm221_vm0, %v391_v3 }
  0x1c   : > { %383 = vmatmul.msk.bf16.vlgmr.msra.gmra.mxu2 %vm221_vm0, %v392_v4  ;;  %384 = vmatmul.msk.bf16.vlgmr.msra.gmra.mxu3 %vm221_vm0, %v393_v5  ;;  %p469_p3 = pnand %p468_p2, %p464_p13 }
  0x98   : > { %v243_v7 = vpop.f32.mrf.mxu0  ;;  %v248_v8 = vpop.f32.mrf.mxu1 }
  0x99   : > { %v244_v9 = vadd.f32 %v444_v6, %v243_v7  ;;  %v249_v10 = vadd.f32 %v444_v6, %v248_v8 }
  0x9b   : > { %264 = vst.msk [vmem:[%s164_s10] sm:$0xff] %vm263_vm1, %v244_v9 }
  0x9c   : > { %266 = vst.msk [vmem:[%s164_s10 + $0x10] sm:$0xff] %vm263_vm1, %v249_v10 }
  0x9f   : > { %v253_v11 = vpop.f32.mrf.mxu2  ;;  %v258_v12 = vpop.f32.mrf.mxu3 }
  0xa0   : > { %v254_v13 = vadd.f32 %v444_v6, %v253_v11  ;;  %v259_v14 = vadd.f32 %v444_v6, %v258_v12  ;;  %v245_v15 = vpop.f32.mrf.mxu0  ;;  %v250_v16 = vpop.f32.mrf.mxu1 }
  0xa1   : > { %v246_v17 = vadd.f32 %v444_v6, %v245_v15  ;;  %v251_v18 = vadd.f32 %v444_v6, %v250_v16 }
  0xa2   : > { %268 = vst.msk [vmem:[%s164_s10 + $0x20] sm:$0xff] %vm263_vm1, %v254_v13 }
  0xa3   : > { %270 = vst.msk [vmem:[%s164_s10 + $0x30] sm:$0xff] %vm263_vm1, %v259_v14 }
  0xa4   : > { %265 = vst.msk [vmem:[%s164_s10 + $0x8] sm:$0xff] %vm263_vm1, %v246_v17 }
  0xa5   : > { %267 = vst.msk [vmem:[%s164_s10 + $0x18] sm:$0xff] %vm263_vm1, %v251_v18 }
  0xa7   : > { %v255_v19 = vpop.f32.mrf.mxu2  ;;  %v260_v20 = vpop.f32.mrf.mxu3 }
  0xa8   : > { %v256_v21 = vadd.f32 %v444_v6, %v255_v19  ;;  %v261_v22 = vadd.f32 %v444_v6, %v260_v20 }
  0xaa   : > { %269 = vst.msk [vmem:[%s164_s10 + $0x28] sm:$0xff] %vm263_vm1, %v256_v21 }
  0xab   : > { %271 = vst.msk [vmem:[%s164_s10 + $0x38] sm:$0xff] %vm263_vm1, %v261_v22 }
  0xac   : > { %472 = shalt.err (!%p469_p3)
}
  0xad   : > { %s509_s6 = smov 128   ;;  %s510_s7 = smov 8  }
  0xae   : > { %403 = dma.vmem_to_hbm [thread:$0]  (%p569_p5), %s286_s16, 1024, %s288_s24, %s273_s25, %s509_s6, %s509_s6, %s510_s7  }
  0xaf PF: > { %p409_p4 = scmp.ge.s32.totalorder %s507_s15, 2  ;;  %s302_s8 = sand.u32 1, %s495_s12  }
  0xb0   : > { %s303_s9 = scalar_lea.sflag [#allocation3], %s302_s8 }
  0xb1   : > { %p406_p7 = pnand %p409_p4, %p573_p6 }
  0xb3   : > { %p407_p8 = pneg %p406_p7 }
  0xb5   : > { %490 = dma.done.wait (%p407_p8), %s303_s9, 1024  }
  0xb6   : > { %492 = vsyncadd (%p407_p8), %s303_s9, 4294966272  ;;  %p13_p9 = scmp.ge.s32.totalorder %s556_s18, 4   ;;  %s642_s12 = smov %s499_s13 }
  0xb7   : > { %s643_s13 = smov %s503_s14  ;;  %s644_s14 = smov %s567_s21 }
  0xb8   : > { %s645_s15 = smov %s556_s18  ;;  %15 = sbr.rel (!%p13_p9) target bundleno = 3 (0x3), region = 67 }
  0xbd   :  { %309 = vsyncpa [#allocation3], 1 }
  0xbe   :  { %311 = vsyncpa [#allocation3 + $0x1], 1 }

// kernel: ecgbert_forward.13
= control target key start
LH: loop header
LB: loop body
LE: loop exit
PB: predicated region body
PF: predicated region fallthrough
CT: control target
= control target key end

     0   :  { %s1496_s29 = smov 0   ;;  %s1686_s0 = inlined_call_operand.vmem [shape: f32[8,16,32], index: 0, kind: input, shape index: {}]   ;;  %s1687_s1 = inlined_call_operand.vmem [shape: f32[8,1,16], index: 1, kind: input, shape index: {}]   ;;  %s1688_s2 = inlined_call_operand.vmem [shape: bf16[32,96], index: 2, kind: input, shape index: {}]   ;;  %s1689_s3 = inlined_call_operand.vmem [shape: f32[1,96], index: 3, kind: input, shape index: {}]   ;;  %s1690_s4 = inlined_call_operand.vmem [shape: bf16[32,32], index: 4, kind: input, shape index: {}]   ;;  %s1691_s5 = inlined_call_operand.vmem [shape: f32[1,32], index: 5, kind: input, shape index: {}]   ;;  %s1692_s6 = inlined_call_operand.vmem [shape: f32[1,32], index: 6, kind: input, shape index: {}]   ;;  %s1693_s7 = inlined_call_operand.vmem [shape: f32[1,32], index: 7, kind: input, shape index: {}]   ;;  %s1694_s8 = inlined_call_operand.vmem [shape: bf16[32,64], index: 8, kind: input, shape index: {}]   ;;  %s1695_s9 = inlined_call_operand.vmem [shape: f32[1,64], index: 9, kind: input, shape index: {}]   ;;  %s1696_s10 = inlined_call_operand.vmem [shape: bf16[64,32], index: 10, kind: input, shape index: {}]   ;;  %s1697_s11 = inlined_call_operand.vmem [shape: f32[1,32], index: 11, kind: input, shape index: {}]   ;;  %s1698_s12 = inlined_call_operand.vmem [shape: f32[1,32], index: 12, kind: input, shape index: {}]   ;;  %s1699_s13 = inlined_call_operand.vmem [shape: f32[1,32], index: 13, kind: input, shape index: {}]   ;;  %s1700_s14 = inlined_call_operand.vmem [shape: f32[8,16,32], index: 14, kind: output, shape index: {}]  }
   0x1 LB: > { %s1231_s30 = sadd.s32 4294967295, %s1410_s29   ;;  %p1235_p0 = scmp.ge.s32.totalorder %s1410_s29, 1  ;;  %s1410_s29 = sphi %s1496_s29, %s24_s29  }
   0x2   : > { %p420_p1 = scmp.lt.s32.totalorder %s1410_s29, 9 }
   0x4   : > { %p421_p2 = pnand %p1235_p0, %p420_p1 }
   0x5   : > { %p469_p3 = scmp.lt.s32.totalorder (!%p421_p2), %s1231_s30, 7  ;;  %s1412_s28 = smov (!%p421_p2), 104  }
   0x6   : > { %424 = sbr.rel (%p421_p2) target bundleno = 2061 (0x80d), region = 76  ;;  %s1413_s15 = smov (!%p421_p2), 120  }
   0x7   : > { %s1414_s16 = smov (!%p421_p2), 112   ;;  %s1415_s17 = smov (!%p421_p2), 96  }
   0x8   : > { %s1416_s21 = smov (!%p421_p2), 64   ;;  %s1418_s23 = smov (!%p421_p2), 16  }
   0x9   : > { %s1419_s24 = smov (!%p421_p2), 24  }
   0xb   : > { %v1297_v0 = vld [vmem:[%s1688_s2 + $0x8] sm:$0xff]  ;;  %v1296_v1 = vld [vmem:[%s1688_s2] sm:$0xff]  ;;  %s1702_s30 = smov (!%p469_p3, %s1231_s30), 7  ;;  %vm506_vm0 = vcmask 261120   ;;  %vm559_vm1 = vcmask 64512   ;;  %vm681_vm2 = vcmask 130048  }
   0xc   : > { %516 = vmatpush.bf16.msra.mxu0 %v1297_v0  ;;  %s1294_s19 = sshll.u32 %s1702_s30, 4  ;;  %s476_s22 = scalar_lea.vmem %s1687_s1, %s1702_s30  ;;  %v1354_v6 = vld [vmem:[%s1689_s3] ss:$0 sm:$0xff]  ;;  %vm906_vm3 = vcmask 195584   ;;  %vm1089_vm11 = vcmask 523264  }
   0xd   : > { %s473_s25 = scalar_lea.vmem %s1686_s0, %s1294_s19  ;;  %v1353_v49 = vld [vmem:[%s476_s22] ss:$0 sm:$0xff]  ;;  %s1417_s22 = smov 8  }
   0xe   : > { %v1522_v2 = vld [vmem:[%s473_s25] sm:$0xff]  ;;  %v1524_v3 = vld [vmem:[%s473_s25 + $0x8] sm:$0xff] }
   0xf   : > { %v485_v4 = vpack.c.bf16 %v1524_v3, %v1522_v2 }
  0x10   : > { %517 = vmatpush.bf16.msra.mxu0 %v1296_v1 }
  0x13   : > { %1248 = vmatmul.msk.bf16.vlgmr.msra.gmra.mxu0 %vm506_vm0, %v485_v4 }
  0x90   : > { %v519_v5 = vpop.f32.mrf.mxu0 }
  0x91   : > { %v520_v8 = vadd.f32 %v1354_v6, %v519_v5 }
  0x93   : > { %v544_v12 = vpack.c.bf16 %v520_v8, %v520_v8 }
  0x95   : > { %v554_v14 = vunpack.c.l.b16 %v544_v12 }
  0x98   : > { %v521_v7 = vpop.f32.mrf.mxu0 }
  0x99   : > { %v522_v9 = vadd.f32 %v1354_v6, %v521_v7 }
  0x9b   : > { %v1333_v10 = vpack.i.bf16 %v522_v9, %v520_v8  ;;  %v545_v11 = vpack.c.bf16 %v522_v9, %v522_v9 }
  0x9d   : > { %1334 = vrot.lane.b32.xlu1 %v1333_v10, %s1412_s28  ;;  %1324 = vrot.lane.b32.xlu0 %v1333_v10, %s1413_s15  ;;  %v555_v13 = vunpack.c.l.b16 %v545_v11 }
  0x9f   : > { %v1532_v15 = vpack.c.b16 %v555_v13, %v554_v14 }
  0xa5   : > { %1329 = vrot.lane.b32.xlu0 %v1333_v10, %s1414_s16 }
  0xad   : > { %557 = vrot.lane.b32.xlu0 %v1532_v15, %s1415_s17 }
 0x10f   : > { %v1325_v16 = vpop.permute.xlu0 %1324  ;;  %v1335_v24 = vpop.permute.xlu1 %1334 }
 0x110   : > { %v1327_v17 = vunpack.i.h.bf16 %v1325_v16  ;;  %v1326_v18 = vunpack.i.l.bf16 %v1325_v16  ;;  %v1337_v28 = vunpack.i.h.bf16 %v1335_v24  ;;  %v1336_v29 = vunpack.i.l.bf16 %v1335_v24 }
 0x112   : > { %v547_v19 = vpack.c.bf16 %v1327_v17, %v1327_v17  ;;  %v546_v20 = vpack.c.bf16 %v1326_v18, %v1326_v18  ;;  %v551_v34 = vpack.c.bf16 %v1337_v28, %v1337_v28  ;;  %v550_v35 = vpack.c.bf16 %v1336_v29, %v1336_v29 }
 0x114   : > { %v583_v21 = vunpack.c.l.b16 %v547_v19  ;;  %v582_v22 = vunpack.c.l.b16 %v546_v20  ;;  %v637_v39 = vunpack.c.l.b16 %v551_v34  ;;  %v636_v40 = vunpack.c.l.b16 %v550_v35 }
 0x116   : > { %v1536_v23 = vpack.c.b16 %v583_v21, %v582_v22  ;;  %v1545_v41 = vpack.c.b16 %v637_v39, %v636_v40 }
 0x117   : > { %v1330_v25 = vpop.permute.xlu0 %1329 }
 0x118   : > { %v1332_v26 = vunpack.i.h.bf16 %v1330_v25  ;;  %v1331_v27 = vunpack.i.l.bf16 %v1330_v25  ;;  %585 = vrot.lane.b32.xlu1 %v1536_v23, %s1415_s17 }
 0x11a   : > { %v549_v30 = vpack.c.bf16 %v1332_v26, %v1332_v26  ;;  %v548_v31 = vpack.c.bf16 %v1331_v27, %v1331_v27 }
 0x11c   : > { %v610_v32 = vunpack.c.l.b16 %v549_v30  ;;  %v609_v33 = vunpack.c.l.b16 %v548_v31 }
 0x11e   : > { %v1540_v36 = vpack.c.b16 %v610_v32, %v609_v33 }
 0x11f   : > { %v558_v37 = vpop.permute.xlu0 %557 }
 0x120   : > { %612 = vrot.lane.b32.xlu2 %v1540_v36, %s1415_s17  ;;  %v564_v38 = vsel %vm559_vm1, %v558_v37, 0 }
 0x121   : > { %573 = vmatpush.bf16.xpose.msra.mxu1 %v564_v38 }
 0x128   : > { %639 = vrot.lane.b32.xlu2 %v1545_v41, %s1415_s17  ;;  %1249 = vmatmul.msk.bf16.vlgmr.msra.gmra.mxu1 %vm559_vm1, %v1532_v15  ;;  %s481_s17 = scalar_lea.vmem %s1700_s14, %s1294_s19 }
 0x17a   : > { %v613_v42 = vpop.permute.xlu2 %612 }
 0x17b   : > { %v618_v43 = vsel %vm559_vm1, %v613_v42, 0 }
 0x17c   : > { %627 = vmatpush.bf16.xpose.msra.mxu3 %v618_v43 }
 0x182   : > { %v640_v44 = vpop.permute.xlu2 %639 }
 0x183   : > { %1251 = vmatmul.msk.bf16.vlgmr.msra.gmra.mxu3 %vm559_vm1, %v1540_v36  ;;  %v645_v45 = vsel %vm559_vm1, %v640_v44, 0 }
 0x184   : > { %654 = vmatpush.bf16.xpose.msrb.mxu0 %v645_v45 }
 0x18a   : > { %v586_v46 = vpop.permute.xlu1 %585 }
 0x18b   : > { %1252 = vmatmul.msk.bf16.vlgmr.msrb.gmra.mxu0 %vm559_vm1, %v1545_v41  ;;  %v591_v47 = vsel %vm559_vm1, %v586_v46, 0 }
 0x18c   : > { %600 = vmatpush.bf16.xpose.msra.mxu2 %v591_v47 }
 0x193   : > { %1250 = vmatmul.msk.bf16.vlgmr.msra.gmra.mxu2 %vm559_vm1, %v1536_v23 }
 0x1a5   : > { %v575_v51 = vpop.f32.mrf.mxu1 }
 0x1a6   : > { %v661_v53 = vmul.f32 0.35355338, %v575_v51 }
 0x1a8   : > { %v1566_v55 = vadd.f32 %v1353_v49, %v661_v53 }
 0x1aa   : > { %v682_v56 = vsel %vm681_vm2, %v1566_v55, -inf }
 0x1ad   : > { %v577_v4 = vpop.f32.mrf.mxu1 }
 0x1ae   : > { %v662_v7 = vmul.f32 0.35355338, %v577_v4 }
 0x1b0   : > { %v674_v12 = vadd.f32 %v1353_v49, %v662_v7 }
 0x1b2   : > { %v685_v17 = vsel %vm681_vm2, %v674_v12, -inf }
 0x206   : > { %v629_v48 = vpop.f32.mrf.mxu3 }
 0x207   : > { %v665_v50 = vmul.f32 0.35355338, %v629_v48 }
 0x208   : > { %v656_v59 = vpop.f32.mrf.mxu0 }
 0x209   : > { %v677_v52 = vadd.f32 %v1353_v49, %v665_v50  ;;  %v667_v61 = vmul.f32 0.35355338, %v656_v59 }
 0x20b   : > { %v694_v54 = vsel %vm681_vm2, %v677_v52, -inf  ;;  %v679_v1 = vadd.f32 %v1353_v49, %v667_v61 }
 0x20c   : > { %695 = vmax.xlane.f32.xlu0 %v694_v54 }
 0x20d   : > { %v700_v9 = vsel %vm681_vm2, %v679_v1, -inf }
 0x20e   : > { %v631_v5 = vpop.f32.mrf.mxu3 }
 0x20f   : > { %v666_v8 = vmul.f32 0.35355338, %v631_v5 }
 0x210   : > { %v658_v13 = vpop.f32.mrf.mxu0 }
 0x211   : > { %v678_v11 = vadd.f32 %v1353_v49, %v666_v8  ;;  %v668_v14 = vmul.f32 0.35355338, %v658_v13 }
 0x213   : > { %v697_v16 = vsel %vm681_vm2, %v678_v11, -inf  ;;  %v680_v18 = vadd.f32 %v1353_v49, %v668_v14 }
 0x214   : > { %683 = vmax.xlane.f32.xlu0 %v682_v56 }
 0x215   : > { %v703_v19 = vsel %vm681_vm2, %v680_v18, -inf }
 0x216   : > { %v602_v57 = vpop.f32.mrf.mxu2 }
 0x217   : > { %v663_v58 = vmul.f32 0.35355338, %v602_v57 }
 0x219   : > { %v675_v60 = vadd.f32 %v1353_v49, %v663_v58 }
 0x21b   : > { %v688_v62 = vsel %vm681_vm2, %v675_v60, -inf }
 0x21c   : > { %689 = vmax.xlane.f32.xlu1 %v688_v62 }
 0x21e   : > { %v604_v63 = vpop.f32.mrf.mxu2 }
 0x21f   : > { %v664_v0 = vmul.f32 0.35355338, %v604_v63 }
 0x221   : > { %v676_v6 = vadd.f32 %v1353_v49, %v664_v0 }
 0x223   : > { %v691_v10 = vsel %vm681_vm2, %v676_v6, -inf }
 0x224   : > { %701 = vmax.xlane.f32.xlu1 %v700_v9  ;;  %692 = vmax.xlane.f32.xlu2 %v691_v10 }
 0x22c   : > { %698 = vmax.xlane.f32.xlu2 %v697_v16  ;;  %686 = vmax.xlane.f32.xlu1 %v685_v17 }
 0x234   : > { %704 = vmax.xlane.f32.xlu2 %v703_v19 }
 0x27f   : > { %v696_v20 = vpop.xlane.xlu0 %695 }
 0x280   : > { %v710_v21 = vsub.f32 %v677_v52, %v696_v20 }
 0x282   : > { %v722_v22 = vmul.f32 1.442695, %v710_v21 }
 0x284   : > { %1362 = vpow2.f32 %v722_v22 }
 0x287   : > { %v684_v53 = vpop.xlane.xlu0 %683 }
 0x288   : > { %v706_v54 = vsub.f32 %v1566_v55, %v684_v53 }
 0x28a   : > { %v1576_v24 = vpop.eup %1362  ;;  %v714_v58 = vmul.f32 1.442695, %v706_v54 }
 0x28b   : > { %v742_v25 = vsel %vm681_vm2, %v1576_v24, 0.0 }
 0x28c   : > { %743 = vadd.xlane.f32.xlu1 %v742_v25 }
 0x28f   : > { %v690_v26 = vpop.xlane.xlu1 %689 }
 0x290   : > { %v708_v27 = vsub.f32 %v675_v60, %v690_v26 }
 0x292   : > { %v718_v28 = vmul.f32 1.442695, %v708_v27 }
 0x294   : > { %1364 = vpow2.f32 %v718_v28 }
 0x297   : > { %v702_v29 = vpop.xlane.xlu1 %701  ;;  %v693_v30 = vpop.xlane.xlu2 %692 }
 0x298   : > { %v712_v31 = vsub.f32 %v679_v1, %v702_v29  ;;  %v709_v34 = vsub.f32 %v676_v6, %v693_v30 }
 0x29a   : > { %v1365_v32 = vpop.eup %1364  ;;  %v726_v33 = vmul.f32 1.442695, %v712_v31  ;;  %v720_v37 = vmul.f32 1.442695, %v709_v34 }
 0x29b   : > { %v736_v35 = vsel %vm681_vm2, %v1365_v32, 0.0 }
 0x29c   : > { %1366 = vpow2.f32 %v726_v33  ;;  %737 = vadd.xlane.f32.xlu2 %v736_v35 }
 0x29d   : > { %1368 = vpow2.f32 %v720_v37 }
 0x29f   : > { %v699_v38 = vpop.xlane.xlu2 %698  ;;  %v687_v56 = vpop.xlane.xlu1 %686 }
 0x2a0   : > { %v711_v39 = vsub.f32 %v678_v11, %v699_v38  ;;  %v707_v57 = vsub.f32 %v674_v12, %v687_v56 }
 0x2a2   : > { %v1581_v40 = vpop.eup %1366  ;;  %v724_v42 = vmul.f32 1.442695, %v711_v39  ;;  %v716_v59 = vmul.f32 1.442695, %v707_v57 }
 0x2a3   : > { %v748_v43 = vsel %vm681_vm2, %v1581_v40, 0.0  ;;  %v1369_v45 = vpop.eup %1368 }
 0x2a4   : > { %1370 = vpow2.f32 %v724_v42  ;;  %749 = vadd.xlane.f32.xlu0 %v748_v43  ;;  %v739_v50 = vsel %vm681_vm2, %v1369_v45, 0.0 }
 0x2a7   : > { %v705_v44 = vpop.xlane.xlu2 %704 }
 0x2a8   : > { %v713_v46 = vsub.f32 %v680_v18, %v705_v44 }
 0x2aa   : > { %v1371_v47 = vpop.eup %1370  ;;  %v728_v48 = vmul.f32 1.442695, %v713_v46 }
 0x2ab   : > { %v745_v49 = vsel %vm681_vm2, %v1371_v47, 0.0 }
 0x2ac   : > { %1372 = vpow2.f32 %v728_v48  ;;  %746 = vadd.xlane.f32.xlu2 %v745_v49  ;;  %740 = vadd.xlane.f32.xlu0 %v739_v50 }
 0x2ad   : > { %1374 = vpow2.f32 %v714_v58 }
 0x2ae   : > { %1376 = vpow2.f32 %v716_v59  ;;  %v1299_v59 = vld [vmem:[%s1690_s4 + $0x8] sm:$0xff] }
 0x2b2   : > { %v1373_v51 = vpop.eup %1372 }
 0x2b3   : > { %v751_v52 = vsel %vm681_vm2, %v1373_v51, 0.0  ;;  %v1375_v60 = vpop.eup %1374 }
 0x2b4   : > { %752 = vadd.xlane.f32.xlu1 %v751_v52  ;;  %v1593_v61 = vpop.eup %1376 }
 0x2c0   : > { %833 = vrot.lane.b32.xlu0 %v1540_v36, %s1416_s21  ;;  %v730_v36 = vsel %vm681_vm2, %v1375_v60, 0.0 }
 0x2c4   : > { %808 = vrot.lane.b32.xlu2 %v1536_v23, %s1416_s21  ;;  %v733_v23 = vsel %vm681_vm2, %v1593_v61, 0.0 }
 0x2cd   : > { %858 = vrot.lane.b32.xlu1 %v1545_v41, %s1416_s21 }
 0x2d5   : > { %783 = vrot.lane.b32.xlu1 %v1532_v15, %s1416_s21 }
 0x2ea   : > { %731 = vadd.xlane.f32.xlu0 %v730_v36 }
 0x2ed   : > { %734 = vadd.xlane.f32.xlu2 %v733_v23 }
 0x2ff   : > { %v744_v55 = vpop.xlane.xlu1 %743 }
 0x30f   : > { %v738_v41 = vpop.xlane.xlu2 %737 }
 0x310   : > { %1378 = vrcp.f32 %v738_v41 }
 0x311   : > { %1380 = vrcp.f32 %v744_v55 }
 0x316   : > { %v1379_v0 = vpop.eup %1378 }
 0x317   : > { %v750_v15 = vpop.xlane.xlu0 %749  ;;  %v764_v1 = vmul.f32 %v1379_v0, %v1365_v32  ;;  %v1381_v4 = vpop.eup %1380 }
 0x318   : > { %v766_v12 = vmul.f32 %v1381_v4, %v1576_v24 }
 0x319   : > { %v772_v8 = vpack.c.bf16 %v764_v1, %v764_v1 }
 0x31a   : > { %v774_v18 = vpack.c.bf16 %v766_v12, %v766_v12  ;;  %v1355_v12 = vld [vmem:[%s1691_s5] ss:$0 sm:$0xff] }
 0x31b   : > { %v805_v14 = vunpack.c.l.b16 %v772_v8 }
 0x31c   : > { %v830_v22 = vunpack.c.l.b16 %v774_v18 }
 0x31f   : > { %v747_v62 = vpop.xlane.xlu2 %746  ;;  %v741_v63 = vpop.xlane.xlu0 %740 }
 0x320   : > { %1382 = vrcp.f32 %v747_v62 }
 0x321   : > { %1384 = vrcp.f32 %v741_v63 }
 0x326   : > { %v1383_v5 = vpop.eup %1382 }
 0x327   : > { %v1385_v6 = vpop.eup %1384  ;;  %v809_v7 = vpop.permute.xlu2 %808  ;;  %v767_v9 = vmul.f32 %v1383_v5, %v1371_v47 }
 0x328   : > { %v765_v10 = vmul.f32 %v1385_v6, %v1369_v45  ;;  %821 = vmatpush.bf16.msrb.mxu2 %v809_v7  ;;  %v753_v11 = vpop.xlane.xlu1 %752 }
 0x329   : > { %v775_v16 = vpack.c.bf16 %v767_v9, %v767_v9  ;;  %1386 = vrcp.f32 %v753_v11 }
 0x32a   : > { %v773_v13 = vpack.c.bf16 %v765_v10, %v765_v10  ;;  %1388 = vrcp.f32 %v750_v15 }
 0x32b   : > { %v831_v20 = vunpack.c.l.b16 %v775_v16 }
 0x32c   : > { %v806_v17 = vunpack.c.l.b16 %v773_v13 }
 0x32d   : > { %v832_v27 = vpack.c.b16 %v831_v20, %v830_v22  ;;  %v1420_v22 = vmov 32.0  }
 0x32e   : > { %v807_v19 = vpack.c.b16 %v806_v17, %v805_v14 }
 0x32f   : > { %v1387_v21 = vpop.eup %1386 }
 0x330   : > { %1254 = vmatmul.msk.bf16.vlgmr.msrb.gmra.mxu2 %vm681_vm2, %v807_v19  ;;  %v1389_v26 = vpop.eup %1388  ;;  %v769_v28 = vmul.f32 %v1387_v21, %v1373_v51 }
 0x331   : > { %v768_v24 = vmul.f32 %v1389_v26, %v1581_v40 }
 0x332   : > { %v834_v25 = vpop.permute.xlu0 %833  ;;  %v777_v29 = vpack.c.bf16 %v769_v28, %v769_v28 }
 0x333   : > { %846 = vmatpush.bf16.msrb.mxu3 %v834_v25  ;;  %v776_v30 = vpack.c.bf16 %v768_v24, %v768_v24 }
 0x334   : > { %v856_v31 = vunpack.c.l.b16 %v777_v29 }
 0x335   : > { %v855_v32 = vunpack.c.l.b16 %v776_v30 }
 0x336   : > { %1255 = vmatmul.msk.bf16.vlgmr.msrb.gmra.mxu3 %vm681_vm2, %v832_v27 }
 0x337   : > { %v857_v34 = vpack.c.b16 %v856_v31, %v855_v32 }
 0x33f   : > { %v859_v33 = vpop.permute.xlu1 %858 }
 0x340   : > { %871 = vmatpush.bf16.msra.mxu0 %v859_v33 }
 0x343   : > { %1256 = vmatmul.msk.bf16.vlgmr.msra.gmra.mxu0 %vm681_vm2, %v857_v34 }
 0x347   : > { %v784_v35 = vpop.permute.xlu1 %783 }
 0x348   : > { %796 = vmatpush.bf16.msrb.mxu1 %v784_v35 }
 0x34c   : > { %939 = vmatpush.bf16.msra.mxu1 %v1299_v59 }
 0x35d   : > { %v732_v37 = vpop.xlane.xlu0 %731 }
 0x35e   : > { %1390 = vrcp.f32 %v732_v37 }
 0x360   : > { %v735_v38 = vpop.xlane.xlu2 %734 }
 0x361   : > { %1392 = vrcp.f32 %v735_v38 }
 0x362   : > { %1394 = vrcp.f32 %v1420_v22 }
 0x364   : > { %v1391_v39 = vpop.eup %1390 }
 0x365   : > { %v762_v42 = vmul.f32 %v1391_v39, %v1375_v60  ;;  %v1298_v60 = vld [vmem:[%s1690_s4] sm:$0xff]  ;;  %v1301_v39 = vld [vmem:[%s1694_s8 + $0x8] sm:$0xff] }
 0x366   : > { %940 = vmatpush.bf16.msra.mxu1 %v1298_v60  ;;  %1042 = vmatpush.bf16.msra.mxu2 %v1301_v39 }
 0x367   : > { %v1393_v43 = vpop.eup %1392  ;;  %v770_v44 = vpack.c.bf16 %v762_v42, %v762_v42 }
 0x368   : > { %v763_v40 = vmul.f32 %v1393_v43, %v1593_v61  ;;  %v1395_v25 = vpop.eup %1394 }
 0x369   : > { %v780_v46 = vunpack.c.l.b16 %v770_v44  ;;  %v958_v26 = vmul.f32 32.0, %v1395_v25  ;;  %vm962_vm4 = vweird.f32 %v1395_v25  ;;  %v1300_v44 = vld [vmem:[%s1694_s8] sm:$0xff] }
 0x36a   : > { %v771_v45 = vpack.c.bf16 %v763_v40, %v763_v40  ;;  %1043 = vmatpush.bf16.msra.mxu2 %v1300_v44 }
 0x36b   : > { %v959_v27 = vsub.f32 1.0, %v958_v26 }
 0x36c   : > { %v781_v47 = vunpack.c.l.b16 %v771_v45 }
 0x36d   : > { %v960_v28 = vmul.f32 %v1395_v25, %v959_v27 }
 0x36e   : > { %v782_v48 = vpack.c.b16 %v781_v47, %v780_v46 }
 0x36f   : > { %v961_v24 = vadd.f32 %v1395_v25, %v960_v28 }
 0x370   : > { %1253 = vmatmul.msk.bf16.vlgmr.msrb.gmra.mxu1 %vm681_vm2, %v782_v48 }
 0x371   : > { %v1623_v29 = vsel %vm962_vm4, %v1395_v25, %v961_v24 }
 0x3b3   : > { %v823_v49 = vpop.f32.mrf.mxu2 }
 0x3b9   : > { %v848_v50 = vpop.f32.mrf.mxu3 }
 0x3bb   : > { %v825_v51 = vpop.f32.mrf.mxu2 }
 0x3bc   : > { %v1338_v52 = vpack.i.bf16 %v825_v51, %v823_v49 }
 0x3be   : > { %1339 = vrot.lane.b32.xlu1 %v1338_v52, %s1417_s22 }
 0x3c0   : > { %v873_v53 = vpop.f32.mrf.mxu0 }
 0x3c1   : > { %v850_v54 = vpop.f32.mrf.mxu3 }
 0x3c2   : > { %v1343_v56 = vpack.i.bf16 %v850_v54, %v848_v50 }
 0x3c6   : > { %1344 = vrot.lane.b32.xlu1 %v1343_v56, %s1418_s23 }
 0x3c8   : > { %v875_v57 = vpop.f32.mrf.mxu0 }
 0x3c9   : > { %v1348_v58 = vpack.i.bf16 %v875_v57, %v873_v53 }
 0x3ce   : > { %1349 = vrot.lane.b32.xlu1 %v1348_v58, %s1419_s24 }
 0x3ed   : > { %v798_v36 = vpop.f32.mrf.mxu1 }
 0x3f5   : > { %v800_v63 = vpop.f32.mrf.mxu1 }
 0x430   : > { %v1340_v61 = vpop.permute.xlu1 %1339 }
 0x431   : > { %v1342_v41 = vunpack.i.h.bf16 %v1340_v61  ;;  %v1341_v15 = vunpack.i.l.bf16 %v1340_v61  ;;  %v1356_v61 = vld [vmem:[%s1692_s6] ss:$0 sm:$0xff] }
 0x433   : > { %v902_v1 = vsel %vm559_vm1, %v798_v36, %v1341_v15  ;;  %v903_v4 = vsel %vm559_vm1, %v800_v63, %v1342_v41  ;;  %v1357_v15 = vld [vmem:[%s1693_s7] ss:$0 sm:$0xff] }
 0x438   : > { %v1345_v23 = vpop.permute.xlu1 %1344 }
 0x439   : > { %v1347_v55 = vunpack.i.h.bf16 %v1345_v23  ;;  %v1346_v62 = vunpack.i.l.bf16 %v1345_v23 }
 0x43b   : > { %v904_v7 = vsel %vm681_vm2, %v902_v1, %v1346_v62  ;;  %v905_v8 = vsel %vm681_vm2, %v903_v4, %v1347_v55 }
 0x440   : > { %v1350_v0 = vpop.permute.xlu1 %1349 }
 0x441   : > { %v1352_v5 = vunpack.i.h.bf16 %v1350_v0  ;;  %v1351_v6 = vunpack.i.l.bf16 %v1350_v0 }
 0x443   : > { %v907_v9 = vsel %vm906_vm3, %v904_v7, %v1351_v6  ;;  %v908_v10 = vsel %vm906_vm3, %v905_v8, %v1352_v5  ;;  %v1305_v5 = vld [vmem:[%s1696_s10 + $0x18] sm:$0xff]  ;;  %v1304_v6 = vld [vmem:[%s1696_s10 + $0x10] sm:$0xff]  ;;  %v1303_v7 = vld [vmem:[%s1696_s10 + $0x8] sm:$0xff] }
 0x444   : > { %v909_v11 = vpack.c.bf16 %v908_v10, %v907_v9  ;;  %1097 = vmatpush.bf16.msra.mxu3 %v1305_v5  ;;  %v1302_v8 = vld [vmem:[%s1696_s10] sm:$0xff] }
 0x445   : > { %v1358_v10 = vld [vmem:[%s1695_s9] ss:$0 sm:$0xff] }
 0x446   : > { %1265 = vmatmul.msk.bf16.vlgmr.msra.gmra.mxu1 %vm506_vm0, %v909_v11 }
 0x448   : > { %1098 = vmatpush.bf16.msra.mxu3 %v1304_v6 }
 0x44c   : > { %1099 = vmatpush.bf16.msra.mxu3 %v1303_v7 }
 0x450   : > { %1100 = vmatpush.bf16.msra.mxu3 %v1302_v8 }
 0x4c3   : > { %v942_v13 = vpop.f32.mrf.mxu1 }
 0x4c4   : > { %v943_v14 = vadd.f32 %v1355_v12, %v942_v13 }
 0x4c6   : > { %v947_v16 = vadd.f32 %v943_v14, %v1522_v2 }
 0x4c8   : > { %v951_v17 = vsel %vm506_vm0, %v947_v16, 0.0 }
 0x4c9   : > { %952 = vadd.xlane.f32.xlu1 %v951_v17 }
 0x4cb   : > { %v944_v18 = vpop.f32.mrf.mxu1 }
 0x4cc   : > { %v945_v19 = vadd.f32 %v1355_v12, %v944_v18  ;;  %v1359_v18 = vld [vmem:[%s1697_s11] ss:$0 sm:$0xff] }
 0x4ce   : > { %v948_v20 = vadd.f32 %v945_v19, %v1524_v3 }
 0x4d0   : > { %v954_v21 = vsel %vm506_vm0, %v948_v20, 0.0 }
 0x4d1   : > { %955 = vadd.xlane.f32.xlu0 %v954_v21 }
 0x53c   : > { %v953_v2 = vpop.xlane.xlu1 %952 }
 0x53d   : > { %v964_v30 = vmul.f32 %v1623_v29, %v953_v2 }
 0x53f   : > { %v966_v31 = vsub.f32 %v947_v16, %v964_v30 }
 0x541   : > { %v968_v32 = vmul.f32 %v966_v31, %v966_v31 }
 0x543   : > { %v970_v3 = vsel %vm506_vm0, %v968_v32, 0.0 }
 0x544   : > { %v956_v33 = vpop.xlane.xlu0 %955  ;;  %971 = vadd.xlane.f32.xlu2 %v970_v3 }
 0x545   : > { %v965_v34 = vmul.f32 %v1623_v29, %v956_v33 }
 0x547   : > { %v967_v35 = vsub.f32 %v948_v20, %v965_v34 }
 0x549   : > { %v969_v37 = vmul.f32 %v967_v35, %v967_v35 }
 0x54b   : > { %v973_v38 = vsel %vm506_vm0, %v969_v37, 0.0 }
 0x54c   : > { %974 = vadd.xlane.f32.xlu0 %v973_v38 }
 0x5b7   : > { %v972_v42 = vpop.xlane.xlu2 %971 }
 0x5b8   : > { %v976_v43 = vmul.f32 %v972_v42, %v1623_v29 }
 0x5ba   : > { %v978_v40 = vadd.f32 1e-05, %v976_v43 }
 0x5bc   : > { %1396 = vrsqrt.f32 %v978_v40  ;;  %vm986_vm6 = vweird.f32 %v978_v40 }
 0x5bf   : > { %v975_v45 = vpop.xlane.xlu0 %974 }
 0x5c0   : > { %v977_v46 = vmul.f32 %v975_v45, %v1623_v29 }
 0x5c2   : > { %v1397_v47 = vpop.eup %1396  ;;  %v979_v48 = vadd.f32 1e-05, %v977_v46 }
 0x5c3   : > { %v981_v49 = vmul.f32 %v1397_v47, %v978_v40  ;;  %vm987_vm5 = vweird.f32 %v1397_v47 }
 0x5c4   : > { %1398 = vrsqrt.f32 %v979_v48  ;;  %vm988_vm7 = vmor %vm986_vm6, %vm987_vm5  ;;  %vm996_vm9 = vweird.f32 %v979_v48 }
 0x5c5   : > { %v982_v50 = vmul.f32 %v1397_v47, %v981_v49 }
 0x5c7   : > { %v983_v51 = vmul.f32 0.5, %v982_v50 }
 0x5c9   : > { %v984_v52 = vsub.f32 1.5, %v983_v51 }
 0x5ca   : > { %v1399_v53 = vpop.eup %1398 }
 0x5cb   : > { %v985_v54 = vmul.f32 %v1397_v47, %v984_v52  ;;  %v991_v56 = vmul.f32 %v1399_v53, %v979_v48  ;;  %vm997_vm8 = vweird.f32 %v1399_v53 }
 0x5cc   : > { %vm998_vm10 = vmor %vm996_vm9, %vm997_vm8 }
 0x5cd   : > { %v992_v57 = vmul.f32 %v1399_v53, %v991_v56  ;;  %v989_v58 = vsel %vm988_vm7, %v1397_v47, %v985_v54  ;;  %v1361_v56 = vld [vmem:[%s1699_s13] ss:$0 sm:$0xff] }
 0x5ce   : > { %v1000_v36 = vmul.f32 %v989_v58, %v966_v31 }
 0x5cf   : > { %v993_v59 = vmul.f32 0.5, %v992_v57 }
 0x5d0   : > { %v1005_v55 = vmul.f32 %v1356_v61, %v1000_v36 }
 0x5d1   : > { %v994_v60 = vsub.f32 1.5, %v993_v59 }
 0x5d2   : > { %v1010_v0 = vadd.f32 %v1357_v15, %v1005_v55 }
 0x5d3   : > { %v995_v23 = vmul.f32 %v1399_v53, %v994_v60 }
 0x5d5   : > { %v999_v41 = vsel %vm998_vm10, %v1399_v53, %v995_v23  ;;  %v1360_v53 = vld [vmem:[%s1698_s12] ss:$0 sm:$0xff] }
 0x5d6   : > { %v1001_v62 = vmul.f32 %v999_v41, %v967_v35 }
 0x5d8   : > { %v1006_v63 = vmul.f32 %v1356_v61, %v1001_v62 }
 0x5da   : > { %v1011_v1 = vadd.f32 %v1357_v15, %v1006_v63 }
 0x5dc   : > { %v1012_v4 = vpack.c.bf16 %v1011_v1, %v1010_v0 }
 0x5de   : > { %1274 = vmatmul.msk.bf16.vlgmr.msra.gmra.mxu2 %vm506_vm0, %v1012_v4 }
 0x661   : > { %v1045_v9 = vpop.f32.mrf.mxu2 }
 0x662   : > { %v1046_v11 = vadd.f32 %v1358_v10, %v1045_v9 }
 0x664   : > { %v1050_v14 = vmax.f32 %v1046_v11, 0.0 }
 0x669   : > { %v1047_v12 = vpop.f32.mrf.mxu2 }
 0x66a   : > { %v1048_v13 = vadd.f32 %v1358_v10, %v1047_v12 }
 0x66c   : > { %v1051_v16 = vmax.f32 %v1048_v13, 0.0 }
 0x66e   : > { %v1052_v17 = vpack.c.bf16 %v1051_v16, %v1050_v14 }
 0x670   : > { %1291 = vmatmul.msk.bf16.vlgmr.msra.gmra.mxu3 %vm1089_vm11, %v1052_v17 }
 0x6f3   : > { %v1102_v19 = vpop.f32.mrf.mxu3 }
 0x6f4   : > { %v1103_v20 = vadd.f32 %v1359_v18, %v1102_v19 }
 0x6f6   : > { %v1107_v21 = vadd.f32 %v1103_v20, %v1010_v0 }
 0x6f8   : > { %v1111_v22 = vsel %vm506_vm0, %v1107_v21, 0.0 }
 0x6f9   : > { %1112 = vadd.xlane.f32.xlu2 %v1111_v22 }
 0x6fb   : > { %v1104_v25 = vpop.f32.mrf.mxu3 }
 0x6fc   : > { %v1105_v26 = vadd.f32 %v1359_v18, %v1104_v25 }
 0x6fe   : > { %v1108_v27 = vadd.f32 %v1105_v26, %v1011_v1 }
 0x700   : > { %v1114_v28 = vsel %vm506_vm0, %v1108_v27, 0.0 }
 0x701   : > { %1115 = vadd.xlane.f32.xlu0 %v1114_v28 }
 0x76c   : > { %v1113_v24 = vpop.xlane.xlu2 %1112 }
 0x76d   : > { %v1117_v2 = vmul.f32 %v1113_v24, %v1623_v29 }
 0x76f   : > { %v1119_v30 = vsub.f32 %v1107_v21, %v1117_v2 }
 0x771   : > { %v1121_v31 = vmul.f32 %v1119_v30, %v1119_v30 }
 0x773   : > { %v1123_v32 = vsel %vm506_vm0, %v1121_v31, 0.0 }
 0x774   : > { %v1116_v3 = vpop.xlane.xlu0 %1115  ;;  %1124 = vadd.xlane.f32.xlu2 %v1123_v32 }
 0x775   : > { %v1118_v33 = vmul.f32 %v1116_v3, %v1623_v29 }
 0x777   : > { %v1120_v34 = vsub.f32 %v1108_v27, %v1118_v33 }
 0x779   : > { %v1122_v35 = vmul.f32 %v1120_v34, %v1120_v34 }
 0x77b   : > { %v1126_v37 = vsel %vm506_vm0, %v1122_v35, 0.0 }
 0x77c   : > { %1127 = vadd.xlane.f32.xlu0 %v1126_v37 }
 0x7e7   : > { %v1125_v38 = vpop.xlane.xlu2 %1124 }
 0x7e8   : > { %v1129_v39 = vmul.f32 %v1125_v38, %v1623_v29 }
 0x7ea   : > { %v1131_v42 = vadd.f32 1e-05, %v1129_v39 }
 0x7ec   : > { %1400 = vrsqrt.f32 %v1131_v42  ;;  %vm1139_vm13 = vweird.f32 %v1131_v42 }
 0x7ef   : > { %v1128_v43 = vpop.xlane.xlu0 %1127 }
 0x7f0   : > { %v1130_v44 = vmul.f32 %v1128_v43, %v1623_v29 }
 0x7f2   : > { %v1401_v40 = vpop.eup %1400  ;;  %v1132_v45 = vadd.f32 1e-05, %v1130_v44 }
 0x7f3   : > { %v1134_v46 = vmul.f32 %v1401_v40, %v1131_v42  ;;  %vm1140_vm12 = vweird.f32 %v1401_v40 }
 0x7f4   : > { %1402 = vrsqrt.f32 %v1132_v45  ;;  %vm1141_vm14 = vmor %vm1139_vm13, %vm1140_vm12  ;;  %vm1149_vm1 = vweird.f32 %v1132_v45 }
 0x7f5   : > { %v1135_v47 = vmul.f32 %v1401_v40, %v1134_v46 }
 0x7f7   : > { %v1136_v48 = vmul.f32 0.5, %v1135_v47 }
 0x7f9   : > { %v1137_v49 = vsub.f32 1.5, %v1136_v48 }
 0x7fa   : > { %v1403_v50 = vpop.eup %1402 }
 0x7fb   : > { %v1138_v51 = vmul.f32 %v1401_v40, %v1137_v49  ;;  %v1144_v52 = vmul.f32 %v1403_v50, %v1132_v45  ;;  %vm1150_vm15 = vweird.f32 %v1403_v50 }
 0x7fc   : > { %vm1151_vm2 = vmor %vm1149_vm1, %vm1150_vm15 }
 0x7fd   : > { %v1142_v54 = vsel %vm1141_vm14, %v1401_v40, %v1138_v51  ;;  %v1145_v29 = vmul.f32 %v1403_v50, %v1144_v52 }
 0x7fe   : > { %v1153_v57 = vmul.f32 %v1142_v54, %v1119_v30 }
 0x7ff   : > { %v1146_v58 = vmul.f32 0.5, %v1145_v29 }
 0x800   : > { %v1158_v59 = vmul.f32 %v1360_v53, %v1153_v57 }
 0x801   : > { %v1147_v60 = vsub.f32 1.5, %v1146_v58 }
 0x802   : > { %v1163_v61 = vadd.f32 %v1361_v56, %v1158_v59 }
 0x803   : > { %v1148_v36 = vmul.f32 %v1403_v50, %v1147_v60 }
 0x804   : > { %1165 = vst.msk [vmem:[%s481_s17] sm:$0xff] %vm506_vm0, %v1163_v61 }
 0x805   : > { %v1152_v23 = vsel %vm1151_vm2, %v1403_v50, %v1148_v36 }
 0x806   : > { %v1154_v41 = vmul.f32 %v1152_v23, %v1120_v34 }
 0x808   : > { %v1159_v15 = vmul.f32 %v1360_v53, %v1154_v41 }
 0x80a   : > { %v1164_v55 = vadd.f32 %v1361_v56, %v1159_v15 }
 0x80c   : > { %1166 = vst.msk [vmem:[%s481_s17 + $0x8] sm:$0xff] %vm506_vm0, %v1164_v55 }
 0x80d PF: > { %s24_s29 = sadd.s32 1, %s1410_s29  }
 0x80e   : > { %p21_p4 = scmp.ge.s32.totalorder %s24_s29, 10  }
 0x810   :  { %23 = sbr.rel (!%p21_p4) target bundleno = 1 (0x1), region = 109 }

</bundles_post_ra>
